<compile_context>
chip_gen: v7x
topology: tpu7x:2x2x1
jax: 0.10.0
libtpu: 0.0.40
codegen_flags: <defaults>
</compile_context>

<pallas_src>
import math
import re
from functools import partial

import jax
import jax.numpy as jnp
from jax.experimental import pallas as pl
from jax.experimental.pallas import tpu as pltpu


# ---------------------------------------------------------------------------
# small math helpers (usable both inside Pallas kernels and in the JAX ref)
# ---------------------------------------------------------------------------
def _layernorm(x, w, b, eps=1e-5):
    mu = jnp.mean(x, axis=-1, keepdims=True)
    var = jnp.mean((x - mu) ** 2, axis=-1, keepdims=True)
    return (x - mu) * jax.lax.rsqrt(var + eps) * w + b


def _rmsnorm(x, w, eps=1e-5):
    ms = jnp.mean(x * x, axis=-1, keepdims=True)
    return x * jax.lax.rsqrt(ms + eps) * w


# ---------------------------------------------------------------------------
# chip-dependent knobs
# ---------------------------------------------------------------------------
def _tpu_generation():
    try:
        kind = jax.devices()[0].device_kind
    except Exception:
        return 0
    m = re.search(r"(\d+)", kind)
    return int(m.group(1)) if m else 0


def _vmem_limit_bytes():
    # v5e/v6e: 128 MiB VMEM per core; v7x: 64 MiB.  Derive instead of hard-coding 48 MiB.
    try:
        cap = int(getattr(pltpu.get_tpu_info(), "vmem_capacity_bytes", 0))
    except Exception:
        cap = 0
    if cap > 0:
        return int(min(cap * 0.85, 100 * 1024 * 1024))
    return 48 * 1024 * 1024


_BUFFERED_SUPPORTED = None


def _buffered_weights_supported():
    """One-time probe: does BlockSpec(pipeline_mode=pl.Buffered(1)) build+run in this JAX?"""
    global _BUFFERED_SUPPORTED
    if _BUFFERED_SUPPORTED is None:
        try:
            def _probe(a_ref, o_ref):
                o_ref[...] = a_ref[...] + 1.0

            f = pl.pallas_call(
                _probe, grid=(1,),
                in_specs=[pl.BlockSpec((8, 128), lambda i: (0, 0),
                                       pipeline_mode=pl.Buffered(1))],
                out_specs=pl.BlockSpec((8, 128), lambda i: (0, 0)),
                out_shape=jax.ShapeDtypeStruct((8, 128), jnp.float32))
            jax.block_until_ready(f(jnp.zeros((8, 128), jnp.float32)))
            _BUFFERED_SUPPORTED = True
        except Exception:
            # TODO(synk): pl.Buffered(1) single-buffering unsupported in this build; static
            # weights fall back to default double-buffered BlockSpecs (2x resident weight VMEM).
            _BUFFERED_SUPPORTED = False
    return _BUFFERED_SUPPORTED


def _divisible_tile(total, desired):
    """Largest multiple of 8 <= desired that divides total (falls back to total)."""
    t = min(desired, total)
    t = max(8, t - (t % 8))
    while t > 8 and total % t != 0:
        t -= 8
    return t if total % t == 0 else total


# ---------------------------------------------------------------------------
# Kernel 1: LayerNorm + fused QKV projection + head-major relayout
#           grid = (B, T // TS)   -- memory-bound, big sequence tiles
# ---------------------------------------------------------------------------
def ln_qkv_kernel(x_ref, ln1w_ref, ln1b_ref, wqkv_ref, q_ref, k_ref, v_ref,
                  *, emb, num_heads, head_dim):
    E, H, hd = emb, num_heads, head_dim
    G, dh = 2 * H, 2 * hd
    x = x_ref[0]                                        # (TS, E) f32
    xn = _layernorm(x, ln1w_ref[0], ln1b_ref[0])        # norm math in f32
    xb = xn.astype(jnp.bfloat16)
    # one fused (TS,E)x(E,3E) matmul; hd**-0.5 query scaling pre-folded into the Wq columns
    qkv = jnp.dot(xb, wqkv_ref[...], preferred_element_type=jnp.float32)   # (TS, 3E)
    ts = x.shape[0]
    q = qkv[:, :E].astype(jnp.bfloat16)
    k = qkv[:, E:2 * E].astype(jnp.bfloat16)
    v = qkv[:, 2 * E:].astype(jnp.bfloat16)
    # head-major relayout once per tile, in VMEM (no XLA transpose round trip through HBM)
    q_ref[0] = q.reshape(ts, G, hd).transpose(1, 0, 2)   # (G, TS, hd)
    k_ref[0] = k.reshape(ts, G, hd).transpose(1, 0, 2)   # (G, TS, hd)
    v_ref[0] = v.reshape(ts, H, dh).transpose(1, 0, 2)   # (H, TS, 2hd)


# ---------------------------------------------------------------------------
# Kernel 2: flash-style differential attention + out-proj + residual + FFN
#           grid = (B, num_q_tiles, num_kv_tiles) -- kv axis is the reduction
# ---------------------------------------------------------------------------
def diff_attn_ffn_kernel(lam_ref, x_ref, q_ref, k_ref, v_ref, wo_ref, rmsw_ref,
                         ln2w_ref, ln2b_ref, w1_ref, b1_ref, w2_ref, b2_ref,
                         o_ref, m_sc, l_sc, acc_sc,
                         *, num_heads, head_dim, lambda_init, tq, tk, exp_dtype):
    i = pl.program_id(1)            # query-tile index
    j = pl.program_id(2)            # kv-tile index (last grid axis, "arbitrary")
    nk = pl.num_programs(2)
    H, hd = num_heads, head_dim
    dh, G = 2 * hd, 2 * num_heads   # G = heads x differential components (interleaved: g = 2h+c)

    @pl.when(j == 0)
    def _init():
        m_sc[...] = jnp.full((G, tq, 1), -jnp.inf, jnp.float32)
        l_sc[...] = jnp.zeros((G, tq, 1), jnp.float32)
        acc_sc[...] = jnp.zeros((G, tq, dh), jnp.float32)

    first_row = i * tq
    last_row = first_row + (tq - 1)
    first_col = j * tk
    last_col = first_col + (tk - 1)
    valid = first_col <= last_row            # tile intersects the causal region
    unmasked = last_col <= first_row         # tile entirely at/below the diagonal -> no mask needed

    def _scores():
        # batched scores over all 2H differential components at once: (G, TQ, TK) f32
        return jax.lax.dot_general(q_ref[0], k_ref[0], (((2,), (2,)), ((0,), (0,))),
                                   preferred_element_type=jnp.float32)

    def _online_update(s):
        m_prev = m_sc[...]
        m_new = jnp.maximum(m_prev, jnp.max(s, axis=-1, keepdims=True))
        alpha = jnp.exp(m_prev - m_new)
        # bf16 exp on v6e/v7x (EUP-bound kv loop); f32 on v5e. Row-sum accumulates in f32.
        p = jnp.exp((s - m_new).astype(exp_dtype))
        l_sc[...] = alpha * l_sc[...] + jnp.sum(p.astype(jnp.float32), axis=-1, keepdims=True)
        vh = v_ref[0]                                     # (H, TK, 2hd) bf16
        # P @ V: (G,TQ,TK) -> (H, 2*TQ, TK) so each head's V tile is reused by both of its
        # differential components (pure leading-dim reshape, no duplication).
        p_b = p.astype(vh.dtype).reshape(H, 2 * tq, tk)
        pv = jax.lax.dot_general(p_b, vh, (((2,), (1,)), ((0,), (0,))),
                                 preferred_element_type=jnp.float32)       # (H, 2*TQ, 2hd)
        acc_sc[...] = alpha * acc_sc[...] + pv.reshape(G, tq, dh)
        m_sc[...] = m_new

    # interior tiles: unmasked fast path (no iotas / select)
    @pl.when(jnp.logical_and(valid, unmasked))
    def _interior():
        _online_update(_scores())

    # diagonal-boundary tiles: apply the causal mask
    @pl.when(jnp.logical_and(valid, jnp.logical_not(unmasked)))
    def _boundary():
        s = _scores()
        row = first_row + jax.lax.broadcasted_iota(jnp.int32, (tq, tk), 0)
        col = first_col + jax.lax.broadcasted_iota(jnp.int32, (tq, tk), 1)
        s = jnp.where((col <= row)[None, :, :], s, -jnp.inf)
        _online_update(s)

    @pl.when(j == nk - 1)
    def _finalize():
        lam = lam_ref[0, 0]
        inv_l = pl.reciprocal(l_sc[...], approx=True)     # EUP reciprocal (free slot)
        acc = acc_sc[...] * inv_l                         # (G, TQ, dh)
        acc = acc.reshape(H, 2, tq, dh)                   # de-interleave components (free reshape)
        oh = acc[:, 0] - lam * acc[:, 1]                  # differential attention, (H, TQ, dh)
        oh = _rmsnorm(oh, rmsw_ref[0]) * (1.0 - lambda_init)
        # one lane-dense relayout, then a single full-depth (TQ,E)x(E,E) output projection
        oh_flat = oh.transpose(1, 0, 2).reshape(tq, H * dh)              # (TQ, E)
        attn = jnp.dot(oh_flat.astype(jnp.bfloat16), wo_ref[...],
                       preferred_element_type=jnp.float32)
        x1 = x_ref[0] + attn

        # feed-forward branch: x1 + FF(LN(x1))
        xn2 = _layernorm(x1, ln2w_ref[0], ln2b_ref[0])
        h1 = jnp.dot(xn2.astype(jnp.bfloat16), w1_ref[...],
                     preferred_element_type=jnp.float32) + b1_ref[0]
        h1 = jax.nn.gelu(h1, approximate=False)           # nn.GELU() default = exact erf
        ff = jnp.dot(h1.astype(jnp.bfloat16), w2_ref[...],
                     preferred_element_type=jnp.float32) + b2_ref[0]
        o_ref[0] = (x1 + ff).astype(o_ref.dtype)


# ---------------------------------------------------------------------------
# wrapper
# ---------------------------------------------------------------------------
def _diffattn_layer_impl(x, params, *, num_heads, lambda_init, tile=None,
                         single_buffer_weights=True):
    B, T, E = x.shape
    H = num_heads
    hd = E // H // 2
    dh = 2 * hd
    G = 2 * H
    F = params["w1"].shape[1]
    scaling = hd ** -0.5

    gen = _tpu_generation()
    if tile is None:
        tile = 256 if gen >= 6 else 128          # v5e MXU is 128-wide; v6e/v7x are 256-wide/deep
    TQ = _divisible_tile(T, tile)
    TK = TQ
    TS = _divisible_tile(T, max(512, TQ))        # kernel-1 (LN+QKV) is memory-bound: big tiles
    # bf16 exp only where the EUP has a bf16 path (v6e/v7x); v5e keeps f32 softmax math
    exp_dtype = jnp.bfloat16 if gen >= 6 else jnp.float32

    bf16 = jnp.bfloat16
    # fused QKV weight (E, 3E); fold hd**-0.5 query scaling into the Wq columns at prep time
    wqkv = jnp.concatenate([params["wq"] * scaling, params["wk"], params["wv"]],
                           axis=1).astype(bf16)
    wo = params["wo"].astype(bf16)
    w1 = params["w1"].astype(bf16)
    w2 = params["w2"].astype(bf16)

    # lambda_full = exp(lq1.lk1) - exp(lq2.lk2) + lambda_init   (scalar -> SMEM)
    lam_full = (jnp.exp(jnp.sum(params["lq1"] * params["lk1"]))
                - jnp.exp(jnp.sum(params["lq2"] * params["lk2"]))
                + lambda_init).reshape(1, 1).astype(jnp.float32)

    def const_spec(shape):
        # static weights: block index never changes across the grid -> single-buffer them
        idx = lambda *_: (0,) * len(shape)
        if single_buffer_weights:
            return pl.BlockSpec(shape, idx, pipeline_mode=pl.Buffered(1))
        return pl.BlockSpec(shape, idx)

    cparams = partial(pltpu.CompilerParams, vmem_limit_bytes=_vmem_limit_bytes())

    # ---------------- kernel 1: LN + fused QKV projection (head-major outputs) ----------------
    ce_qkv = pl.CostEstimate(
        flops=int(2 * B * T * E * 3 * E),
        transcendentals=int(B * T),
        bytes_accessed=int(4 * B * T * E + 3 * 2 * B * T * E + 2 * E * 3 * E))
    q, k, v = pl.pallas_call(
        partial(ln_qkv_kernel, emb=E, num_heads=H, head_dim=hd),
        grid=(B, T // TS),
        in_specs=[
            pl.BlockSpec((1, TS, E), lambda b, s: (b, s, 0)),              # x tile
            const_spec((1, E)), const_spec((1, E)),                        # LN_attn w / b
            const_spec((E, 3 * E)),                                        # fused Wqkv (bf16)
        ],
        out_specs=[
            pl.BlockSpec((1, G, TS, hd), lambda b, s: (b, 0, s, 0)),       # Q head-major
            pl.BlockSpec((1, G, TS, hd), lambda b, s: (b, 0, s, 0)),       # K head-major
            pl.BlockSpec((1, H, TS, dh), lambda b, s: (b, 0, s, 0)),       # V head-major
        ],
        out_shape=[
            jax.ShapeDtypeStruct((B, G, T, hd), bf16),
            jax.ShapeDtypeStruct((B, G, T, hd), bf16),
            jax.ShapeDtypeStruct((B, H, T, dh), bf16),
        ],
        compiler_params=cparams(dimension_semantics=("parallel", "parallel")),
        cost_estimate=ce_qkv,
    )(x, params["ln1w"], params["ln1b"], wqkv)

    # ---------------- kernel 2: flash diff-attention + out-proj + FFN ----------------
    nq = T // TQ
    nkv = T // TK
    # Clamp K/V block index to the last causally-valid kv block: masked grid steps re-use the
    # already-resident block -> no re-DMA (compute is skipped by pl.when inside the kernel).
    kv_idx = lambda b, i, j: (b, 0, jnp.minimum(j, (i * TQ + TQ - 1) // TK), 0)

    ce_attn = pl.CostEstimate(
        flops=int(B * (2 * G * T * T * hd + 2 * G * T * T * dh
                       + 2 * T * E * E + 4 * T * E * F)),
        transcendentals=int(B * (G * T * T + T * F)),
        bytes_accessed=int(4 * B * T * E                       # x residual
                           + 2 * B * T * E                     # q (bf16)
                           + 2 * 2 * B * T * E * (nq + 1) // 2  # k+v re-streamed per q tile (causal)
                           + 4 * B * T * E                     # output
                           + 2 * (E * E + 2 * E * F + E + dh)))
    # TODO(synk): for production-size E/F on v7x (64 MiB VMEM), tile W1/W2 over the F axis
    # (inner fori_loop / emit_pipeline) instead of keeping the full FFN weights resident.
    out = pl.pallas_call(
        partial(diff_attn_ffn_kernel, num_heads=H, head_dim=hd,
                lambda_init=lambda_init, tq=TQ, tk=TK, exp_dtype=exp_dtype),
        grid=(B, nq, nkv),
        in_specs=[
            pl.BlockSpec(memory_space=pltpu.MemorySpace.SMEM),             # lambda_full
            pl.BlockSpec((1, TQ, E), lambda b, i, j: (b, i, 0)),           # x (residual)
            pl.BlockSpec((1, G, TQ, hd), lambda b, i, j: (b, 0, i, 0)),    # q (repeats over j)
            pl.BlockSpec((1, G, TK, hd), kv_idx),                          # k (causally clamped)
            pl.BlockSpec((1, H, TK, dh), kv_idx),                          # v (causally clamped)
            const_spec((E, E)),                                            # Wo
            const_spec((1, dh)),                                           # RMSNorm weight
            const_spec((1, E)), const_spec((1, E)),                        # LN_ff w / b
            const_spec((E, F)), const_spec((1, F)),                        # FF linear 1
            const_spec((F, E)), const_spec((1, E)),                        # FF linear 2
        ],
        out_specs=pl.BlockSpec((1, TQ, E), lambda b, i, j: (b, i, 0)),
        out_shape=jax.ShapeDtypeStruct((B, T, E), x.dtype),
        scratch_shapes=[pltpu.VMEM((G, TQ, 1), jnp.float32),    # running max
                        pltpu.VMEM((G, TQ, 1), jnp.float32),    # running denom
                        pltpu.VMEM((G, TQ, dh), jnp.float32)],  # running PV accumulator
        compiler_params=cparams(
            dimension_semantics=("parallel", "parallel", "arbitrary")),
        cost_estimate=ce_attn,
    )(lam_full, x, q, k, v, wo, params["rmsw"],
      params["ln2w"], params["ln2b"], w1, params["b1"], w2, params["b2"])
    return out


def diffattn_layer(x, params, *, num_heads, lambda_init, tile=None):
    # NOTE(v7x): with 2 TensorCores per chip, keep B * (T // TQ) >= 2 so the "parallel"
    # grid axes still shard across both cores after enlarging TQ.
    return _diffattn_layer_impl(
        x, params, num_heads=num_heads, lambda_init=lambda_init, tile=tile,
        single_buffer_weights=_buffered_weights_supported())


# ---------------------------------------------------------------------------
# plain-JAX f32 reference (module semantics) for correctness cross-check
# ---------------------------------------------------------------------------
def diffattn_layer_ref(x, params, *, num_heads, lambda_init):
    B, T, E = x.shape
    H = num_heads
    hd = E // H // 2
    dh = 2 * hd
    scaling = hd ** -0.5
    lam = (jnp.exp(jnp.sum(params["lq1"] * params["lk1"]))
           - jnp.exp(jnp.sum(params["lq2"] * params["lk2"])) + lambda_init)

    xn = _layernorm(x, params["ln1w"][0], params["ln1b"][0])
    q = jnp.einsum("bte,ef->btf", xn, params["wq"]) * scaling
    k = jnp.einsum("bte,ef->btf", xn, params["wk"])
    v = jnp.einsum("bte,ef->btf", xn, params["wv"])
    qg = q.reshape(B, T, 2 * H, hd)
    kg = k.reshape(B, T, 2 * H, hd)
    vh = v.reshape(B, T, H, dh)
    s = jnp.einsum("bqgd,bkgd->bgqk", qg, kg)
    row = jnp.arange(T)[:, None]
    col = jnp.arange(T)[None, :]
    s = jnp.where(col <= row, s, -jnp.inf)
    a = jax.nn.softmax(s, axis=-1).reshape(B, H, 2, T, T)
    w_diff = a[:, :, 0] - lam * a[:, :, 1]
    oh = jnp.einsum("bhqk,bkhd->bhqd", w_diff, vh)
    oh = _rmsnorm(oh, params["rmsw"][0]) * (1.0 - lambda_init)
    attn = jnp.einsum("bhqd,hde->bqe", oh, params["wo"].reshape(H, dh, E))
    x1 = x + attn
    xn2 = _layernorm(x1, params["ln2w"][0], params["ln2b"][0])
    h1 = jax.nn.gelu(jnp.einsum("bte,ef->btf", xn2, params["w1"]) + params["b1"][0],
                     approximate=False)
    ff = jnp.einsum("btf,fe->bte", h1, params["w2"]) + params["b2"][0]
    return x1 + ff


# ---------------------------------------------------------------------------
if __name__ == "__main__":
    # lane-aligned small shapes: batch=2, seq=128, emb=128, heads=2 (head_dim=32), ff_hidden=256
    B, T, E = 2, 128, 128
    NUM_HEADS = 2
    FF = 256
    DEPTH = 1
    HEAD_DIM = E // NUM_HEADS // 2
    LAMBDA_INIT = 0.8 - 0.6 * math.exp(-0.3 * DEPTH)

    key = jax.random.PRNGKey(0)
    ks = jax.random.split(key, 12)

    def nrm(k, shape, scale=0.02):
        return (scale * jax.random.normal(k, shape)).astype(jnp.float32)

    params = {
        "wq": nrm(ks[0], (E, E)), "wk": nrm(ks[1], (E, E)),
        "wv": nrm(ks[2], (E, E)), "wo": nrm(ks[3], (E, E)),
        "ln1w": jnp.ones((1, E), jnp.float32), "ln1b": jnp.zeros((1, E), jnp.float32),
        "ln2w": jnp.ones((1, E), jnp.float32), "ln2b": jnp.zeros((1, E), jnp.float32),
        "rmsw": jnp.ones((1, 2 * HEAD_DIM), jnp.float32),
        "w1": nrm(ks[4], (E, FF)), "b1": jnp.zeros((1, FF), jnp.float32),
        "w2": nrm(ks[5], (FF, E)), "b2": jnp.zeros((1, E), jnp.float32),
        "lq1": (0.1 * jax.random.normal(ks[6], (HEAD_DIM,))).astype(jnp.float32),
        "lk1": (0.1 * jax.random.normal(ks[7], (HEAD_DIM,))).astype(jnp.float32),
        "lq2": (0.1 * jax.random.normal(ks[8], (HEAD_DIM,))).astype(jnp.float32),
        "lk2": (0.1 * jax.random.normal(ks[9], (HEAD_DIM,))).astype(jnp.float32),
    }

    x = jax.random.normal(ks[10], (B, T, E), dtype=jnp.float32)

    out = jax.block_until_ready(
        diffattn_layer(x, params, num_heads=NUM_HEADS, lambda_init=LAMBDA_INIT))
    ref = jax.block_until_ready(
        diffattn_layer_ref(x, params, num_heads=NUM_HEADS, lambda_init=LAMBDA_INIT))

    assert out.shape == (B, T, E) and out.dtype == jnp.float32
    max_err = float(jnp.max(jnp.abs(out - ref)))
    # bf16 MXU inputs, bf16 exp (v6e/v7x) + approx reciprocal vs f32 reference -> loosened tolerance
    assert jnp.allclose(out, ref, rtol=2e-2, atol=2e-2), f"mismatch vs ref, max_abs_err={max_err}"

    print("KERNEL_OK")
</pallas_src>

<mosaic_0001>
module attributes {stable_mosaic.version = 11 : i64} {
  func.func @_probe(%arg0: i32, %arg1: memref<8x128xf32, #tpu.memory_space<vmem>>, %arg2: memref<8x128xf32, #tpu.memory_space<vmem>>) attributes {dimension_semantics = [#tpu.dimension_semantics<arbitrary>], iteration_bounds = array<i64: 1>, scalar_prefetch = 0 : i64, scratch_operands = 0 : i64, tpu.core_type = #tpu.core_type<tc>, window_params = [{pipeline_mode = #tpu.pipeline_mode<synchronous>, transform_indices = @transform_0, window_bounds = array<i64: 8, 128>}, {pipeline_mode = #tpu.pipeline_mode<synchronous>, transform_indices = @transform_1, window_bounds = array<i64: 8, 128>}]} {
    %c0 = arith.constant 0 : index
    %c0_0 = arith.constant 0 : index
    %0 = vector.load %arg1[%c0, %c0_0] : memref<8x128xf32, #tpu.memory_space<vmem>>, vector<8x128xf32>
    %cst = arith.constant 1.000000e+00 : f32
    %1 = vector.broadcast %cst : f32 to vector<8x128xf32>
    %2 = arith.addf %0, %1 : vector<8x128xf32>
    %c0_1 = arith.constant 0 : index
    %c0_2 = arith.constant 0 : index
    %3 = vector.load %arg2[%c0_1, %c0_2] : memref<8x128xf32, #tpu.memory_space<vmem>>, vector<8x128xf32>
    tpu.vector_store %arg2[%c0_1, %c0_2], %2 {strides = array<i32>} : memref<8x128xf32, #tpu.memory_space<vmem>>, vector<8x128xf32>,
    return
  }
  func.func @transform_0(%arg0: i32) -> (i32, i32) {
    %c0_i32 = arith.constant 0 : i32
    %c0_i32_0 = arith.constant 0 : i32
    %c0_i32_1 = arith.constant 0 : i32
    return %c0_i32, %c0_i32_0 : i32, i32
  }
  func.func @transform_1(%arg0: i32) -> (i32, i32) {
    %c0_i32 = arith.constant 0 : i32
    %c0_i32_0 = arith.constant 0 : i32
    %c0_i32_1 = arith.constant 0 : i32
    return %c0_i32, %c0_i32_0 : i32, i32
  }
}

module attributes {stable_mosaic.version = 11 : i64} {
  func.func @ln_qkv_kernel(%arg0: i32, %arg1: i32, %arg2: memref<1x128x128xf32, #tpu.memory_space<vmem>>, %arg3: memref<1x128xf32, #tpu.memory_space<vmem>>, %arg4: memref<1x128xf32, #tpu.memory_space<vmem>>, %arg5: memref<128x384xbf16, #tpu.memory_space<vmem>>, %arg6: memref<1x4x128x32xbf16, #tpu.memory_space<vmem>>, %arg7: memref<1x4x128x32xbf16, #tpu.memory_space<vmem>>, %arg8: memref<1x2x128x64xbf16, #tpu.memory_space<vmem>>) attributes {dimension_semantics = [#tpu.dimension_semantics<parallel>, #tpu.dimension_semantics<parallel>], iteration_bounds = array<i64: 2, 1>, scalar_prefetch = 0 : i64, scratch_operands = 0 : i64, tpu.core_type = #tpu.core_type<tc>, window_params = [{transform_indices = @transform_0, window_bounds = array<i64: 1, 128, 128>}, {pipeline_mode = #tpu.pipeline_mode<synchronous>, transform_indices = @transform_1, window_bounds = array<i64: 1, 128>}, {pipeline_mode = #tpu.pipeline_mode<synchronous>, transform_indices = @transform_2, window_bounds = array<i64: 1, 128>}, {pipeline_mode = #tpu.pipeline_mode<synchronous>, transform_indices = @transform_3, window_bounds = array<i64: 128, 384>}, {transform_indices = @transform_4, window_bounds = array<i64: 1, 4, 128, 32>}, {transform_indices = @transform_5, window_bounds = array<i64: 1, 4, 128, 32>}, {transform_indices = @transform_6, window_bounds = array<i64: 1, 2, 128, 64>}]} {
    %c0 = arith.constant 0 : index
    %c0_0 = arith.constant 0 : index
    %c0_1 = arith.constant 0 : index
    %0 = vector.load %arg2[%c0, %c0_0, %c0_1] : memref<1x128x128xf32, #tpu.memory_space<vmem>>, vector<1x128x128xf32>
    %1 = vector.shape_cast %0 : vector<1x128x128xf32> to vector<128x128xf32>
    %c0_2 = arith.constant 0 : index
    %c0_3 = arith.constant 0 : index
    %2 = vector.load %arg3[%c0_2, %c0_3] : memref<1x128xf32, #tpu.memory_space<vmem>>, vector<1x128xf32>
    %3 = vector.shape_cast %2 : vector<1x128xf32> to vector<128xf32>
    %c0_4 = arith.constant 0 : index
    %c0_5 = arith.constant 0 : index
    %4 = vector.load %arg4[%c0_4, %c0_5] : memref<1x128xf32, #tpu.memory_space<vmem>>, vector<1x128xf32>
    %5 = vector.shape_cast %4 : vector<1x128xf32> to vector<128xf32>
    %cst = arith.constant dense<0.000000e+00> : vector<128xf32>
    %6 = vector.multi_reduction <add>, %1, %cst [1] : vector<128x128xf32> to vector<128xf32>
    %7 = vector.shape_cast %6 : vector<128xf32> to vector<128x1xf32>
    %cst_6 = arith.constant 1.280000e+02 : f32
    %8 = vector.broadcast %cst_6 : f32 to vector<128x1xf32>
    %9 = arith.divf %7, %8 : vector<128x1xf32>
    %10 = vector.broadcast %9 : vector<128x1xf32> to vector<128x128xf32>
    %11 = arith.subf %1, %10 : vector<128x128xf32>
    %12 = arith.mulf %11, %11 : vector<128x128xf32>
    %cst_7 = arith.constant dense<0.000000e+00> : vector<128xf32>
    %13 = vector.multi_reduction <add>, %12, %cst_7 [1] : vector<128x128xf32> to vector<128xf32>
    %14 = vector.shape_cast %13 : vector<128xf32> to vector<128x1xf32>
    %cst_8 = arith.constant 1.280000e+02 : f32
    %15 = vector.broadcast %cst_8 : f32 to vector<128x1xf32>
    %16 = arith.divf %14, %15 : vector<128x1xf32>
    %17 = vector.broadcast %9 : vector<128x1xf32> to vector<128x128xf32>
    %18 = arith.subf %1, %17 : vector<128x128xf32>
    %cst_9 = arith.constant 9.99999974E-6 : f32
    %19 = vector.broadcast %cst_9 : f32 to vector<128x1xf32>
    %20 = arith.addf %16, %19 : vector<128x1xf32>
    %21 = math.rsqrt %20 : vector<128x1xf32>
    %22 = vector.broadcast %21 : vector<128x1xf32> to vector<128x128xf32>
    %23 = arith.mulf %18, %22 : vector<128x128xf32>
    %24 = vector.shape_cast %3 : vector<128xf32> to vector<1x128xf32>
    %25 = vector.broadcast %24 : vector<1x128xf32> to vector<128x128xf32>
    %26 = arith.mulf %23, %25 : vector<128x128xf32>
    %27 = vector.shape_cast %5 : vector<128xf32> to vector<1x128xf32>
    %28 = vector.broadcast %27 : vector<1x128xf32> to vector<128x128xf32>
    %29 = arith.addf %26, %28 : vector<128x128xf32>
    %30 = arith.truncf %29 : vector<128x128xf32> to vector<128x128xbf16>
    %c0_10 = arith.constant 0 : index
    %c0_11 = arith.constant 0 : index
    %31 = vector.load %arg5[%c0_10, %c0_11] : memref<128x384xbf16, #tpu.memory_space<vmem>>, vector<128x384xbf16>
    %cst_12 = arith.constant dense<0.000000e+00> : vector<128x384xf32>
    %32 = tpu.matmul %30, %31, %cst_12 {dimension_numbers = #tpu.dot_dimension_numbers<[1], [0], [0], [1], [0, 0, 1, 1], [], []>} : vector<128x128xbf16>, vector<128x384xbf16>, vector<128x384xf32> -> vector<128x384xf32>
    %33 = vector.extract_strided_slice %32 {offsets = [0, 0], sizes = [128, 128], strides = [1, 1]} : vector<128x384xf32> to vector<128x128xf32>
    %34 = arith.truncf %33 : vector<128x128xf32> to vector<128x128xbf16>
    %35 = vector.extract_strided_slice %32 {offsets = [0, 128], sizes = [128, 128], strides = [1, 1]} : vector<128x384xf32> to vector<128x128xf32>
    %36 = arith.truncf %35 : vector<128x128xf32> to vector<128x128xbf16>
    %37 = vector.extract_strided_slice %32 {offsets = [0, 256], sizes = [128, 128], strides = [1, 1]} : vector<128x384xf32> to vector<128x128xf32>
    %38 = arith.truncf %37 : vector<128x128xf32> to vector<128x128xbf16>
    %39 = vector.shape_cast %34 : vector<128x128xbf16> to vector<128x4x32xbf16>
    %40 = tpu.transpose %39, [1, 0, 2] : vector<128x4x32xbf16> -> vector<4x128x32xbf16>
    %c0_13 = arith.constant 0 : index
    %c0_14 = arith.constant 0 : index
    %c0_15 = arith.constant 0 : index
    %c0_16 = arith.constant 0 : index
    %41 = vector.load %arg6[%c0_13, %c0_14, %c0_15, %c0_16] : memref<1x4x128x32xbf16, #tpu.memory_space<vmem>>, vector<1x4x128x32xbf16>
    %42 = vector.shape_cast %41 : vector<1x4x128x32xbf16> to vector<4x128x32xbf16>
    %43 = vector.shape_cast %40 : vector<4x128x32xbf16> to vector<1x4x128x32xbf16>
    tpu.vector_store %arg6[%c0_13, %c0_14, %c0_15, %c0_16], %43 {strides = array<i32>} : memref<1x4x128x32xbf16, #tpu.memory_space<vmem>>, vector<1x4x128x32xbf16>,
    %44 = vector.shape_cast %36 : vector<128x128xbf16> to vector<128x4x32xbf16>
    %45 = tpu.transpose %44, [1, 0, 2] : vector<128x4x32xbf16> -> vector<4x128x32xbf16>
    %c0_17 = arith.constant 0 : index
    %c0_18 = arith.constant 0 : index
    %c0_19 = arith.constant 0 : index
    %c0_20 = arith.constant 0 : index
    %46 = vector.load %arg7[%c0_17, %c0_18, %c0_19, %c0_20] : memref<1x4x128x32xbf16, #tpu.memory_space<vmem>>, vector<1x4x128x32xbf16>
    %47 = vector.shape_cast %46 : vector<1x4x128x32xbf16> to vector<4x128x32xbf16>
    %48 = vector.shape_cast %45 : vector<4x128x32xbf16> to vector<1x4x128x32xbf16>
    tpu.vector_store %arg7[%c0_17, %c0_18, %c0_19, %c0_20], %48 {strides = array<i32>} : memref<1x4x128x32xbf16, #tpu.memory_space<vmem>>, vector<1x4x128x32xbf16>,
    %49 = vector.shape_cast %38 : vector<128x128xbf16> to vector<128x2x64xbf16>
    %50 = tpu.transpose %49, [1, 0, 2] : vector<128x2x64xbf16> -> vector<2x128x64xbf16>
    %c0_21 = arith.constant 0 : index
    %c0_22 = arith.constant 0 : index
    %c0_23 = arith.constant 0 : index
    %c0_24 = arith.constant 0 : index
    %51 = vector.load %arg8[%c0_21, %c0_22, %c0_23, %c0_24] : memref<1x2x128x64xbf16, #tpu.memory_space<vmem>>, vector<1x2x128x64xbf16>
    %52 = vector.shape_cast %51 : vector<1x2x128x64xbf16> to vector<2x128x64xbf16>
    %53 = vector.shape_cast %50 : vector<2x128x64xbf16> to vector<1x2x128x64xbf16>
    tpu.vector_store %arg8[%c0_21, %c0_22, %c0_23, %c0_24], %53 {strides = array<i32>} : memref<1x2x128x64xbf16, #tpu.memory_space<vmem>>, vector<1x2x128x64xbf16>,
    return
  }
  func.func @transform_0(%arg0: i32, %arg1: i32) -> (i32, i32, i32) {
    %c0_i32 = arith.constant 0 : i32
    %c0_i32_0 = arith.constant 0 : i32
    return %arg0, %arg1, %c0_i32 : i32, i32, i32
  }
  func.func @transform_1(%arg0: i32, %arg1: i32) -> (i32, i32) {
    %c0_i32 = arith.constant 0 : i32
    %c0_i32_0 = arith.constant 0 : i32
    %c0_i32_1 = arith.constant 0 : i32
    return %c0_i32, %c0_i32_0 : i32, i32
  }
  func.func @transform_2(%arg0: i32, %arg1: i32) -> (i32, i32) {
    %c0_i32 = arith.constant 0 : i32
    %c0_i32_0 = arith.constant 0 : i32
    %c0_i32_1 = arith.constant 0 : i32
    return %c0_i32, %c0_i32_0 : i32, i32
  }
  func.func @transform_3(%arg0: i32, %arg1: i32) -> (i32, i32) {
    %c0_i32 = arith.constant 0 : i32
    %c0_i32_0 = arith.constant 0 : i32
    %c0_i32_1 = arith.constant 0 : i32
    return %c0_i32, %c0_i32_0 : i32, i32
  }
  func.func @transform_4(%arg0: i32, %arg1: i32) -> (i32, i32, i32, i32) {
    %c0_i32 = arith.constant 0 : i32
    %c0_i32_0 = arith.constant 0 : i32
    %c0_i32_1 = arith.constant 0 : i32
    return %arg0, %c0_i32, %arg1, %c0_i32_0 : i32, i32, i32, i32
  }
  func.func @transform_5(%arg0: i32, %arg1: i32) -> (i32, i32, i32, i32) {
    %c0_i32 = arith.constant 0 : i32
    %c0_i32_0 = arith.constant 0 : i32
    %c0_i32_1 = arith.constant 0 : i32
    return %arg0, %c0_i32, %arg1, %c0_i32_0 : i32, i32, i32, i32
  }
  func.func @transform_6(%arg0: i32, %arg1: i32) -> (i32, i32, i32, i32) {
    %c0_i32 = arith.constant 0 : i32
    %c0_i32_0 = arith.constant 0 : i32
    %c0_i32_1 = arith.constant 0 : i32
    return %arg0, %c0_i32, %arg1, %c0_i32_0 : i32, i32, i32, i32
  }
}

</mosaic_0001>

<bundles_post_ra>
// kernel: tpu_custom_call.1
= control target key start
LH: loop header
LB: loop body
LE: loop exit
PB: predicated region body
PF: predicated region fallthrough
CT: control target
= control target key end

     0   :  { %6 = vsyncpa [#allocation3], 0  ;;  %s125_s0 = inlined_call_operand.hbm [shape: f32[8,128], index: 0, kind: input, shape index: {}]   ;;  %s126_s1 = inlined_call_operand.hbm [shape: f32[8,128], index: 1, kind: output, shape index: {}]  }
   0x1   :  { %7 = vsyncpa [#allocation4], 0  ;;  %s89_s6 = smov [#allocation2]   ;;  %s41_s10 = scalar_lea.hbm %s125_s0, 128 }
   0x2   :  { %s14_s7 = sshll.u32 %s89_s6, 4  ;;  %p42_p0 = scmp.ne.s32.totalorder %s125_s0, %s41_s10  ;;  %s15_s7 = int_to_ptr.vmem [resolvable:$true] %s14_s7 }
   0x3   :  { %p45_p1 = scmp.lt.u32.totalorder %s41_s10, %s125_s0 }
   0x5   :  { %p47_p2 = pnand %p45_p1, %p42_p0 }
   0x7   :  { %50 = shalt.err (!%p47_p2)
}
   0x8   :  { %s51_s15 = scalar_lea.vmem %s15_s7, 128  ;;  %p56_p4 = scmp.lt.s32.totalorder %s15_s7, %s15_s7 }
   0x9   :  { %p52_p3 = scmp.ne.s32.totalorder %s15_s7, %s51_s15  ;;  %p57_p5 = scmp.lt.s32.totalorder %s51_s15, %s51_s15 }
   0xb   :  { %p58_p6 = por %p57_p5, %p56_p4 }
   0xd   :  { %p59_p7 = pnand %p58_p6, %p52_p3 }
   0xf   :  { %62 = shalt.err (!%p59_p7)
}
  0x10   :  { %17 = dma.hbm_to_vmem [thread:$0]  %s125_s0, 128, %s15_s7, [#allocation3]  }
  0x11   :  { %85 = dma.done.wait [#allocation3], 128  }
  0x12   :  { %86 = vsyncadd [#allocation3], 4294967168  ;;  %s90_s18 = smov [#allocation5]   ;;  %v21_v0 = vld [vmem:[#allocation2] sm:$0xff] }
  0x13   :  { %s30_s19 = sshll.u32 %s90_s18, 4  ;;  %v22_v1 = vadd.f32 1.0, %v21_v0  ;;  %s31_s19 = int_to_ptr.vmem [resolvable:$true] %s30_s19 }
  0x14   :  { %s63_s20 = scalar_lea.vmem %s31_s19, 128  ;;  %p68_p9 = scmp.lt.s32.totalorder %s31_s19, %s31_s19 }
  0x15   :  { %23 = vst [vmem:[#allocation5] sm:$0xff] %v22_v1  ;;  %p64_p8 = scmp.ne.s32.totalorder %s31_s19, %s63_s20  ;;  %p69_p10 = scmp.lt.s32.totalorder %s63_s20, %s63_s20 }
  0x17   :  { %p70_p11 = por %p69_p10, %p68_p9 }
  0x19   :  { %p71_p12 = pnand %p70_p11, %p64_p8 }
  0x1b   :  { %74 = shalt.err (!%p71_p12)
}
  0x1c   :  { %s75_s23 = scalar_lea.hbm %s126_s1, 128 }
  0x1d   :  { %p76_p13 = scmp.ne.s32.totalorder %s126_s1, %s75_s23  ;;  %p79_p0 = scmp.lt.u32.totalorder %s75_s23, %s126_s1 }
  0x1f   :  { %p81_p1 = pnand %p79_p0, %p76_p13 }
  0x21   :  { %84 = shalt.err (!%p81_p1)
}
  0x22   :  { %33 = dma.vmem_to_hbm [thread:$0]  %s31_s19, 128, %s126_s1, [#allocation4]  }
  0x23   :  { %87 = dma.done.wait [#allocation4], 128  }
  0x24   :  { %88 = vsyncadd [#allocation4], 4294967168 }
  0x25   :  { %37 = vsyncpa [#allocation3], 1 }
  0x26   :  { %38 = vsyncpa [#allocation4], 1 }

// kernel: tpu_custom_call.1
= control target key start
LH: loop header
LB: loop body
LE: loop exit
PB: predicated region body
PF: predicated region fallthrough
CT: control target
= control target key end

     0   :  { %12 = vsyncpa [#allocation3], 0  ;;  %s10480_s0 = inlined_call_operand.hbm [shape: f32[2,128,128], index: 0, kind: input, shape index: {}]   ;;  %s10481_s1 = inlined_call_operand.vmem [shape: f32[1,128], index: 1, kind: input, shape index: {}]   ;;  %s10482_s2 = inlined_call_operand.vmem [shape: f32[1,128], index: 2, kind: input, shape index: {}]   ;;  %s10483_s3 = inlined_call_operand.hbm [shape: bf16[128,384], index: 3, kind: input, shape index: {}]   ;;  %s10484_s4 = inlined_call_operand.vmem [shape: bf16[2,4,128,32], index: 4, kind: output, shape index: {0}]   ;;  %s10485_s5 = inlined_call_operand.vmem [shape: bf16[2,4,128,32], index: 5, kind: output, shape index: {1}]   ;;  %s10486_s6 = inlined_call_operand.vmem [shape: bf16[2,2,128,64], index: 6, kind: output, shape index: {2}]  }
   0x1   :  { %14 = vsyncpa [#allocation3 + $0x1], 0 }
   0x2   :  { %15 = vsyncpa [#allocation5], 0  ;;  %s8487_s21 = smov 0   ;;  %s8489_s22 = smov 0  }
   0x3   :  { %s8491_s23 = smov 0   ;;  %s8493_s24 = smov 0  }
   0x4   :  { %s8495_s25 = smov 0   ;;  %s8497_s26 = smov 0  }
   0x5 LB: > { %s7833_s27 = sadd.s32 4294967295, %s8438_s26   ;;  %p55_p0 = scmp.ne.s32.totalorder %s8422_s22, %s8418_s21  ;;  %s8438_s26 = sphi %s8497_s26, %s21_s26   ;;  %s8434_s25 = sphi %s8495_s25, %s10511_s25   ;;  %s8430_s24 = sphi %s8493_s24, %s10510_s24   ;;  %s8426_s23 = sphi %s8491_s23, %s10509_s23   ;;  %s8422_s22 = sphi %s8489_s22, %s10508_s22   ;;  %s8418_s21 = sphi %s8487_s21, %s10507_s21  }
   0x6   : > { %p8517_p1 = scmp.eq.s32.totalorder %s7833_s27, 0  ;;  %p7835_p2 = scmp.ge.s32.totalorder %s8438_s26, 1 }
   0x7   : > { %p213_p3 = scmp.lt.s32.totalorder %s8438_s26, 3  ;;  %s8440_s7 = smov [#allocation4]  }
   0x8   : > { %s10491_s28 = scalar_select %p8517_p1, 1, 0 }
   0x9   : > { %p8525_p4 = por %p8517_p1, %p55_p0  ;;  %p8529_p5 = pnand %p7835_p2, %p213_p3 }
   0xa   : > { %s231_s8 = sshll.u32 %s8440_s7, 4  ;;  %s33_s10 = sadd.s32 1, %s8434_s25  ;;  %s232_s8 = int_to_ptr.vmem [resolvable:$true] %s231_s8 }
   0xb   : > { %s10492_s29 = scalar_select %p8525_p4, 1, 0 }
   0xc   : > { %s10493_s30 = scalar_select %p8529_p5, 1, 0 }
   0xd   : > { %p8192_p6 = pneg %p8529_p5  ;;  %s8326_s13 = scalar_lea.hbm %s10483_s3, 3072 }
   0xe   : > { %p8327_p8 = scmp.ne.s32.totalorder %s10483_s3, %s8326_s13  ;;  %p8333_p12 = scmp.lt.u32.totalorder %s8326_s13, %s10483_s3 }
   0xf   : > { %p8537_p7 = pnand %p8192_p6, %p8517_p1 }
  0x11   : > { %p8328_p9 = pneg %p8537_p7 }
  0x13   : > { %p8329_p10 = pnand %p8328_p9, %p8327_p8 }
  0x15   : > { %p8330_p11 = pneg %p8329_p10 }
  0x17   : > { %p8335_p13 = pnand %p8333_p12, %p8330_p11 }
  0x19   : > { %8338 = shalt.err (!%p8335_p13)
}
  0x1a   : > { %s8339_s18 = scalar_lea.vmem %s232_s8, 3072  ;;  %p8347_p6 = scmp.lt.s32.totalorder %s232_s8, %s232_s8 }
  0x1b   : > { %p8340_p0 = scmp.ne.s32.totalorder %s232_s8, %s8339_s18  ;;  %p8348_p1 = scmp.lt.s32.totalorder %s8339_s18, %s8339_s18 }
  0x1d   : > { %p8342_p2 = pnand %p8340_p0, %p8328_p9  ;;  %p8349_p4 = por %p8348_p1, %p8347_p6 }
  0x1f   : > { %p8343_p3 = pneg %p8342_p2 }
  0x21   : > { %p8350_p5 = pnand %p8349_p4, %p8343_p3 }
  0x23   : > { %8353 = shalt.err (!%p8350_p5)
}
  0x24   : > { %s8441_s19 = smov 192   ;;  %s8442_s20 = smov 12  }
  0x25   : > { %8195 = dma.hbm_to_vmem [thread:$0]  (!%p8537_p7), %s10483_s3, 3072, %s232_s8, [#allocation5], %s8441_s19, %s8441_s19, %s8442_s20  }
  0x26   : > { %p35_p1 = scmp.ge.s32.totalorder %s33_s10, 2  ;;  %s42_s7 = sadd.s32 1, %s8426_s23 }
  0x27   : > { %p49_p4 = scmp.ne.s32.totalorder %s8426_s23, %s8422_s22  ;;  %p50_p5 = scmp.eq.s32.totalorder %s8438_s26, 0 }
  0x28   : > { %s10513_s10 = smov (%p35_p1, %s33_s10), 0  ;;  %p8201_p9 = scmp.lt.s32.totalorder %s8438_s26, 2 }
  0x29   : > { %p51_p8 = por %p50_p5, %p49_p4  ;;  %s37_s11 = ssub.s32 %s8434_s25, %s10513_s10 }
  0x2a   : > { %s245_s12 = sand.u32 1, %s8426_s23   ;;  %p40_p10 = scmp.eq.s32.totalorder %s37_s11, 0 }
  0x2b   : > { %s7838_s13 = sshll.u32 %s245_s12, 7  ;;  %s8134_s14 = sshll.u32 %s8434_s25, 11 }
  0x2c   : > { %s8570_s15 = scalar_select %p40_p10, %s8426_s23, %s42_s7  }
  0x2d   : > { %s8575_s8 = scalar_lea.hbm %s10480_s0, %s8134_s14  ;;  %s249_s17 = scalar_lea.vmem [#allocation2], %s7838_s13 }
  0x2e   : > { %s258_s18 = sshll.u32 %s249_s17, 4  ;;  %p8577_p7 = pnand %p8201_p9, %p51_p8  ;;  %s8581_s18 = int_to_ptr.vmem [resolvable:$true] %s258_s18 }
  0x2f   : > { %s8583_s20 = scalar_lea.sflag [#allocation3], %s245_s12  ;;  %s8354_s21 = scalar_lea.hbm %s8575_s8, 2048 }
  0x30   : > { %p8355_p11 = scmp.ne.s32.totalorder %s8575_s8, %s8354_s21  ;;  %p8356_p12 = pneg %p8577_p7 }
  0x31   : > { %s8359_s11 = scalar_lea.hbm %s10480_s0, 4096  ;;  %p8360_p2 = scmp.lt.u32.totalorder %s8575_s8, %s10480_s0 }
  0x32   : > { %p8357_p13 = pnand %p8356_p12, %p8355_p11  ;;  %p8361_p3 = scmp.lt.u32.totalorder %s8359_s11, %s8354_s21 }
  0x33   : > { %p8363_p1 = scmp.lt.u32.totalorder %s8354_s21, %s8575_s8 }
  0x34   : > { %p8358_p0 = pneg %p8357_p13  ;;  %p8362_p6 = por %p8361_p3, %p8360_p2 }
  0x36   : > { %p8364_p4 = por %p8363_p1, %p8362_p6 }
  0x38   : > { %p8365_p5 = pnand %p8364_p4, %p8358_p0 }
  0x3a   : > { %8368 = shalt.err (!%p8365_p5)
}
  0x3b   : > { %s8369_s12 = scalar_lea.vmem %s8581_s18, 2048  ;;  %s8443_s9 = smov [#allocation2]  }
  0x3c   : > { %p8370_p8 = scmp.ne.s32.totalorder %s8581_s18, %s8369_s12  ;;  %s8374_s16 = sshll.u32 %s8443_s9, 4  ;;  %s8375_s16 = int_to_ptr.vmem [resolvable:$false] %s8374_s16 }
  0x3d   : > { %s8376_s17 = scalar_lea.vmem %s8375_s16, 4096  ;;  %p8377_p11 = scmp.lt.s32.totalorder %s8581_s18, %s8375_s16 }
  0x3e   : > { %p8372_p9 = pnand %p8370_p8, %p8356_p12  ;;  %p8378_p13 = scmp.lt.s32.totalorder %s8376_s17, %s8369_s12 }
  0x40   : > { %p8373_p10 = pneg %p8372_p9  ;;  %p8379_p2 = por %p8378_p13, %p8377_p11 }
  0x42   : > { %p8380_p3 = pnand %p8379_p2, %p8373_p10 }
  0x44   : > { %8383 = shalt.err (!%p8380_p3)
}
  0x45   : > { %s8444_s21 = smov 128   ;;  %s8445_s27 = smov 8  }
  0x46   : > { %8199 = dma.hbm_to_vmem [thread:$0]  (!%p8577_p7), %s8575_s8, 2048, %s8581_s18, %s8583_s20, %s8444_s21, %s8444_s21, %s8445_s27  }
  0x47   : > { %p10496_p12 = scmp.ne.s32.totalorder %s10493_s30, 0 }
  0x48   : > { %s272_s7 = sand.u32 (!%p10496_p12), 1, %s8422_s22   ;;  %p10497_p0 = scmp.ne.s32.totalorder (!%p10496_p12), %s10492_s29, 0 }
  0x49   : > { %270 = sbr.rel (%p10496_p12) target bundleno = 1186 (0x4a2), region = 36  ;;  %s7842_s11 = sshll.u32 (!%p10496_p12), %s272_s7, 7 }
  0x4a   : > { %s273_s13 = scalar_lea.sflag (!%p10496_p12), [#allocation3], %s272_s7  ;;  %s8614_s14 = scalar_lea.vmem (!%p10496_p12), [#allocation2], %s7842_s11 }
  0x50   : > { %8409 = dma.done.wait (%p10497_p0), %s273_s13, 2048  }
  0x51   : > { %8411 = vsyncadd (%p10497_p0), %s273_s13, 4294965248  ;;  %p10498_p6 = scmp.ne.s32.totalorder %s10491_s28, 0 }
  0x53   : > { %8413 = dma.done.wait (%p10498_p6), [#allocation5], 3072  }
  0x54   : > { %8415 = vsyncadd (%p10498_p6), [#allocation5], 4294964224  ;;  %v363_v0 = vld [vmem:[%s8614_s14] sm:$0xff]  ;;  %v365_v1 = vld [vmem:[%s8614_s14 + $0x10] sm:$0xff]  ;;  %s8447_s18 = smov 96   ;;  %s8448_s19 = smov 64  }
  0x55   : > { %381 = vadd.xlane.f32.xlu0 %v363_v0  ;;  %385 = vadd.xlane.f32.xlu1 %v365_v1  ;;  %v364_v2 = vld [vmem:[%s8614_s14 + $0x8] sm:$0xff]  ;;  %v366_v3 = vld [vmem:[%s8614_s14 + $0x18] sm:$0xff]  ;;  %v367_v4 = vld [vmem:[%s8614_s14 + $0x20] sm:$0xff]  ;;  %s8449_s20 = smov 32   ;;  %p333_p7 = scmp.lt.s32.totalorder %s8430_s24, 1  ;;  %vm7595_vm0 = vcmask 519168  }
  0x56   : > { %v368_v5 = vld [vmem:[%s8614_s14 + $0x28] sm:$0xff]  ;;  %v369_v6 = vld [vmem:[%s8614_s14 + $0x30] sm:$0xff]  ;;  %v8632_v7 = vld [vmem:[%s8614_s14 + $0x38] sm:$0xff]  ;;  %vm3338_vm1 = vcmask 257024  }
  0x57   : > { %v8635_v8 = vld [vmem:[%s8614_s14 + $0x40] sm:$0xff]  ;;  %v8638_v9 = vld [vmem:[%s8614_s14 + $0x48] sm:$0xff]  ;;  %v8644_v10 = vld [vmem:[%s8614_s14 + $0x50] sm:$0xff]  ;;  %s10515_s24 = smov (!%p333_p7, %s8430_s24), 1 }
  0x58   : > { %v8647_v11 = vld [vmem:[%s8614_s14 + $0x58] sm:$0xff]  ;;  %v8652_v12 = vld [vmem:[%s8614_s14 + $0x60] sm:$0xff]  ;;  %v8655_v13 = vld [vmem:[%s8614_s14 + $0x68] sm:$0xff]  ;;  %s8137_s12 = sshll.u32 %s10515_s24, 7  ;;  %s8135_s21 = sshll.u32 %s10515_s24, 8 }
  0x59   : > { %383 = vadd.xlane.f32.xlu0 %v364_v2  ;;  %387 = vadd.xlane.f32.xlu1 %v366_v3  ;;  %v8660_v14 = vld [vmem:[%s8614_s14 + $0x70] sm:$0xff]  ;;  %v8663_v15 = vld [vmem:[%s8614_s14 + $0x78] sm:$0xff]  ;;  %v8264_v17 = vld [vmem:[#allocation4] ss:$12 sps:$4 sm:$0xff]   ;;  %s9094_s17 = scalar_lea.vmem %s10486_s6, %s8137_s12  ;;  %s9162_s11 = scalar_lea.vmem %s10484_s4, %s8135_s21 }
  0x5a   : > { %v8262_v16 = vld [vmem:[#allocation4 + $0x4] ss:$12 sps:$4 sm:$0xff]   ;;  %v8265_v18 = vld [vmem:[#allocation4 + $0x1c] ss:$12 sps:$4 sm:$0xff]   ;;  %s9302_s28 = scalar_lea.vmem %s10485_s5, %s8135_s21 }
  0x5b   : > { %v8267_v19 = vld [vmem:[#allocation4 + $0x8] ss:$12 sps:$4 sm:$0xff]   ;;  %770 = vmatprep.subr.bf16.mxu0 %v8262_v16  ;;  %v8268_v58 = vld [vmem:[#allocation4 + $0x18] ss:$12 sps:$4 sm:$0xff]  }
  0x5c   : > { %771 = vmatpush1.bf16.msra.mxu0 %v8264_v17  ;;  %8154 = vmatprep.subr.bf16.mxu1 %v8267_v19 }
  0x5d   : > { %389 = vadd.xlane.f32.xlu0 %v367_v4  ;;  %391 = vadd.xlane.f32.xlu1 %v368_v5 }
  0x5e   : > { %772 = vmatprep.subr.bf16.mxu0 %v8265_v18  ;;  %8155 = vmatpush3.bf16.msra.mxu1 %v8267_v19  ;;  %v8273_v18 = vld [vmem:[#allocation4 + $0x4c] ss:$12 sps:$4 sm:$0xff]  }
  0x5f   : > { %v8275_v19 = vld [vmem:[#allocation4 + $0x38] ss:$12 sps:$4 sm:$0xff]  }
  0x60   : > { %773 = vmatpush1.bf16.msra.mxu0 %v8268_v58 }
  0x61   : > { %393 = vadd.xlane.f32.xlu0 %v369_v6  ;;  %395 = vadd.xlane.f32.xlu1 %v8632_v7 }
  0x65   : > { %397 = vadd.xlane.f32.xlu0 %v8635_v8  ;;  %399 = vadd.xlane.f32.xlu1 %v8638_v9 }
  0x69   : > { %401 = vadd.xlane.f32.xlu0 %v8644_v10  ;;  %403 = vadd.xlane.f32.xlu1 %v8647_v11 }
  0x6d   : > { %405 = vadd.xlane.f32.xlu0 %v8652_v12  ;;  %407 = vadd.xlane.f32.xlu1 %v8655_v13 }
  0x71   : > { %409 = vadd.xlane.f32.xlu0 %v8660_v14  ;;  %411 = vadd.xlane.f32.xlu1 %v8663_v15 }
  0xe2   : > { %v382_v20 = vpop.xlane.xlu0 %381  ;;  %v386_v21 = vpop.xlane.xlu1 %385 }
  0xe3   : > { %v414_v22 = vmul.f32 0.0078125, %v382_v20  ;;  %v416_v23 = vmul.f32 0.0078125, %v386_v21 }
  0xe5   : > { %v8667_v24 = vsub.f32 %v363_v0, %v414_v22  ;;  %v8669_v25 = vsub.f32 %v365_v1, %v416_v23  ;;  %v8269_v0 = vld [vmem:[#allocation4 + $0x34] ss:$12 sps:$4 sm:$0xff]  }
  0xe6   : > { %v384_v26 = vpop.xlane.xlu0 %383  ;;  %v388_v27 = vpop.xlane.xlu1 %387  ;;  %v8271_v1 = vld [vmem:[#allocation4 + $0x20] ss:$12 sps:$4 sm:$0xff]   ;;  %774 = vmatprep.subr.bf16.mxu0 %v8269_v0  ;;  %v8276_v22 = vld [vmem:[#allocation4 + $0x48] ss:$12 sps:$4 sm:$0xff]  }
  0xe7   : > { %v415_v28 = vmul.f32 0.0078125, %v384_v26  ;;  %v446_v29 = vmul.f32 %v8667_v24, %v8667_v24  ;;  %v417_v30 = vmul.f32 0.0078125, %v388_v27  ;;  %v448_v33 = vmul.f32 %v8669_v25, %v8669_v25  ;;  %8156 = vmatprep.subr.bf16.mxu1 %v8271_v1 }
  0xe8   : > { %8157 = vmatpush3.bf16.msra.mxu1 %v8271_v1 }
  0xe9   : > { %v8673_v31 = vsub.f32 %v364_v2, %v415_v28  ;;  %462 = vadd.xlane.f32.xlu0 %v446_v29  ;;  %v8675_v32 = vsub.f32 %v366_v3, %v417_v30  ;;  %8158 = vmatprep.subr.bf16.mxu1 %v8275_v19  ;;  %v8277_v29 = vld [vmem:[#allocation4 + $0x64] ss:$12 sps:$4 sm:$0xff]  }
  0xea   : > { %v390_v34 = vpop.xlane.xlu0 %389  ;;  %v392_v35 = vpop.xlane.xlu1 %391  ;;  %v8279_v30 = vld [vmem:[#allocation4 + $0x50] ss:$12 sps:$4 sm:$0xff]  }
  0xeb   : > { %v418_v36 = vmul.f32 0.0078125, %v390_v34  ;;  %v447_v37 = vmul.f32 %v8673_v31, %v8673_v31  ;;  %v419_v38 = vmul.f32 0.0078125, %v392_v35  ;;  %v449_v41 = vmul.f32 %v8675_v32, %v8675_v32  ;;  %v8283_v35 = vld [vmem:[#allocation4 + $0x68] ss:$12 sps:$4 sm:$0xff]  }
  0xec   : > { %8159 = vmatpush3.bf16.msra.mxu1 %v8275_v19 }
  0xed   : > { %v8681_v39 = vsub.f32 %v367_v4, %v418_v36  ;;  %466 = vadd.xlane.f32.xlu0 %v448_v33  ;;  %464 = vadd.xlane.f32.xlu1 %v447_v37  ;;  %v8683_v40 = vsub.f32 %v368_v5, %v419_v38  ;;  %v8280_v33 = vld [vmem:[#allocation4 + $0x60] ss:$12 sps:$4 sm:$0xff]   ;;  %v8284_v36 = vld [vmem:[#allocation4 + $0x78] ss:$12 sps:$4 sm:$0xff]  }
  0xee   : > { %v394_v42 = vpop.xlane.xlu0 %393  ;;  %v396_v43 = vpop.xlane.xlu1 %395  ;;  %8160 = vmatprep.subr.bf16.mxu1 %v8279_v30  ;;  %v8285_v37 = vld [vmem:[#allocation4 + $0x94] ss:$12 sps:$4 sm:$0xff]  }
  0xef   : > { %v420_v44 = vmul.f32 0.0078125, %v394_v42  ;;  %v450_v45 = vmul.f32 %v8681_v39, %v8681_v39  ;;  %v421_v46 = vmul.f32 0.0078125, %v396_v43  ;;  %v451_v49 = vmul.f32 %v8683_v40, %v8683_v40  ;;  %v8287_v38 = vld [vmem:[#allocation4 + $0x80] ss:$12 sps:$4 sm:$0xff]   ;;  %v8291_v43 = vld [vmem:[#allocation4 + $0x98] ss:$12 sps:$4 sm:$0xff]  }
  0xf0   : > { %8161 = vmatpush3.bf16.msra.mxu1 %v8279_v30  ;;  %v8289_v42 = vld [vmem:[#allocation4 + $0xac] ss:$12 sps:$4 sm:$0xff]  }
  0xf1   : > { %v8689_v47 = vsub.f32 %v369_v6, %v420_v44  ;;  %468 = vadd.xlane.f32.xlu1 %v449_v41  ;;  %470 = vadd.xlane.f32.xlu0 %v450_v45  ;;  %v8692_v48 = vsub.f32 %v8632_v7, %v421_v46  ;;  %v8272_v7 = vld [vmem:[#allocation4 + $0x30] ss:$12 sps:$4 sm:$0xff]   ;;  %v8292_v44 = vld [vmem:[#allocation4 + $0xa8] ss:$12 sps:$4 sm:$0xff]   ;;  %v8446_v46 = vmov 0  }
  0xf2   : > { %v398_v50 = vpop.xlane.xlu0 %397  ;;  %v400_v51 = vpop.xlane.xlu1 %399  ;;  %775 = vmatpush1.bf16.msra.mxu0 %v8272_v7  ;;  %8162 = vmatprep.subr.bf16.mxu1 %v8283_v35  ;;  %v8288_v41 = vld [vmem:[#allocation4 + $0x90] ss:$12 sps:$4 sm:$0xff]  }
  0xf3   : > { %v422_v52 = vmul.f32 0.0078125, %v398_v50  ;;  %v452_v53 = vmul.f32 %v8689_v47, %v8689_v47  ;;  %v423_v54 = vmul.f32 0.0078125, %v400_v51  ;;  %v453_v57 = vmul.f32 %v8692_v48, %v8692_v48  ;;  %776 = vmatprep.subr.bf16.mxu0 %v8273_v18  ;;  %v8293_v45 = vld [vmem:[#allocation4 + $0xb0] ss:$12 sps:$4 sm:$0xff]   ;;  %802 = vmatprep.mubr.bf16.mxu0 %v8446_v46 }
  0xf4   : > { %8163 = vmatpush3.bf16.msra.mxu1 %v8283_v35 }
  0xf5   : > { %v8699_v55 = vsub.f32 %v8635_v8, %v422_v52  ;;  %472 = vadd.xlane.f32.xlu1 %v451_v49  ;;  %474 = vadd.xlane.f32.xlu0 %v452_v53  ;;  %v8702_v56 = vsub.f32 %v8638_v9, %v423_v54 }
  0xf6   : > { %v402_v59 = vpop.xlane.xlu0 %401  ;;  %v404_v60 = vpop.xlane.xlu1 %403  ;;  %777 = vmatpush1.bf16.msra.mxu0 %v8276_v22  ;;  %8164 = vmatprep.subr.bf16.mxu1 %v8287_v38  ;;  %v8745_v22 = vld [vmem:[%s10481_s1] ss:$0 sm:$0xff] }
  0xf7   : > { %v424_v61 = vmul.f32 0.0078125, %v402_v59  ;;  %v454_v62 = vmul.f32 %v8699_v55, %v8699_v55  ;;  %v425_v63 = vmul.f32 0.0078125, %v404_v60  ;;  %v455_v4 = vmul.f32 %v8702_v56, %v8702_v56  ;;  %778 = vmatprep.subr.bf16.mxu0 %v8277_v29 }
  0xf8   : > { %8165 = vmatpush3.bf16.msra.mxu1 %v8287_v38 }
  0xf9   : > { %v8709_v2 = vsub.f32 %v8644_v10, %v424_v61  ;;  %476 = vadd.xlane.f32.xlu1 %v453_v57  ;;  %478 = vadd.xlane.f32.xlu0 %v454_v62  ;;  %v8712_v3 = vsub.f32 %v8647_v11, %v425_v63 }
  0xfa   : > { %v406_v5 = vpop.xlane.xlu0 %405  ;;  %v408_v6 = vpop.xlane.xlu1 %407  ;;  %779 = vmatpush1.bf16.msra.mxu0 %v8280_v33  ;;  %8166 = vmatprep.subr.bf16.mxu1 %v8291_v43 }
  0xfb   : > { %v426_v8 = vmul.f32 0.0078125, %v406_v5  ;;  %v456_v9 = vmul.f32 %v8709_v2, %v8709_v2  ;;  %v427_v16 = vmul.f32 0.0078125, %v408_v6  ;;  %v457_v17 = vmul.f32 %v8712_v3, %v8712_v3 }
  0xfc   : > { %8167 = vmatpush3.bf16.msra.mxu1 %v8291_v43 }
  0xfd   : > { %v8719_v10 = vsub.f32 %v8652_v12, %v426_v8  ;;  %480 = vadd.xlane.f32.xlu1 %v455_v4  ;;  %482 = vadd.xlane.f32.xlu0 %v456_v9  ;;  %v8722_v11 = vsub.f32 %v8655_v13, %v427_v16 }
  0xfe   : > { %v410_v20 = vpop.xlane.xlu0 %409  ;;  %v412_v21 = vpop.xlane.xlu1 %411  ;;  %8168 = vmatprep.subr.bf16.mxu1 %v8293_v45 }
  0xff   : > { %v428_v23 = vmul.f32 0.0078125, %v410_v20  ;;  %v458_v26 = vmul.f32 %v8719_v10, %v8719_v10  ;;  %v429_v27 = vmul.f32 0.0078125, %v412_v21  ;;  %v459_v28 = vmul.f32 %v8722_v11, %v8722_v11 }
 0x100   : > { %8169 = vmatpush3.bf16.msra.mxu1 %v8293_v45 }
 0x101   : > { %v8729_v12 = vsub.f32 %v8660_v14, %v428_v23  ;;  %484 = vadd.xlane.f32.xlu1 %v457_v17  ;;  %486 = vadd.xlane.f32.xlu0 %v458_v26  ;;  %v8732_v13 = vsub.f32 %v8663_v15, %v429_v27  ;;  %v8281_v15 = vld [vmem:[#allocation4 + $0x7c] ss:$12 sps:$4 sm:$0xff]  }
 0x102   : > { %780 = vmatprep.subr.bf16.mxu0 %v8281_v15  ;;  %v8752_v15 = vld [vmem:[%s10482_s2] ss:$0 sm:$0xff] }
 0x103   : > { %v460_v34 = vmul.f32 %v8729_v12, %v8729_v12  ;;  %v461_v14 = vmul.f32 %v8732_v13, %v8732_v13  ;;  %781 = vmatpush1.bf16.msra.mxu0 %v8284_v36 }
 0x104   : > { %782 = vmatprep.subr.bf16.mxu0 %v8285_v37 }
 0x105   : > { %488 = vadd.xlane.f32.xlu1 %v459_v28  ;;  %490 = vadd.xlane.f32.xlu0 %v460_v34 }
 0x107   : > { %783 = vmatpush1.bf16.msra.mxu0 %v8288_v41 }
 0x108   : > { %784 = vmatprep.subr.bf16.mxu0 %v8289_v42 }
 0x109   : > { %492 = vadd.xlane.f32.xlu1 %v461_v14 }
 0x10b   : > { %785 = vmatpush1.bf16.msra.mxu0 %v8292_v44 }
 0x176   : > { %v463_v49 = vpop.xlane.xlu0 %462 }
 0x177   : > { %v494_v50 = vmul.f32 0.0078125, %v463_v49 }
 0x179   : > { %v510_v51 = vadd.f32 1e-05, %v494_v50 }
 0x17a   : > { %v465_v52 = vpop.xlane.xlu1 %464  ;;  %v467_v53 = vpop.xlane.xlu0 %466 }
 0x17b   : > { %8294 = vrsqrt.f32 %v510_v51  ;;  %v495_v54 = vmul.f32 0.0078125, %v465_v52  ;;  %v496_v57 = vmul.f32 0.0078125, %v467_v53 }
 0x17d   : > { %v511_v58 = vadd.f32 1e-05, %v495_v54  ;;  %v512_v59 = vadd.f32 1e-05, %v496_v57 }
 0x17e   : > { %v469_v60 = vpop.xlane.xlu1 %468  ;;  %v471_v61 = vpop.xlane.xlu0 %470 }
 0x17f   : > { %8296 = vrsqrt.f32 %v511_v58  ;;  %v497_v62 = vmul.f32 0.0078125, %v469_v60  ;;  %v498_v63 = vmul.f32 0.0078125, %v471_v61 }
 0x180   : > { %8298 = vrsqrt.f32 %v512_v59 }
 0x181   : > { %v513_v0 = vadd.f32 1e-05, %v497_v62  ;;  %v514_v1 = vadd.f32 1e-05, %v498_v63 }
 0x182   : > { %v473_v4 = vpop.xlane.xlu1 %472  ;;  %v475_v5 = vpop.xlane.xlu0 %474 }
 0x183   : > { %8300 = vrsqrt.f32 %v513_v0  ;;  %v499_v6 = vmul.f32 0.0078125, %v473_v4  ;;  %v500_v7 = vmul.f32 0.0078125, %v475_v5 }
 0x184   : > { %8302 = vrsqrt.f32 %v514_v1 }
 0x185   : > { %v8295_v8 = vpop.eup %8294  ;;  %v515_v9 = vadd.f32 1e-05, %v499_v6  ;;  %v516_v16 = vadd.f32 1e-05, %v500_v7 }
 0x186   : > { %v477_v17 = vpop.xlane.xlu1 %476  ;;  %v479_v18 = vpop.xlane.xlu0 %478  ;;  %v542_v19 = vmul.f32 %v8295_v8, %v8667_v24 }
 0x187   : > { %8304 = vrsqrt.f32 %v515_v9  ;;  %v501_v20 = vmul.f32 0.0078125, %v477_v17  ;;  %v502_v21 = vmul.f32 0.0078125, %v479_v18 }
 0x188   : > { %8306 = vrsqrt.f32 %v516_v16  ;;  %v564_v34 = vmul.f32 %v8745_v22, %v542_v19 }
 0x189   : > { %v8297_v23 = vpop.eup %8296  ;;  %v517_v26 = vadd.f32 1e-05, %v501_v20  ;;  %v518_v27 = vadd.f32 1e-05, %v502_v21 }
 0x18a   : > { %v8299_v28 = vpop.eup %8298  ;;  %v481_v29 = vpop.xlane.xlu1 %480  ;;  %v543_v33 = vmul.f32 %v8297_v23, %v8673_v31  ;;  %v586_v45 = vadd.f32 %v8752_v15, %v564_v34 }
 0x18b   : > { %v483_v30 = vpop.xlane.xlu0 %482  ;;  %8308 = vrsqrt.f32 %v517_v26  ;;  %v503_v24 = vmul.f32 0.0078125, %v481_v29  ;;  %v544_v35 = vmul.f32 %v8299_v28, %v8669_v25 }
 0x18c   : > { %v504_v14 = vmul.f32 0.0078125, %v483_v30  ;;  %8310 = vrsqrt.f32 %v518_v27  ;;  %v565_v36 = vmul.f32 %v8745_v22, %v543_v33 }
 0x18d   : > { %v8301_v37 = vpop.eup %8300  ;;  %v519_v38 = vadd.f32 1e-05, %v503_v24  ;;  %v566_v31 = vmul.f32 %v8745_v22, %v544_v35 }
 0x18e   : > { %v520_v41 = vadd.f32 1e-05, %v504_v14  ;;  %v8303_v42 = vpop.eup %8302  ;;  %v485_v43 = vpop.xlane.xlu1 %484  ;;  %v587_v49 = vadd.f32 %v8752_v15, %v565_v36  ;;  %v545_v50 = vmul.f32 %v8301_v37, %v8675_v32 }
 0x18f   : > { %v487_v44 = vpop.xlane.xlu0 %486  ;;  %8312 = vrsqrt.f32 %v519_v38  ;;  %v505_v51 = vmul.f32 0.0078125, %v485_v43  ;;  %v546_v54 = vmul.f32 %v8303_v42, %v8681_v39  ;;  %v588_v60 = vadd.f32 %v8752_v15, %v566_v31 }
 0x190   : > { %v506_v25 = vmul.f32 0.0078125, %v487_v44  ;;  %8314 = vrsqrt.f32 %v520_v41  ;;  %v602_v52 = vpack.c.bf16 %v587_v49, %v586_v45  ;;  %v567_v53 = vmul.f32 %v8745_v22, %v545_v50 }
 0x191   : > { %v8305_v57 = vpop.eup %8304  ;;  %v521_v58 = vadd.f32 1e-05, %v505_v51  ;;  %v568_v1 = vmul.f32 %v8745_v22, %v546_v54 }
 0x192   : > { %v522_v59 = vadd.f32 1e-05, %v506_v25  ;;  %v8307_v61 = vpop.eup %8306  ;;  %v489_v62 = vpop.xlane.xlu1 %488  ;;  %803 = vmatmul.mubr.bf16.vlgmr.msra.gmra.mrb[0].mxu0 %v602_v52  ;;  %8170 = vmatprep.mubr.bf16.mxu1 %v602_v52  ;;  %v589_v32 = vadd.f32 %v8752_v15, %v567_v53  ;;  %v547_v0 = vmul.f32 %v8305_v57, %v8683_v40 }
 0x193   : > { %v491_v63 = vpop.xlane.xlu0 %490  ;;  %8316 = vrsqrt.f32 %v521_v58  ;;  %v507_v4 = vmul.f32 0.0078125, %v489_v62  ;;  %812 = vmatprep.mubr.bf16.mxu0 %v8446_v46  ;;  %v548_v39 = vmul.f32 %v8307_v61, %v8689_v47  ;;  %v590_v19 = vadd.f32 %v8752_v15, %v568_v1 }
 0x194   : > { %v508_v5 = vmul.f32 0.0078125, %v491_v63  ;;  %8318 = vrsqrt.f32 %v522_v59  ;;  %v603_v6 = vpack.c.bf16 %v589_v32, %v588_v60  ;;  %v569_v7 = vmul.f32 %v8745_v22, %v547_v0 }
 0x195   : > { %v8309_v8 = vpop.eup %8308  ;;  %v523_v9 = vadd.f32 1e-05, %v507_v4  ;;  %v570_v17 = vmul.f32 %v8745_v22, %v548_v39 }
 0x196   : > { %v524_v16 = vadd.f32 1e-05, %v508_v5  ;;  %v8311_v18 = vpop.eup %8310  ;;  %v493_v40 = vpop.xlane.xlu1 %492  ;;  %8171 = vmatmul.mubr.bf16.vlgmr.msra.gmra.mrb[0].mxu1 %v603_v6  ;;  %v591_v20 = vadd.f32 %v8752_v15, %v569_v7  ;;  %v549_v21 = vmul.f32 %v8309_v8, %v8692_v48 }
 0x197   : > { %8320 = vrsqrt.f32 %v523_v9  ;;  %v509_v47 = vmul.f32 0.0078125, %v493_v40  ;;  %v550_v23 = vmul.f32 %v8311_v18, %v8699_v55  ;;  %v592_v30 = vadd.f32 %v8752_v15, %v570_v17 }
 0x198   : > { %8322 = vrsqrt.f32 %v524_v16  ;;  %v604_v26 = vpack.c.bf16 %v591_v20, %v590_v19  ;;  %v571_v27 = vmul.f32 %v8745_v22, %v549_v21 }
 0x199   : > { %v8313_v28 = vpop.eup %8312  ;;  %v525_v29 = vadd.f32 1e-05, %v509_v47  ;;  %v572_v48 = vmul.f32 %v8745_v22, %v550_v23 }
 0x19a   : > { %v8315_v33 = vpop.eup %8314  ;;  %813 = vmatmul.mubr.bf16.gmra.mrb[4].mxu0 %v603_v6  ;;  %8174 = vmatprep.mubr.bf16.mxu1 %v604_v26  ;;  %v593_v34 = vadd.f32 %v8752_v15, %v571_v27  ;;  %v551_v24 = vmul.f32 %v8313_v28, %v8702_v56 }
 0x19b   : > { %8324 = vrsqrt.f32 %v525_v29  ;;  %822 = vmatprep.mubr.bf16.mxu0 %v8446_v46  ;;  %v552_v55 = vmul.f32 %v8315_v33, %v8709_v2  ;;  %v594_v41 = vadd.f32 %v8752_v15, %v572_v48 }
 0x19c   : > { %v605_v14 = vpack.c.bf16 %v593_v34, %v592_v30  ;;  %v573_v35 = vmul.f32 %v8745_v22, %v551_v24 }
 0x19d   : > { %v8317_v36 = vpop.eup %8316  ;;  %v574_v37 = vmul.f32 %v8745_v22, %v552_v55 }
 0x19e   : > { %v8319_v38 = vpop.eup %8318  ;;  %8175 = vmatmul.mubr.bf16.gmra.mrb[4].mxu1 %v605_v14  ;;  %v595_v31 = vadd.f32 %v8752_v15, %v573_v35  ;;  %v553_v56 = vmul.f32 %v8317_v36, %v8712_v3 }
 0x19f   : > { %v554_v42 = vmul.f32 %v8319_v38, %v8719_v10  ;;  %v596_v45 = vadd.f32 %v8752_v15, %v574_v37 }
 0x1a0   : > { %v606_v43 = vpack.c.bf16 %v595_v31, %v594_v41  ;;  %v575_v44 = vmul.f32 %v8745_v22, %v553_v56 }
 0x1a1   : > { %v8321_v2 = vpop.eup %8320  ;;  %v576_v25 = vmul.f32 %v8745_v22, %v554_v42 }
 0x1a2   : > { %v8323_v49 = vpop.eup %8322  ;;  %823 = vmatmul.mubr.bf16.gmra.mrb[8].mxu0 %v604_v26  ;;  %8178 = vmatprep.mubr.bf16.mxu1 %v606_v43  ;;  %v597_v50 = vadd.f32 %v8752_v15, %v575_v44  ;;  %v555_v51 = vmul.f32 %v8321_v2, %v8722_v11 }
 0x1a3   : > { %832 = vmatprep.mubr.bf16.mxu0 %v8446_v46  ;;  %v556_v3 = vmul.f32 %v8323_v49, %v8729_v12  ;;  %v598_v54 = vadd.f32 %v8752_v15, %v576_v25 }
 0x1a4   : > { %v607_v10 = vpack.c.bf16 %v597_v50, %v596_v45  ;;  %v577_v52 = vmul.f32 %v8745_v22, %v555_v51 }
 0x1a5   : > { %v8325_v53 = vpop.eup %8324  ;;  %v578_v59 = vmul.f32 %v8745_v22, %v556_v3 }
 0x1a6   : > { %8179 = vmatmul.mubr.bf16.gmra.mrb[8].mxu1 %v607_v10  ;;  %v599_v57 = vadd.f32 %v8752_v15, %v577_v52  ;;  %v557_v58 = vmul.f32 %v8325_v53, %v8732_v13 }
 0x1a7   : > { %v600_v12 = vadd.f32 %v8752_v15, %v578_v59 }
 0x1a8   : > { %v608_v11 = vpack.c.bf16 %v599_v57, %v598_v54  ;;  %v579_v60 = vmul.f32 %v8745_v22, %v557_v58 }
 0x1aa   : > { %833 = vmatmul.mubr.bf16.gmra.mrb[12].mxu0 %v605_v14  ;;  %8182 = vmatprep.mubr.bf16.mxu1 %v608_v11  ;;  %v601_v61 = vadd.f32 %v8752_v15, %v579_v60 }
 0x1ab   : > { %842 = vmatprep.mubr.bf16.mxu0 %v8446_v46 }
 0x1ac   : > { %v609_v62 = vpack.c.bf16 %v601_v61, %v600_v12 }
 0x1ae   : > { %8183 = vmatmul.mubr.bf16.gmra.mrb[12].mxu1 %v609_v62 }
 0x1b2   : > { %843 = vmatmul.mubr.bf16.gmra.mrb[16].mxu0 %v606_v43 }
 0x1b3   : > { %852 = vmatprep.mubr.bf16.mxu0 %v8446_v46 }
 0x1ba   : > { %853 = vmatmul.mubr.bf16.gmra.mrb[20].mxu0 %v607_v10 }
 0x1bb   : > { %862 = vmatprep.mubr.bf16.mxu0 %v8446_v46 }
 0x1c2   : > { %863 = vmatmul.mubr.bf16.gmra.mrb[24].mxu0 %v608_v11 }
 0x1c3   : > { %872 = vmatprep.mubr.bf16.mxu0 %v8446_v46 }
 0x1ca   : > { %873 = vmatmul.mubr.bf16.gmra.mrb[28].mxu0 %v609_v62 }
 0x265   : > { %v804_v13 = vpop.f32.mrb[0].mxu0 }
 0x266   : > { %v806_v22 = vpop.f32.mrb[1].mxu0 }
 0x267   : > { %v808_v63 = vpop.f32.mrb[2].mxu0 }
 0x268   : > { %v8806_v32 = vpack.c.bf16 %v808_v63, %v804_v13  ;;  %v810_v15 = vpop.f32.mrb[3].mxu0 }
 0x269   : > { %v8808_v0 = vpack.c.bf16 %v810_v15, %v806_v22  ;;  %v8172_v1 = vpop.f32.mrb[0].mxu1 }
 0x26a   : > { %1012 = vrot.lane.b32.xlu0 %v8806_v32, %s8447_s18  ;;  %v917_v4 = vpop.f32.mrb[1].mxu1 }
 0x26b   : > { %v8173_v5 = vpop.f32.mrb[2].mxu1 }
 0x26c   : > { %v8812_v39 = vpack.c.bf16 %v8173_v5, %v8172_v1  ;;  %v920_v6 = vpop.f32.mrb[3].mxu1 }
 0x26d   : > { %v8814_v7 = vpack.c.bf16 %v920_v6, %v917_v4  ;;  %v814_v8 = vpop.f32.mrb[4].mxu0 }
 0x26e   : > { %1028 = vrot.lane.b32.xlu0 %v8806_v32, %s8448_s19  ;;  %5805 = vrot.lane.b32.xlu1 %v8812_v39, %s8448_s19  ;;  %v816_v9 = vpop.f32.mrb[5].mxu0 }
 0x26f   : > { %v818_v16 = vpop.f32.mrb[6].mxu0 }
 0x270   : > { %v8820_v17 = vpack.c.bf16 %v818_v16, %v814_v8  ;;  %v820_v18 = vpop.f32.mrb[7].mxu0 }
 0x271   : > { %v8822_v40 = vpack.c.bf16 %v820_v18, %v816_v9  ;;  %v8176_v19 = vpop.f32.mrb[4].mxu1  ;;  %v8450_v9 = vmov 1983009808   ;;  %v1198_v18 = vlaneseq }
 0x272   : > { %1044 = vrot.lane.b32.xlu0 %v8806_v32, %s8449_s20  ;;  %1014 = vrot.lane.b32.xlu1 %v8820_v17, %s8447_s18  ;;  %v933_v20 = vpop.f32.mrb[5].mxu1  ;;  %v1196_v16 = vunpack.c.l.s4 %v8450_v9 }
 0x273   : > { %v8177_v21 = vpop.f32.mrb[6].mxu1 }
 0x274   : > { %v8828_v47 = vpack.c.bf16 %v8177_v21, %v8176_v19  ;;  %v936_v23 = vpop.f32.mrb[7].mxu1  ;;  %v8451_v19 = vmov 1934713408   ;;  %v1197_v21 = vunpack.c.0.s8 %v1196_v16 }
 0x275   : > { %v8830_v26 = vpack.c.bf16 %v936_v23, %v933_v20  ;;  %v824_v27 = vpop.f32.mrb[8].mxu0  ;;  %v1227_v20 = vunpack.c.l.s4 %v8451_v19  ;;  %v1199_v23 = vshrl.u32 %v1198_v18, 7 }
 0x276   : > { %3411 = vrot.lane.b32.xlu0 %v8808_v0, %s8447_s18  ;;  %1030 = vrot.lane.b32.xlu1 %v8820_v17, %s8448_s19  ;;  %v826_v28 = vpop.f32.mrb[9].mxu0 }
 0x277   : > { %v828_v29 = vpop.f32.mrb[10].mxu0 }
 0x278   : > { %v8836_v30 = vpack.c.bf16 %v828_v29, %v824_v27  ;;  %v830_v33 = vpop.f32.mrb[11].mxu0  ;;  %v1228_v27 = vunpack.c.0.s8 %v1227_v20  ;;  %v8968_v29 = vsub.s32 %v1197_v21, %v1199_v23 }
 0x279   : > { %v8838_v34 = vpack.c.bf16 %v830_v33, %v826_v28  ;;  %v8180_v24 = vpop.f32.mrb[8].mxu1  ;;  %v8966_v28 = vpack.i.b16 %v8446_v46, %v8446_v46 }
 0x27a   : > { %3427 = vrot.lane.b32.xlu0 %v8808_v0, %s8448_s19  ;;  %1046 = vrot.lane.b32.xlu1 %v8820_v17, %s8449_s20  ;;  %v949_v48 = vpop.f32.mrb[9].mxu1 }
 0x27b   : > { %v8181_v55 = vpop.f32.mrb[10].mxu1 }
 0x27c   : > { %v8844_v14 = vpack.c.bf16 %v8181_v55, %v8180_v24  ;;  %v952_v35 = vpop.f32.mrb[11].mxu1  ;;  %v8970_v24 = vsub.s32 %v1228_v27, %v1199_v23 }
 0x27d   : > { %v8846_v36 = vpack.c.bf16 %v952_v35, %v949_v48  ;;  %v834_v37 = vpop.f32.mrb[12].mxu0  ;;  %v1064_v48 = vshrl.u32 %v8806_v32, 16 }
 0x27e   : > { %3443 = vrot.lane.b32.xlu0 %v8808_v0, %s8449_s20  ;;  %3413 = vrot.lane.b32.xlu1 %v8822_v40, %s8447_s18  ;;  %v836_v38 = vpop.f32.mrb[13].mxu0 }
 0x27f   : > { %v838_v41 = vpop.f32.mrb[14].mxu0 }
 0x280   : > { %v8852_v31 = vpack.c.bf16 %v838_v41, %v834_v37  ;;  %v840_v56 = vpop.f32.mrb[15].mxu0  ;;  %v3463_v37 = vshrl.u32 %v8808_v0, 16  ;;  %v5823_v41 = vshrl.u32 %v8814_v7, 16 }
 0x281   : > { %v8854_v42 = vpack.c.bf16 %v840_v56, %v836_v38  ;;  %v8184_v43 = vpop.f32.mrb[12].mxu1  ;;  %v5831_v38 = vshrl.u32 %v8812_v39, 16  ;;  %v1086_v56 = vshrl.u32 %v8820_v17, 16 }
 0x282   : > { %5803 = vrot.lane.b32.xlu0 %v8814_v7, %s8448_s19  ;;  %3429 = vrot.lane.b32.xlu1 %v8822_v40, %s8448_s19  ;;  %v965_v44 = vpop.f32.mrb[13].mxu1 }
 0x283   : > { %v8185_v2 = vpop.f32.mrb[14].mxu1 }
 0x284   : > { %v8860_v45 = vpack.c.bf16 %v8185_v2, %v8184_v43  ;;  %v968_v49 = vpop.f32.mrb[15].mxu1  ;;  %v3479_v43 = vshrl.u32 %v8822_v40, 16  ;;  %v5839_v2 = vshrl.u32 %v8830_v26, 16 }
 0x285   : > { %v8862_v50 = vpack.c.bf16 %v968_v49, %v965_v44  ;;  %v844_v51 = vpop.f32.mrb[16].mxu0  ;;  %v5847_v44 = vshrl.u32 %v8828_v47, 16 }
 0x286   : > { %3445 = vrot.lane.b32.xlu1 %v8822_v40, %s8449_s20  ;;  %5807 = vrot.lane.b32.xlu0 %v8830_v26, %s8448_s19  ;;  %v846_v25 = vpop.f32.mrb[17].mxu0 }
 0x287   : > { %v848_v3 = vpop.f32.mrb[18].mxu0 }
 0x288   : > { %v8868_v10 = vpack.c.bf16 %v848_v3, %v844_v51  ;;  %v850_v52 = vpop.f32.mrb[19].mxu0 }
 0x289   : > { %v8870_v53 = vpack.c.bf16 %v850_v52, %v846_v25 }
 0x28a   : > { %5809 = vrot.lane.b32.xlu1 %v8828_v47, %s8448_s19  ;;  %1032 = vrot.lane.b32.xlu0 %v8836_v30, %s8448_s19 }
 0x28d   : > { %v854_v54 = vpop.f32.mrb[20].mxu0 }
 0x28e   : > { %1016 = vrot.lane.b32.xlu1 %v8836_v30, %s8447_s18  ;;  %1048 = vrot.lane.b32.xlu0 %v8836_v30, %s8449_s20  ;;  %v856_v57 = vpop.f32.mrb[21].mxu0 }
 0x28f   : > { %v858_v58 = vpop.f32.mrb[22].mxu0 }
 0x290   : > { %v8880_v59 = vpack.c.bf16 %v858_v58, %v854_v54  ;;  %v860_v11 = vpop.f32.mrb[23].mxu0  ;;  %v1102_v54 = vshrl.u32 %v8836_v30, 16 }
 0x291   : > { %v8882_v60 = vpack.c.bf16 %v860_v11, %v856_v57 }
 0x292   : > { %3415 = vrot.lane.b32.xlu0 %v8838_v34, %s8447_s18  ;;  %5813 = vrot.lane.b32.xlu1 %v8844_v14, %s8448_s19 }
 0x295   : > { %v864_v12 = vpop.f32.mrb[24].mxu0 }
 0x296   : > { %3431 = vrot.lane.b32.xlu0 %v8838_v34, %s8448_s19  ;;  %1018 = vrot.lane.b32.xlu1 %v8852_v31, %s8447_s18  ;;  %v866_v61 = vpop.f32.mrb[25].mxu0 }
 0x297   : > { %v868_v62 = vpop.f32.mrb[26].mxu0 }
 0x298   : > { %v8892_v13 = vpack.c.bf16 %v868_v62, %v864_v12  ;;  %v870_v22 = vpop.f32.mrb[27].mxu0 }
 0x299   : > { %v8894_v63 = vpack.c.bf16 %v870_v22, %v866_v61 }
 0x29a   : > { %3447 = vrot.lane.b32.xlu0 %v8838_v34, %s8449_s20  ;;  %1034 = vrot.lane.b32.xlu1 %v8852_v31, %s8448_s19 }
 0x29d   : > { %v874_v15 = vpop.f32.mrb[28].mxu0 }
 0x29e   : > { %1050 = vrot.lane.b32.xlu1 %v8852_v31, %s8449_s20  ;;  %5811 = vrot.lane.b32.xlu0 %v8846_v36, %s8448_s19  ;;  %v876_v1 = vpop.f32.mrb[29].mxu0 }
 0x29f   : > { %v878_v4 = vpop.f32.mrb[30].mxu0 }
 0x2a0   : > { %v8904_v5 = vpack.c.bf16 %v878_v4, %v874_v15  ;;  %v880_v6 = vpop.f32.mrb[31].mxu0 }
 0x2a1   : > { %v8906_v8 = vpack.c.bf16 %v880_v6, %v876_v1 }
 0x2a2   : > { %3417 = vrot.lane.b32.xlu1 %v8854_v42, %s8447_s18  ;;  %1020 = vrot.lane.b32.xlu0 %v8868_v10, %s8447_s18 }
 0x2a6   : > { %3433 = vrot.lane.b32.xlu1 %v8854_v42, %s8448_s19  ;;  %1036 = vrot.lane.b32.xlu0 %v8868_v10, %s8448_s19 }
 0x2aa   : > { %3449 = vrot.lane.b32.xlu1 %v8854_v42, %s8449_s20  ;;  %1052 = vrot.lane.b32.xlu0 %v8868_v10, %s8449_s20 }
 0x2ae   : > { %3419 = vrot.lane.b32.xlu0 %v8870_v53, %s8447_s18  ;;  %1022 = vrot.lane.b32.xlu1 %v8880_v59, %s8447_s18 }
 0x2b2   : > { %3435 = vrot.lane.b32.xlu0 %v8870_v53, %s8448_s19  ;;  %1038 = vrot.lane.b32.xlu1 %v8880_v59, %s8448_s19 }
 0x2b6   : > { %3451 = vrot.lane.b32.xlu0 %v8870_v53, %s8449_s20  ;;  %1054 = vrot.lane.b32.xlu1 %v8880_v59, %s8449_s20 }
 0x2ba   : > { %3421 = vrot.lane.b32.xlu1 %v8882_v60, %s8447_s18  ;;  %1024 = vrot.lane.b32.xlu0 %v8892_v13, %s8447_s18 }
 0x2be   : > { %3437 = vrot.lane.b32.xlu1 %v8882_v60, %s8448_s19  ;;  %1040 = vrot.lane.b32.xlu0 %v8892_v13, %s8448_s19 }
 0x2c2   : > { %3453 = vrot.lane.b32.xlu1 %v8882_v60, %s8449_s20  ;;  %1056 = vrot.lane.b32.xlu0 %v8892_v13, %s8449_s20 }
 0x2c6   : > { %3423 = vrot.lane.b32.xlu0 %v8894_v63, %s8447_s18  ;;  %1026 = vrot.lane.b32.xlu1 %v8904_v5, %s8447_s18 }
 0x2ca   : > { %3439 = vrot.lane.b32.xlu0 %v8894_v63, %s8448_s19  ;;  %1042 = vrot.lane.b32.xlu1 %v8904_v5, %s8448_s19 }
 0x2ce   : > { %3455 = vrot.lane.b32.xlu0 %v8894_v63, %s8449_s20  ;;  %1058 = vrot.lane.b32.xlu1 %v8904_v5, %s8449_s20 }
 0x2d2   : > { %5815 = vrot.lane.b32.xlu0 %v8862_v50, %s8448_s19  ;;  %3425 = vrot.lane.b32.xlu1 %v8906_v8, %s8447_s18 }
 0x2d6   : > { %3441 = vrot.lane.b32.xlu1 %v8906_v8, %s8448_s19 }
 0x2da   : > { %3457 = vrot.lane.b32.xlu1 %v8906_v8, %s8449_s20 }
 0x2dc   : > { %v1013_v33 = vpop.permute.xlu0 %1012 }
 0x2dd   : > { %v1062_v55 = vpack.i.b16 %v1013_v33, %v8806_v32  ;;  %v1065_v35 = vshrl.u32 %v1013_v33, 16 }
 0x2de   : > { %5817 = vrot.lane.b32.xlu1 %v8860_v45, %s8448_s19 }
 0x2df   : > { %v1066_v49 = vpack.i.b16 %v1065_v35, %v1064_v48  ;;  %v1194_v32 = vcombine.high %v1062_v55, %v8966_v28  ;;  %v8998_v4 = vrot.slane %v1062_v55, %v8968_v29 }
 0x2e0   : > { %v5806_v3 = vpop.permute.xlu1 %5805  ;;  %v8986_v52 = vpop.permute.xlu0 %1028 }
 0x2e1   : > { %v1260_v58 = vcombine.high %v1066_v49, %v8966_v28  ;;  %v5829_v11 = vpack.i.b16 %v5806_v3, %v8812_v39  ;;  %v5832_v62 = vshrl.u32 %v5806_v3, 16  ;;  %v9001_v6 = vrot.slane %v1194_v32, %v8968_v29 }
 0x2e2   : > { %v9006_v16 = vrot.slane %v1066_v49, %v8968_v29  ;;  %v1072_v20 = vshrl.u32 %v8986_v52, 16 }
 0x2e3   : > { %v5981_v9 = vcombine.high %v5829_v11, %v8966_v28  ;;  %v5988_v39 = vrot.slane %v5829_v11, %v8968_v29  ;;  %v9009_v18 = vrot.slane %v1260_v58, %v8968_v29  ;;  %v5833_v19 = vpack.i.b16 %v5832_v62, %v5831_v38 }
 0x2e4   : > { %v1015_v21 = vpop.permute.xlu1 %1014  ;;  %v1045_v23 = vpop.permute.xlu0 %1044 }
 0x2e5   : > { %v5995_v27 = vrot.slane %v5981_v9, %v8968_v29  ;;  %v5996_v33 = vcombine.high %v5988_v39, %v8446_v46  ;;  %v6003_v48 = vrot.slane %v5988_v39, %v8970_v24  ;;  %v1084_v55 = vpack.i.b16 %v1015_v21, %v8820_v17 }
 0x2e6   : > { %v6030_v35 = vcombine.high %v5833_v19, %v8966_v28  ;;  %v6037_v49 = vrot.slane %v5833_v19, %v8968_v29  ;;  %v1087_v32 = vshrl.u32 %v1015_v21, 16  ;;  %v1070_v3 = vpack.i.b16 %v1045_v23, %v8986_v52 }
 0x2e7   : > { %v6010_v38 = vrot.slane %v5996_v33, %v8970_v24  ;;  %v6011_v58 = vcombine.high %v5995_v27, %v8446_v46  ;;  %v6018_v11 = vrot.slane %v5995_v27, %v8970_v24  ;;  %v1326_v62 = vcombine.high %v1084_v55, %v8966_v28 }
 0x2e8   : > { %v6044_v9 = vrot.slane %v6030_v35, %v8968_v29  ;;  %v6045_v39 = vcombine.high %v6037_v49, %v8446_v46  ;;  %v6052_v17 = vrot.slane %v6037_v49, %v8970_v24  ;;  %v1088_v1 = vpack.i.b16 %v1087_v32, %v1086_v56 }
 0x2e9   : > { %v6025_v19 = vrot.slane %v6011_v58, %v8970_v24  ;;  %v6765_v21 = vcombine.low %v6003_v48, %v6010_v38  ;;  %v8072_v15 = vcombine.high %v6003_v48, %v6010_v38  ;;  %v9028_v52 = vrot.slane %v1084_v55, %v8968_v29 }
 0x2ea   : > { %v6059_v33 = vrot.slane %v6045_v39, %v8970_v24  ;;  %v6060_v27 = vcombine.high %v6044_v9, %v8446_v46  ;;  %v6067_v22 = vrot.slane %v6044_v9, %v8970_v24  ;;  %v9034_v35 = vrot.slane %v1326_v62, %v8968_v29 }
 0x2eb   : > { %v6772_v49 = vrot.slane %v6765_v21, %v8968_v29  ;;  %v6780_v56 = vrot.slane %v8072_v15, %v8968_v29  ;;  %v6781_v32 = vcombine.low %v6018_v11, %v6025_v19  ;;  %v8073_v58 = vcombine.high %v6018_v11, %v6025_v19 }
 0x2ec   : > { %v6074_v48 = vrot.slane %v6060_v27, %v8970_v24  ;;  %v6814_v55 = vcombine.low %v6052_v17, %v6059_v33  ;;  %v8074_v38 = vcombine.high %v6052_v17, %v6059_v33  ;;  %v1392_v39 = vcombine.high %v1088_v1, %v8966_v28  ;;  %v9048_v17 = vpop.permute.xlu1 %1030 }
 0x2ed   : > { %v6788_v61 = vrot.slane %v6781_v32, %v8968_v29  ;;  %v6796_v25 = vrot.slane %v8073_v58, %v8968_v29  ;;  %v6797_v9 = vcombine.low %v6772_v49, %v6780_v56  ;;  %v9043_v62 = vrot.slane %v1088_v1, %v8968_v29  ;;  %v9054_v1 = vpop.permute.xlu0 %3411 }
 0x2ee   : > { %v6821_v21 = vrot.slane %v6814_v55, %v8968_v29  ;;  %v6829_v15 = vrot.slane %v8074_v38, %v8968_v29  ;;  %v6830_v11 = vcombine.low %v6067_v22, %v6074_v48  ;;  %v8075_v19 = vcombine.high %v6067_v22, %v6074_v48 }
 0x2ef   : > { %v6804_v33 = vrot.slane %v6797_v9, %v8970_v24  ;;  %v6805_v27 = vcombine.low %v6788_v61, %v6796_v25  ;;  %v9052_v32 = vrot.slane %v1392_v39, %v8968_v29  ;;  %v1073_v49 = vshrl.u32 %v1045_v23, 16 }
 0x2f0   : > { %v6837_v56 = vrot.slane %v6830_v11, %v8968_v29  ;;  %v6845_v58 = vrot.slane %v8075_v19, %v8968_v29  ;;  %v6846_v55 = vcombine.low %v6821_v21, %v6829_v15  ;;  %v1209_v22 = vcombine.high %v1070_v3, %v8966_v28 }
 0x2f1   : > { %v6812_v48 = vrot.slane %v6805_v27, %v8970_v24  ;;  %v1074_v38 = vpack.i.b16 %v1073_v49, %v1072_v20  ;;  %v1216_v9 = vrot.slane %v1070_v3, %v8968_v29  ;;  %v1094_v25 = vshrl.u32 %v9048_v17, 16 }
 0x2f2   : > { %v6853_v61 = vrot.slane %v6846_v55, %v8970_v24  ;;  %v6854_v23 = vcombine.low %v6837_v56, %v6845_v58  ;;  %v1223_v39 = vrot.slane %v1209_v22, %v8968_v29  ;;  %v9071_v21 = vpack.i.b16 %v9054_v1, %v8808_v0 }
 0x2f3   : > { %v6813_v15 = vcombine.low %v6804_v33, %v6812_v48  ;;  %v1224_v20 = vcombine.low %v8998_v4, %v1216_v9  ;;  %v1225_v3 = vcombine.high %v8998_v4, %v1216_v9  ;;  %v1275_v11 = vcombine.high %v1074_v38, %v8966_v28 }
 0x2f4   : > { %v6861_v19 = vrot.slane %v6854_v23, %v8970_v24  ;;  %v1240_v27 = vcombine.low %v9001_v6, %v1223_v39  ;;  %v1241_v49 = vcombine.high %v9001_v6, %v1223_v39  ;;  %v1282_v56 = vrot.slane %v1074_v38, %v8968_v29 }
 0x2f5   : > { %v7460_v58 = vshrl.u32 %v6813_v15, 16  ;;  %v1232_v55 = vrot.slane %v1224_v20, %v8970_v24  ;;  %v1239_v22 = vrot.slane %v1225_v3, %v8970_v24  ;;  %v1289_v33 = vrot.slane %v1275_v11, %v8968_v29 }
 0x2f6   : > { %v6862_v48 = vcombine.low %v6853_v61, %v6861_v19  ;;  %v1248_v4 = vrot.slane %v1240_v27, %v8970_v24  ;;  %v1255_v9 = vrot.slane %v1241_v49, %v8970_v24  ;;  %v1290_v23 = vcombine.low %v9006_v16, %v1282_v56 }
 0x2f7   : > { %v1291_v12 = vcombine.high %v9006_v16, %v1282_v56  ;;  %v1306_v6 = vcombine.low %v9009_v18, %v1289_v33  ;;  %v1307_v38 = vcombine.high %v9009_v18, %v1289_v33  ;;  %v2250_v39 = vcombine.low %v1232_v55, %v1239_v22 }
 0x2f8   : > { %v7459_v20 = vpack.i.b16 %v6862_v48, %v6813_v15  ;;  %v7461_v57 = vshrl.u32 %v6862_v48, 16  ;;  %v1298_v3 = vrot.slane %v1290_v23, %v8970_v24  ;;  %v7876_v11 = vcombine.high %v1232_v55, %v1239_v22 }
 0x2f9   : > { %v1305_v61 = vrot.slane %v1291_v12, %v8970_v24  ;;  %v1314_v16 = vrot.slane %v1306_v6, %v8970_v24  ;;  %v1321_v19 = vrot.slane %v1307_v38, %v8970_v24  ;;  %v2257_v18 = vrot.slane %v2250_v39, %v8968_v29 }
 0x2fa   : > { %v7462_v15 = vpack.i.b16 %v7461_v57, %v7460_v58  ;;  %v8102_v27 = vcombine.low %v7459_v20, %v7459_v20  ;;  %v8103_v49 = vcombine.high %v7459_v20, %v7459_v20  ;;  %v2265_v56 = vrot.slane %v7876_v11, %v8968_v29  ;;  %v1047_v20 = vpop.permute.xlu1 %1046 }
 0x2fb   : > { %v2266_v55 = vcombine.low %v1248_v4, %v1255_v9  ;;  %v7877_v22 = vcombine.high %v1248_v4, %v1255_v9  ;;  %v2300_v33 = vcombine.low %v1298_v3, %v1305_v61  ;;  %v7878_v48 = vcombine.high %v1298_v3, %v1305_v61  ;;  %v9116_v61 = vpop.permute.xlu0 %3427 }
 0x2fc   : > { %v8118_v23 = vcombine.low %v7462_v15, %v7462_v15  ;;  %v8119_v51 = vcombine.high %v7462_v15, %v7462_v15  ;;  %7598 = vst.msk [vmem:[%s9094_s17 + $0x8] sm:$0xf] %vm7595_vm0, %v8102_v27  ;;  %7599 = vst.msk [vmem:[%s9094_s17 + $0xc] sm:$0xf] %vm7595_vm0, %v8103_v49  ;;  %v2282_v12 = vcombine.low %v2257_v18, %v2265_v56  ;;  %v3464_v11 = vshrl.u32 %v9054_v1, 16 }
 0x2fd   : > { %v2316_v6 = vcombine.low %v1314_v16, %v1321_v19  ;;  %v2273_v57 = vrot.slane %v2266_v55, %v8968_v29  ;;  %v2281_v58 = vrot.slane %v7877_v22, %v8968_v29  ;;  %v2307_v38 = vrot.slane %v2300_v33, %v8968_v29 }
 0x2fe   : > { %v2315_v39 = vrot.slane %v7878_v48, %v8968_v29  ;;  %7614 = vst.msk [vmem:[%s9094_s17 + $0x48] sm:$0xf] %vm7595_vm0, %v8118_v23  ;;  %7615 = vst.msk [vmem:[%s9094_s17 + $0x4c] sm:$0xf] %vm7595_vm0, %v8119_v51  ;;  %v2289_v4 = vrot.slane %v2282_v12, %v8970_v24  ;;  %v7879_v3 = vcombine.high %v1314_v16, %v1321_v19  ;;  %v1095_v19 = vshrl.u32 %v1047_v20, 16 }
 0x2ff   : > { %v2323_v9 = vrot.slane %v2316_v6, %v8968_v29  ;;  %v2290_v18 = vcombine.low %v2273_v57, %v2281_v58  ;;  %v3587_v27 = vcombine.high %v9071_v21, %v8966_v28  ;;  %v9122_v49 = vrot.slane %v9071_v21, %v8968_v29 }
 0x300   : > { %v2332_v15 = vcombine.low %v2307_v38, %v2315_v39  ;;  %v2331_v51 = vrot.slane %v7879_v3, %v8968_v29  ;;  %v3465_v56 = vpack.i.b16 %v3464_v11, %v3463_v37  ;;  %v1092_v16 = vpack.i.b16 %v1047_v20, %v9048_v17 }
 0x301   : > { %v2297_v1 = vrot.slane %v2290_v18, %v8970_v24  ;;  %v9131_v22 = vrot.slane %v3587_v27, %v8968_v29  ;;  %v3471_v33 = vshrl.u32 %v9116_v61, 16  ;;  %v1096_v37 = vpack.i.b16 %v1095_v19, %v1094_v25 }
 0x302   : > { %v2339_v55 = vrot.slane %v2332_v15, %v8970_v24  ;;  %v2340_v21 = vcombine.low %v2323_v9, %v2331_v51  ;;  %v3653_v48 = vcombine.high %v3465_v56, %v8966_v28  ;;  %v9136_v0 = vrot.slane %v3465_v56, %v8968_v29 }
 0x303   : > { %v2298_v23 = vcombine.low %v2289_v4, %v2297_v1  ;;  %v2299_v12 = vcombine.high %v2289_v4, %v2297_v1  ;;  %v1341_v6 = vcombine.high %v1092_v16, %v8966_v28  ;;  %v1348_v57 = vrot.slane %v1092_v16, %v8968_v29 }
 0x304   : > { %v2347_v58 = vrot.slane %v2340_v21, %v8970_v24  ;;  %v9144_v38 = vrot.slane %v3653_v48, %v8968_v29  ;;  %v1407_v39 = vcombine.high %v1096_v37, %v8966_v28  ;;  %v1414_v20 = vrot.slane %v1096_v37, %v8968_v29 }
 0x305   : > { %v3053_v9 = vshrl.u32 %v2298_v23, 16  ;;  %v3059_v3 = vshrl.u32 %v2299_v12, 16  ;;  %v1355_v17 = vrot.slane %v1341_v6, %v8968_v29  ;;  %v1356_v25 = vcombine.low %v9028_v52, %v1348_v57 }
 0x306   : > { %v2348_v4 = vcombine.low %v2339_v55, %v2347_v58  ;;  %v2349_v11 = vcombine.high %v2339_v55, %v2347_v58  ;;  %v1357_v18 = vcombine.high %v9028_v52, %v1348_v57  ;;  %v1421_v15 = vrot.slane %v1407_v39, %v8968_v29 }
 0x307   : > { %v1364_v27 = vrot.slane %v1356_v25, %v8970_v24  ;;  %v1372_v51 = vcombine.low %v9034_v35, %v1355_v17  ;;  %v1373_v56 = vcombine.high %v9034_v35, %v1355_v17  ;;  %v1422_v16 = vcombine.low %v9043_v62, %v1414_v20 }
 0x308   : > { %v3052_v19 = vpack.i.b16 %v2348_v4, %v2298_v23  ;;  %v3054_v1 = vshrl.u32 %v2348_v4, 16  ;;  %v3058_v21 = vpack.i.b16 %v2349_v11, %v2299_v12  ;;  %v3060_v48 = vshrl.u32 %v2349_v11, 16 }
 0x309   : > { %v1371_v52 = vrot.slane %v1357_v18, %v8970_v24  ;;  %v1380_v55 = vrot.slane %v1372_v51, %v8970_v24  ;;  %v1387_v35 = vrot.slane %v1373_v56, %v8970_v24  ;;  %v1423_v37 = vcombine.high %v9043_v62, %v1414_v20 }
 0x30a   : > { %v3055_v23 = vpack.i.b16 %v3054_v1, %v3053_v9  ;;  %v3061_v12 = vpack.i.b16 %v3060_v48, %v3059_v3  ;;  %v7908_v6 = vcombine.low %v3052_v19, %v3052_v19  ;;  %v7909_v57 = vcombine.high %v3052_v19, %v3052_v19 }
 0x30b   : > { %v7940_v58 = vcombine.low %v3058_v21, %v3058_v21  ;;  %v7941_v39 = vcombine.high %v3058_v21, %v3058_v21  ;;  %v1430_v17 = vrot.slane %v1422_v16, %v8970_v24  ;;  %v1437_v25 = vrot.slane %v1423_v37, %v8970_v24  ;;  %v3414_v21 = vpop.permute.xlu1 %3413 }
 0x30c   : > { %v7924_v4 = vcombine.low %v3055_v23, %v3055_v23  ;;  %v7925_v11 = vcombine.high %v3055_v23, %v3055_v23  ;;  %v7956_v18 = vcombine.low %v3061_v12, %v3061_v12  ;;  %v7957_v51 = vcombine.high %v3061_v12, %v3061_v12  ;;  %3339 = vst.msk [vmem:[%s9162_s11] sm:$0xf] %vm3338_vm1, %v7908_v6 }
 0x30d   : > { %3340 = vst.msk [vmem:[%s9162_s11 + $0x4] sm:$0xf] %vm3338_vm1, %v7909_v57  ;;  %3371 = vst.msk [vmem:[%s9162_s11 + $0x80] sm:$0xf] %vm3338_vm1, %v7940_v58  ;;  %v1438_v62 = vcombine.low %v9052_v32, %v1421_v15  ;;  %v1439_v20 = vcombine.high %v9052_v32, %v1421_v15  ;;  %v2350_v9 = vcombine.low %v1364_v27, %v1371_v52 }
 0x30e   : > { %3372 = vst.msk [vmem:[%s9162_s11 + $0x84] sm:$0xf] %vm3338_vm1, %v7941_v39  ;;  %v7880_v3 = vcombine.high %v1364_v27, %v1371_v52  ;;  %3355 = vst.msk [vmem:[%s9162_s11 + $0x40] sm:$0xf] %vm3338_vm1, %v7924_v4  ;;  %v2366_v56 = vcombine.low %v1380_v55, %v1387_v35  ;;  %v7881_v16 = vcombine.high %v1380_v55, %v1387_v35  ;;  %v3444_v27 = vpop.permute.xlu0 %3443 }
 0x30f   : > { %3356 = vst.msk [vmem:[%s9162_s11 + $0x44] sm:$0xf] %vm3338_vm1, %v7925_v11  ;;  %3387 = vst.msk [vmem:[%s9162_s11 + $0xc0] sm:$0xf] %vm3338_vm1, %v7956_v18  ;;  %v2400_v19 = vcombine.low %v1430_v17, %v1437_v25  ;;  %v7882_v1 = vcombine.high %v1430_v17, %v1437_v25  ;;  %v1446_v48 = vrot.slane %v1438_v62, %v8970_v24  ;;  %v3480_v25 = vshrl.u32 %v3414_v21, 16 }
 0x310   : > { %3388 = vst.msk [vmem:[%s9162_s11 + $0xc4] sm:$0xf] %vm3338_vm1, %v7957_v51  ;;  %v1453_v37 = vrot.slane %v1439_v20, %v8970_v24  ;;  %v2357_v32 = vrot.slane %v2350_v9, %v8968_v29  ;;  %v2365_v15 = vrot.slane %v7880_v3, %v8968_v29  ;;  %v2373_v52 = vrot.slane %v2366_v56, %v8968_v29 }
 0x311   : > { %v2381_v23 = vrot.slane %v7881_v16, %v8968_v29  ;;  %v2407_v12 = vrot.slane %v2400_v19, %v8968_v29  ;;  %v2415_v55 = vrot.slane %v7882_v1, %v8968_v29  ;;  %v3477_v58 = vpack.i.b16 %v3414_v21, %v8822_v40 }
 0x312   : > { %v2382_v35 = vcombine.low %v2357_v32, %v2365_v15  ;;  %v2416_v6 = vcombine.low %v1446_v48, %v1453_v37  ;;  %v7883_v57 = vcombine.high %v1446_v48, %v1453_v37  ;;  %v3469_v4 = vpack.i.b16 %v3444_v27, %v9116_v61  ;;  %v9213_v48 = vpop.permute.xlu1 %3429 }
 0x313   : > { %v2390_v39 = vcombine.low %v2373_v52, %v2381_v23  ;;  %v2432_v17 = vcombine.low %v2407_v12, %v2415_v55  ;;  %v3719_v62 = vcombine.high %v3477_v58, %v8966_v28  ;;  %v3481_v3 = vpack.i.b16 %v3480_v25, %v3479_v43 }
 0x314   : > { %v2389_v11 = vrot.slane %v2382_v35, %v8970_v24  ;;  %v2423_v18 = vrot.slane %v2416_v6, %v8968_v29  ;;  %v2431_v51 = vrot.slane %v7883_v57, %v8968_v29  ;;  %v9207_v56 = vrot.slane %v3477_v58, %v8968_v29 }
 0x315   : > { %v2397_v20 = vrot.slane %v2390_v39, %v8970_v24  ;;  %v2439_v9 = vrot.slane %v2432_v17, %v8970_v24  ;;  %v9210_v19 = vrot.slane %v3719_v62, %v8968_v29  ;;  %v3472_v1 = vshrl.u32 %v3444_v27, 16 }
 0x316   : > { %v2440_v16 = vcombine.low %v2423_v18, %v2431_v51  ;;  %v3602_v21 = vcombine.high %v3469_v4, %v8966_v28  ;;  %v3785_v15 = vcombine.high %v3481_v3, %v8966_v28  ;;  %v9217_v52 = vrot.slane %v3481_v3, %v8968_v29 }
 0x317   : > { %v2398_v37 = vcombine.low %v2389_v11, %v2397_v20  ;;  %v2399_v32 = vcombine.high %v2389_v11, %v2397_v20  ;;  %v3473_v43 = vpack.i.b16 %v3472_v1, %v3471_v33  ;;  %v3609_v23 = vrot.slane %v3469_v4, %v8968_v29 }
 0x318   : > { %v2447_v40 = vrot.slane %v2440_v16, %v8970_v24  ;;  %v3616_v27 = vrot.slane %v3602_v21, %v8968_v29  ;;  %v9225_v35 = vrot.slane %v3785_v15, %v8968_v29  ;;  %v3487_v6 = vshrl.u32 %v9213_v48, 16 }
 0x319   : > { %v3065_v12 = vshrl.u32 %v2398_v37, 16  ;;  %v3071_v55 = vshrl.u32 %v2399_v32, 16  ;;  %v3617_v39 = vcombine.low %v9122_v49, %v3609_v23  ;;  %v3618_v17 = vcombine.high %v9122_v49, %v3609_v23 }
 0x31a   : > { %v2448_v57 = vcombine.low %v2439_v9, %v2447_v40  ;;  %v2449_v58 = vcombine.high %v2439_v9, %v2447_v40  ;;  %v3633_v61 = vcombine.low %v9131_v22, %v3616_v27  ;;  %v3634_v33 = vcombine.high %v9131_v22, %v3616_v27 }
 0x31b   : > { %v3668_v25 = vcombine.high %v3473_v43, %v8966_v28  ;;  %v3675_v4 = vrot.slane %v3473_v43, %v8968_v29  ;;  %v3625_v20 = vrot.slane %v3617_v39, %v8970_v24  ;;  %v3632_v9 = vrot.slane %v3618_v17, %v8970_v24 }
 0x31c   : > { %v3064_v11 = vpack.i.b16 %v2448_v57, %v2398_v37  ;;  %v3066_v18 = vshrl.u32 %v2448_v57, 16  ;;  %v3070_v51 = vpack.i.b16 %v2449_v58, %v2399_v32  ;;  %v3072_v62 = vshrl.u32 %v2449_v58, 16 }
 0x31d   : > { %v3641_v49 = vrot.slane %v3633_v61, %v8970_v24  ;;  %v3648_v3 = vrot.slane %v3634_v33, %v8970_v24  ;;  %v3682_v32 = vrot.slane %v3668_v25, %v8968_v29  ;;  %v3683_v40 = vcombine.low %v9136_v0, %v3675_v4 }
 0x31e   : > { %v3067_v22 = vpack.i.b16 %v3066_v18, %v3065_v12  ;;  %v3073_v16 = vpack.i.b16 %v3072_v62, %v3071_v55  ;;  %v7910_v1 = vcombine.low %v3064_v11, %v3064_v11  ;;  %v7911_v21 = vcombine.high %v3064_v11, %v3064_v11  ;;  %v5804_v12 = vpop.permute.xlu0 %5803 }
 0x31f   : > { %v7942_v37 = vcombine.low %v3070_v51, %v3070_v51  ;;  %v7943_v15 = vcombine.high %v3070_v51, %v3070_v51  ;;  %v3684_v55 = vcombine.high %v9136_v0, %v3675_v4  ;;  %v3691_v58 = vrot.slane %v3683_v40, %v8970_v24 }
 0x320   : > { %v7926_v43 = vcombine.low %v3067_v22, %v3067_v22  ;;  %v7927_v23 = vcombine.high %v3067_v22, %v3067_v22  ;;  %v7958_v27 = vcombine.low %v3073_v16, %v3073_v16  ;;  %v7959_v57 = vcombine.high %v3073_v16, %v3073_v16  ;;  %3341 = vst.msk [vmem:[%s9162_s11 + $0x8] sm:$0xf] %vm3338_vm1, %v7910_v1 }
 0x321   : > { %3342 = vst.msk [vmem:[%s9162_s11 + $0xc] sm:$0xf] %vm3338_vm1, %v7911_v21  ;;  %3373 = vst.msk [vmem:[%s9162_s11 + $0x88] sm:$0xf] %vm3338_vm1, %v7942_v37  ;;  %v3699_v39 = vcombine.low %v9144_v38, %v3682_v32  ;;  %v3700_v17 = vcombine.high %v9144_v38, %v3682_v32  ;;  %v4643_v61 = vcombine.low %v3625_v20, %v3632_v9  ;;  %v5824_v37 = vshrl.u32 %v5804_v12, 16  ;;  %v9269_v32 = vpop.permute.xlu1 %3445 }
 0x322   : > { %3374 = vst.msk [vmem:[%s9162_s11 + $0x8c] sm:$0xf] %vm3338_vm1, %v7943_v15  ;;  %3357 = vst.msk [vmem:[%s9162_s11 + $0x48] sm:$0xf] %vm3338_vm1, %v7926_v43  ;;  %v7972_v33 = vcombine.high %v3625_v20, %v3632_v9  ;;  %v4659_v25 = vcombine.low %v3641_v49, %v3648_v3  ;;  %v7973_v11 = vcombine.high %v3641_v49, %v3648_v3 }
 0x323   : > { %3358 = vst.msk [vmem:[%s9162_s11 + $0x4c] sm:$0xf] %vm3338_vm1, %v7927_v23  ;;  %3389 = vst.msk [vmem:[%s9162_s11 + $0xc8] sm:$0xf] %vm3338_vm1, %v7958_v27  ;;  %v3698_v0 = vrot.slane %v3684_v55, %v8970_v24  ;;  %v3707_v4 = vrot.slane %v3699_v39, %v8970_v24  ;;  %v3714_v18 = vrot.slane %v3700_v17, %v8970_v24 }
 0x324   : > { %3390 = vst.msk [vmem:[%s9162_s11 + $0xcc] sm:$0xf] %vm3338_vm1, %v7959_v57  ;;  %v5821_v38 = vpack.i.b16 %v5804_v12, %v8814_v7  ;;  %v4650_v51 = vrot.slane %v4643_v61, %v8968_v29  ;;  %v4658_v62 = vrot.slane %v7972_v33, %v8968_v29  ;;  %v4666_v22 = vrot.slane %v4659_v25, %v8968_v29 }
 0x325   : > { %v4674_v16 = vrot.slane %v7973_v11, %v8968_v29  ;;  %v4693_v1 = vcombine.low %v3691_v58, %v3698_v0  ;;  %v7974_v20 = vcombine.high %v3691_v58, %v3698_v0  ;;  %v4709_v9 = vcombine.low %v3707_v4, %v3714_v18 }
 0x326   : > { %v7975_v49 = vcombine.high %v3707_v4, %v3714_v18  ;;  %v4675_v3 = vcombine.low %v4650_v51, %v4658_v62  ;;  %v5883_v15 = vcombine.high %v5821_v38, %v8966_v28  ;;  %v5825_v58 = vpack.i.b16 %v5824_v37, %v5823_v41 }
 0x327   : > { %v4683_v21 = vcombine.low %v4666_v22, %v4674_v16  ;;  %v4700_v40 = vrot.slane %v4693_v1, %v8968_v29  ;;  %v4708_v43 = vrot.slane %v7974_v20, %v8968_v29  ;;  %v4716_v23 = vrot.slane %v4709_v9, %v8968_v29 }
 0x328   : > { %v4724_v27 = vrot.slane %v7975_v49, %v8968_v29  ;;  %v4682_v57 = vrot.slane %v4675_v3, %v8970_v24  ;;  %v5890_v12 = vrot.slane %v5821_v38, %v8968_v29  ;;  %v5897_v61 = vrot.slane %v5883_v15, %v8968_v29 }
 0x329   : > { %v4690_v55 = vrot.slane %v4683_v21, %v8970_v24  ;;  %v4725_v39 = vcombine.low %v4700_v40, %v4708_v43  ;;  %v9283_v33 = vpack.i.b16 %v9269_v32, %v9213_v48  ;;  %v5932_v16 = vcombine.high %v5825_v58, %v8966_v28 }
 0x32a   : > { %v4733_v17 = vcombine.low %v4716_v23, %v4724_v27  ;;  %v5898_v0 = vcombine.high %v5890_v12, %v8446_v46  ;;  %v5905_v4 = vrot.slane %v5890_v12, %v8970_v24  ;;  %v5913_v41 = vcombine.high %v5897_v61, %v8446_v46 }
 0x32b   : > { %v4691_v25 = vcombine.low %v4682_v57, %v4690_v55  ;;  %v4692_v11 = vcombine.high %v4682_v57, %v4690_v55  ;;  %v4732_v18 = vrot.slane %v4725_v39, %v8970_v24  ;;  %v5920_v38 = vrot.slane %v5897_v61, %v8970_v24 }
 0x32c   : > { %v4740_v7 = vrot.slane %v4733_v17, %v8970_v24  ;;  %v5912_v22 = vrot.slane %v5898_v0, %v8970_v24  ;;  %v5927_v9 = vrot.slane %v5913_v41, %v8970_v24  ;;  %v5939_v49 = vrot.slane %v5825_v58, %v8968_v29 }
 0x32d   : > { %v5446_v51 = vshrl.u32 %v4691_v25, 16  ;;  %v5452_v62 = vshrl.u32 %v4692_v11, 16  ;;  %v5946_v3 = vrot.slane %v5932_v16, %v8968_v29  ;;  %v3488_v15 = vshrl.u32 %v9269_v32, 16 }
 0x32e   : > { %v4741_v1 = vcombine.low %v4732_v18, %v4740_v7  ;;  %v4742_v20 = vcombine.high %v4732_v18, %v4740_v7  ;;  %v6667_v21 = vcombine.low %v5905_v4, %v5912_v22  ;;  %v8068_v37 = vcombine.high %v5905_v4, %v5912_v22 }
 0x32f   : > { %v5947_v57 = vcombine.high %v5939_v49, %v8446_v46  ;;  %v5954_v55 = vrot.slane %v5939_v49, %v8970_v24  ;;  %v5962_v58 = vcombine.high %v5946_v3, %v8446_v46  ;;  %v5969_v32 = vrot.slane %v5946_v3, %v8970_v24 }
 0x330   : > { %v5445_v40 = vpack.i.b16 %v4741_v1, %v4691_v25  ;;  %v5447_v43 = vshrl.u32 %v4741_v1, 16  ;;  %v5451_v23 = vpack.i.b16 %v4742_v20, %v4692_v11  ;;  %v5453_v27 = vshrl.u32 %v4742_v20, 16 }
 0x331   : > { %v5961_v0 = vrot.slane %v5947_v57, %v8970_v24  ;;  %v5976_v4 = vrot.slane %v5962_v58, %v8970_v24  ;;  %v6683_v16 = vcombine.low %v5920_v38, %v5927_v9  ;;  %v8069_v1 = vcombine.high %v5920_v38, %v5927_v9 }
 0x332   : > { %v5448_v12 = vpack.i.b16 %v5447_v43, %v5446_v51  ;;  %v5454_v39 = vpack.i.b16 %v5453_v27, %v5452_v62  ;;  %v8004_v17 = vcombine.low %v5445_v40, %v5445_v40  ;;  %v8005_v61 = vcombine.high %v5445_v40, %v5445_v40 }
 0x333   : > { %v8036_v25 = vcombine.low %v5451_v23, %v5451_v23  ;;  %v8037_v11 = vcombine.high %v5451_v23, %v5451_v23  ;;  %v6674_v51 = vrot.slane %v6667_v21, %v8968_v29  ;;  %v6682_v62 = vrot.slane %v8068_v37, %v8968_v29 }
 0x334   : > { %v8020_v18 = vcombine.low %v5448_v12, %v5448_v12  ;;  %v8021_v7 = vcombine.high %v5448_v12, %v5448_v12  ;;  %v8052_v41 = vcombine.low %v5454_v39, %v5454_v39  ;;  %v8053_v22 = vcombine.high %v5454_v39, %v5454_v39  ;;  %5731 = vst.msk [vmem:[%s9302_s28] sm:$0xf] %vm3338_vm1, %v8004_v17 }
 0x335   : > { %5732 = vst.msk [vmem:[%s9302_s28 + $0x4] sm:$0xf] %vm3338_vm1, %v8005_v61  ;;  %5763 = vst.msk [vmem:[%s9302_s28 + $0x80] sm:$0xf] %vm3338_vm1, %v8036_v25  ;;  %v6716_v20 = vcombine.low %v5954_v55, %v5961_v0  ;;  %v8070_v49 = vcombine.high %v5954_v55, %v5961_v0  ;;  %v6732_v3 = vcombine.low %v5969_v32, %v5976_v4 }
 0x336   : > { %5764 = vst.msk [vmem:[%s9302_s28 + $0x84] sm:$0xf] %vm3338_vm1, %v8037_v11  ;;  %5747 = vst.msk [vmem:[%s9302_s28 + $0x40] sm:$0xf] %vm3338_vm1, %v8020_v18  ;;  %v8071_v40 = vcombine.high %v5969_v32, %v5976_v4  ;;  %v6690_v43 = vrot.slane %v6683_v16, %v8968_v29  ;;  %v6698_v21 = vrot.slane %v8069_v1, %v8968_v29 }
 0x337   : > { %5748 = vst.msk [vmem:[%s9302_s28 + $0x44] sm:$0xf] %vm3338_vm1, %v8021_v7  ;;  %5779 = vst.msk [vmem:[%s9302_s28 + $0xc0] sm:$0xf] %vm3338_vm1, %v8052_v41  ;;  %v6699_v23 = vcombine.low %v6674_v51, %v6682_v62  ;;  %v3489_v38 = vpack.i.b16 %v3488_v15, %v3487_v6  ;;  %v6723_v9 = vrot.slane %v6716_v20, %v8968_v29 }
 0x338   : > { %5780 = vst.msk [vmem:[%s9302_s28 + $0xc4] sm:$0xf] %vm3338_vm1, %v8053_v22  ;;  %v6731_v37 = vrot.slane %v8070_v49, %v8968_v29  ;;  %v6739_v27 = vrot.slane %v6732_v3, %v8968_v29  ;;  %v6747_v57 = vrot.slane %v8071_v40, %v8968_v29  ;;  %v6707_v58 = vcombine.low %v6690_v43, %v6698_v21 }
 0x339   : > { %v6706_v55 = vrot.slane %v6699_v23, %v8970_v24  ;;  %v3734_v32 = vcombine.high %v9283_v33, %v8966_v28  ;;  %v3741_v12 = vrot.slane %v9283_v33, %v8968_v29  ;;  %v3800_v6 = vcombine.high %v3489_v38, %v8966_v28 }
 0x33a   : > { %v6748_v39 = vcombine.low %v6723_v9, %v6731_v37  ;;  %v6756_v48 = vcombine.low %v6739_v27, %v6747_v57  ;;  %v3807_v15 = vrot.slane %v3489_v38, %v8968_v29  ;;  %v6714_v17 = vrot.slane %v6707_v58, %v8970_v24 }
 0x33b   : > { %v3748_v61 = vrot.slane %v3734_v32, %v8968_v29  ;;  %v3749_v25 = vcombine.low %v9207_v56, %v3741_v12  ;;  %v3750_v11 = vcombine.high %v9207_v56, %v3741_v12  ;;  %v3814_v33 = vrot.slane %v3800_v6, %v8968_v29 }
 0x33c   : > { %v6755_v0 = vrot.slane %v6748_v39, %v8970_v24  ;;  %v6763_v4 = vrot.slane %v6756_v48, %v8970_v24  ;;  %v3815_v18 = vcombine.low %v9217_v52, %v3807_v15  ;;  %v6715_v7 = vcombine.low %v6706_v55, %v6714_v17  ;;  %v5808_v48 = vpop.permute.xlu0 %5807 }
 0x33d   : > { %v3757_v41 = vrot.slane %v3749_v25, %v8970_v24  ;;  %v3764_v22 = vrot.slane %v3750_v11, %v8970_v24  ;;  %v3765_v51 = vcombine.low %v9210_v19, %v3748_v61  ;;  %v3766_v16 = vcombine.high %v9210_v19, %v3748_v61  ;;  %v9371_v25 = vpop.permute.xlu1 %5809 }
 0x33e   : > { %v6764_v62 = vcombine.low %v6755_v0, %v6763_v4  ;;  %v3816_v56 = vcombine.high %v9217_v52, %v3807_v15  ;;  %v3823_v1 = vrot.slane %v3815_v18, %v8970_v24  ;;  %v7454_v20 = vshrl.u32 %v6715_v7, 16 }
 0x33f   : > { %v3773_v49 = vrot.slane %v3765_v51, %v8970_v24  ;;  %v3831_v3 = vcombine.low %v9225_v35, %v3814_v33  ;;  %v3832_v40 = vcombine.high %v9225_v35, %v3814_v33  ;;  %v3780_v23 = vrot.slane %v3766_v16, %v8970_v24 }
 0x340   : > { %v7453_v43 = vpack.i.b16 %v6764_v62, %v6715_v7  ;;  %v7455_v21 = vshrl.u32 %v6764_v62, 16  ;;  %v3830_v38 = vrot.slane %v3816_v56, %v8970_v24  ;;  %v4743_v9 = vcombine.low %v3757_v41, %v3764_v22 }
 0x341   : > { %v3839_v19 = vrot.slane %v3831_v3, %v8970_v24  ;;  %v3846_v52 = vrot.slane %v3832_v40, %v8970_v24  ;;  %v7976_v37 = vcombine.high %v3757_v41, %v3764_v22  ;;  %v4759_v58 = vcombine.low %v3773_v49, %v3780_v23 }
 0x342   : > { %v7456_v27 = vpack.i.b16 %v7455_v21, %v7454_v20  ;;  %v8100_v57 = vcombine.low %v7453_v43, %v7453_v43  ;;  %v8101_v55 = vcombine.high %v7453_v43, %v7453_v43  ;;  %v4750_v35 = vrot.slane %v4743_v9, %v8968_v29 }
 0x343   : > { %v4758_v32 = vrot.slane %v7976_v37, %v8968_v29  ;;  %v7977_v12 = vcombine.high %v3773_v49, %v3780_v23  ;;  %v4793_v39 = vcombine.low %v3823_v1, %v3830_v38  ;;  %v4766_v17 = vrot.slane %v4759_v58, %v8968_v29 }
 0x344   : > { %v8116_v6 = vcombine.low %v7456_v27, %v7456_v27  ;;  %v8117_v15 = vcombine.high %v7456_v27, %v7456_v27  ;;  %7596 = vst.msk [vmem:[%s9094_s17] sm:$0xf] %vm7595_vm0, %v8100_v57  ;;  %7597 = vst.msk [vmem:[%s9094_s17 + $0x4] sm:$0xf] %vm7595_vm0, %v8101_v55  ;;  %v7978_v61 = vcombine.high %v3823_v1, %v3830_v38  ;;  %v5840_v22 = vshrl.u32 %v5808_v48, 16 }
 0x345   : > { %v4774_v11 = vrot.slane %v7977_v12, %v8968_v29  ;;  %v4775_v0 = vcombine.low %v4750_v35, %v4758_v32  ;;  %v4800_v4 = vrot.slane %v4793_v39, %v8968_v29  ;;  %v4809_v33 = vcombine.low %v3839_v19, %v3846_v52 }
 0x346   : > { %7612 = vst.msk [vmem:[%s9094_s17 + $0x40] sm:$0xf] %vm7595_vm0, %v8116_v6  ;;  %7613 = vst.msk [vmem:[%s9094_s17 + $0x44] sm:$0xf] %vm7595_vm0, %v8117_v15  ;;  %v4808_v18 = vrot.slane %v7978_v61, %v8968_v29  ;;  %v7979_v7 = vcombine.high %v3839_v19, %v3846_v52  ;;  %v5837_v41 = vpack.i.b16 %v5808_v48, %v8830_v26  ;;  %v5848_v21 = vshrl.u32 %v9371_v25, 16 }
 0x347   : > { %v4782_v51 = vrot.slane %v4775_v0, %v8970_v24  ;;  %v4783_v62 = vcombine.low %v4766_v17, %v4774_v11  ;;  %v4816_v16 = vrot.slane %v4809_v33, %v8968_v29  ;;  %v9385_v56 = vpack.i.b16 %v9371_v25, %v8828_v47 }
 0x348   : > { %v4824_v1 = vrot.slane %v7979_v7, %v8968_v29  ;;  %v4825_v20 = vcombine.low %v4800_v4, %v4808_v18  ;;  %v5841_v49 = vpack.i.b16 %v5840_v22, %v5839_v2  ;;  %v6079_v3 = vcombine.high %v5837_v41, %v8966_v28 }
 0x349   : > { %v4790_v40 = vrot.slane %v4783_v62, %v8970_v24  ;;  %v6086_v43 = vrot.slane %v5837_v41, %v8968_v29  ;;  %v6177_v23 = vcombine.high %v9385_v56, %v8966_v28 }
 0x34a   : > { %v4832_v38 = vrot.slane %v4825_v20, %v8970_v24  ;;  %v4833_v19 = vcombine.low %v4816_v16, %v4824_v1  ;;  %v6093_v52 = vrot.slane %v6079_v3, %v8968_v29  ;;  %v6128_v9 = vcombine.high %v5841_v49, %v8966_v28 }
 0x34b   : > { %v4791_v26 = vcombine.low %v4782_v51, %v4790_v40  ;;  %v4792_v2 = vcombine.high %v4782_v51, %v4790_v40  ;;  %v6094_v37 = vcombine.high %v6086_v43, %v8446_v46  ;;  %v6101_v27 = vrot.slane %v6086_v43, %v8970_v24 }
 0x34c   : > { %v4840_v57 = vrot.slane %v4833_v19, %v8970_v24  ;;  %v6109_v55 = vcombine.high %v6093_v52, %v8446_v46  ;;  %v6116_v58 = vrot.slane %v6093_v52, %v8970_v24  ;;  %v6135_v35 = vrot.slane %v5841_v49, %v8968_v29 }
 0x34d   : > { %v5458_v32 = vshrl.u32 %v4791_v26, 16  ;;  %v5464_v12 = vshrl.u32 %v4792_v2, 16  ;;  %v6108_v39 = vrot.slane %v6094_v37, %v8970_v24  ;;  %v6142_v48 = vrot.slane %v6128_v9, %v8968_v29 }
 0x34e   : > { %v4841_v6 = vcombine.low %v4832_v38, %v4840_v57  ;;  %v4842_v15 = vcombine.high %v4832_v38, %v4840_v57  ;;  %v6123_v17 = vrot.slane %v6109_v55, %v8970_v24  ;;  %v6143_v61 = vcombine.high %v6135_v35, %v8446_v46 }
 0x34f   : > { %v6150_v25 = vrot.slane %v6135_v35, %v8970_v24  ;;  %v6158_v11 = vcombine.high %v6142_v48, %v8446_v46  ;;  %v6165_v0 = vrot.slane %v6142_v48, %v8970_v24  ;;  %v6863_v4 = vcombine.low %v6101_v27, %v6108_v39 }
 0x350   : > { %v5457_v33 = vpack.i.b16 %v4841_v6, %v4791_v26  ;;  %v5459_v18 = vshrl.u32 %v4841_v6, 16  ;;  %v5463_v7 = vpack.i.b16 %v4842_v15, %v4792_v2  ;;  %v5465_v41 = vshrl.u32 %v4842_v15, 16 }
 0x351   : > { %v6157_v22 = vrot.slane %v6143_v61, %v8970_v24  ;;  %v6172_v51 = vrot.slane %v6158_v11, %v8970_v24  ;;  %v6870_v62 = vrot.slane %v6863_v4, %v8968_v29  ;;  %v8076_v16 = vcombine.high %v6101_v27, %v6108_v39  ;;  %v9450_v4 = vpop.permute.xlu0 %1032 }
 0x352   : > { %v5460_v1 = vpack.i.b16 %v5459_v18, %v5458_v32  ;;  %v5466_v20 = vpack.i.b16 %v5465_v41, %v5464_v12  ;;  %v8006_v49 = vcombine.low %v5457_v33, %v5457_v33  ;;  %v8007_v3 = vcombine.high %v5457_v33, %v5457_v33 }
 0x353   : > { %v8038_v40 = vcombine.low %v5463_v7, %v5463_v7  ;;  %v8039_v43 = vcombine.high %v5463_v7, %v5463_v7  ;;  %v6878_v38 = vrot.slane %v8076_v16, %v8968_v29  ;;  %v6879_v19 = vcombine.low %v6116_v58, %v6123_v17 }
 0x354   : > { %v8022_v52 = vcombine.low %v5460_v1, %v5460_v1  ;;  %v8023_v9 = vcombine.high %v5460_v1, %v5460_v1  ;;  %v8054_v26 = vcombine.low %v5466_v20, %v5466_v20  ;;  %v8055_v2 = vcombine.high %v5466_v20, %v5466_v20  ;;  %5733 = vst.msk [vmem:[%s9302_s28 + $0x8] sm:$0xf] %vm3338_vm1, %v8006_v49 }
 0x355   : > { %5734 = vst.msk [vmem:[%s9302_s28 + $0xc] sm:$0xf] %vm3338_vm1, %v8007_v3  ;;  %5765 = vst.msk [vmem:[%s9302_s28 + $0x88] sm:$0xf] %vm3338_vm1, %v8038_v40  ;;  %v6886_v37 = vrot.slane %v6879_v19, %v8968_v29  ;;  %v8077_v27 = vcombine.high %v6116_v58, %v6123_v17  ;;  %v6895_v57 = vcombine.low %v6870_v62, %v6878_v38  ;;  %v1110_v20 = vshrl.u32 %v9450_v4, 16 }
 0x356   : > { %5766 = vst.msk [vmem:[%s9302_s28 + $0x8c] sm:$0xf] %vm3338_vm1, %v8039_v43  ;;  %v6912_v55 = vcombine.low %v6150_v25, %v6157_v22  ;;  %5749 = vst.msk [vmem:[%s9302_s28 + $0x48] sm:$0xf] %vm3338_vm1, %v8022_v52  ;;  %v8078_v35 = vcombine.high %v6150_v25, %v6157_v22  ;;  %v6928_v32 = vcombine.low %v6165_v0, %v6172_v51 }
 0x357   : > { %5750 = vst.msk [vmem:[%s9302_s28 + $0x4c] sm:$0xf] %vm3338_vm1, %v8023_v9  ;;  %5781 = vst.msk [vmem:[%s9302_s28 + $0xc8] sm:$0xf] %vm3338_vm1, %v8054_v26  ;;  %v8079_v12 = vcombine.high %v6165_v0, %v6172_v51  ;;  %v5849_v39 = vpack.i.b16 %v5848_v21, %v5847_v44  ;;  %v6894_v48 = vrot.slane %v8077_v27, %v8968_v29 }
 0x358   : > { %5782 = vst.msk [vmem:[%s9302_s28 + $0xcc] sm:$0xf] %vm3338_vm1, %v8055_v2  ;;  %v6902_v58 = vrot.slane %v6895_v57, %v8970_v24  ;;  %v6919_v6 = vrot.slane %v6912_v55, %v8968_v29  ;;  %v6184_v15 = vrot.slane %v9385_v56, %v8968_v29  ;;  %v6927_v17 = vrot.slane %v8078_v35, %v8968_v29 }
 0x359   : > { %v6935_v61 = vrot.slane %v6928_v32, %v8968_v29  ;;  %v6943_v25 = vrot.slane %v8079_v12, %v8968_v29  ;;  %v6191_v47 = vrot.slane %v6177_v23, %v8968_v29  ;;  %v6903_v44 = vcombine.low %v6886_v37, %v6894_v48  ;;  %v1017_v12 = vpop.permute.xlu1 %1016 }
 0x35a   : > { %v6192_v21 = vcombine.high %v6184_v15, %v8446_v46  ;;  %v6199_v11 = vrot.slane %v6184_v15, %v8970_v24  ;;  %v6226_v0 = vcombine.high %v5849_v39, %v8966_v28  ;;  %v6944_v33 = vcombine.low %v6919_v6, %v6927_v17 }
 0x35b   : > { %v6952_v18 = vcombine.low %v6935_v61, %v6943_v25  ;;  %v6207_v7 = vcombine.high %v6191_v47, %v8446_v46  ;;  %v6214_v41 = vrot.slane %v6191_v47, %v8970_v24  ;;  %v6910_v22 = vrot.slane %v6903_v44, %v8970_v24 }
 0x35c   : > { %v6206_v56 = vrot.slane %v6192_v21, %v8970_v24  ;;  %v6233_v23 = vrot.slane %v5849_v39, %v8968_v29  ;;  %v6240_v51 = vrot.slane %v6226_v0, %v8968_v29  ;;  %v6951_v62 = vrot.slane %v6944_v33, %v8970_v24  ;;  %v1049_v0 = vpop.permute.xlu0 %1048 }
 0x35d   : > { %v6959_v16 = vrot.slane %v6952_v18, %v8970_v24  ;;  %v6221_v1 = vrot.slane %v6207_v7, %v8970_v24  ;;  %v6911_v49 = vcombine.low %v6902_v58, %v6910_v22 }
 0x35e   : > { %v6241_v3 = vcombine.high %v6233_v23, %v8446_v46  ;;  %v6248_v40 = vrot.slane %v6233_v23, %v8970_v24  ;;  %v6256_v43 = vcombine.high %v6240_v51, %v8446_v46  ;;  %v6263_v19 = vrot.slane %v6240_v51, %v8970_v24 }
 0x35f   : > { %v6960_v38 = vcombine.low %v6951_v62, %v6959_v16  ;;  %v6961_v52 = vcombine.low %v6199_v11, %v6206_v56  ;;  %v8080_v9 = vcombine.high %v6199_v11, %v6206_v56  ;;  %v7466_v26 = vshrl.u32 %v6911_v49, 16 }
 0x360   : > { %v6255_v2 = vrot.slane %v6241_v3, %v8970_v24  ;;  %v6270_v37 = vrot.slane %v6256_v43, %v8970_v24  ;;  %v6977_v27 = vcombine.low %v6214_v41, %v6221_v1  ;;  %v8081_v48 = vcombine.high %v6214_v41, %v6221_v1  ;;  %v9487_v3 = vpop.permute.xlu1 %5813 }
 0x361   : > { %v7465_v57 = vpack.i.b16 %v6960_v38, %v6911_v49  ;;  %v7467_v55 = vshrl.u32 %v6960_v38, 16  ;;  %v6968_v35 = vrot.slane %v6961_v52, %v8968_v29  ;;  %v6976_v32 = vrot.slane %v8080_v9, %v8968_v29 }
 0x362   : > { %v6984_v39 = vrot.slane %v6977_v27, %v8968_v29  ;;  %v7010_v58 = vcombine.low %v6248_v40, %v6255_v2  ;;  %v8082_v6 = vcombine.high %v6248_v40, %v6255_v2  ;;  %v6992_v47 = vrot.slane %v8081_v48, %v8968_v29 }
 0x363   : > { %v7468_v15 = vpack.i.b16 %v7467_v55, %v7466_v26  ;;  %v8104_v17 = vcombine.low %v7465_v57, %v7465_v57  ;;  %v8105_v61 = vcombine.high %v7465_v57, %v7465_v57  ;;  %v6993_v25 = vcombine.low %v6968_v35, %v6976_v32 }
 0x364   : > { %v7017_v44 = vrot.slane %v7010_v58, %v8968_v29  ;;  %v7025_v21 = vrot.slane %v8082_v6, %v8968_v29  ;;  %v7026_v11 = vcombine.low %v6263_v19, %v6270_v37  ;;  %v8083_v41 = vcombine.high %v6263_v19, %v6270_v37 }
 0x365   : > { %v8120_v33 = vcombine.low %v7468_v15, %v7468_v15  ;;  %v8121_v18 = vcombine.high %v7468_v15, %v7468_v15  ;;  %7600 = vst.msk [vmem:[%s9094_s17 + $0x10] sm:$0xf] %vm7595_vm0, %v8104_v17  ;;  %7601 = vst.msk [vmem:[%s9094_s17 + $0x14] sm:$0xf] %vm7595_vm0, %v8105_v61  ;;  %v7000_v7 = vrot.slane %v6993_v25, %v8970_v24  ;;  %v1103_v16 = vshrl.u32 %v1017_v12, 16 }
 0x366   : > { %v7001_v22 = vcombine.low %v6984_v39, %v6992_v47  ;;  %v7033_v56 = vrot.slane %v7026_v11, %v8968_v29  ;;  %v7042_v23 = vcombine.low %v7017_v44, %v7025_v21  ;;  %v1100_v51 = vpack.i.b16 %v1017_v12, %v8836_v30 }
 0x367   : > { %7616 = vst.msk [vmem:[%s9094_s17 + $0x50] sm:$0xf] %vm7595_vm0, %v8120_v33  ;;  %7617 = vst.msk [vmem:[%s9094_s17 + $0x54] sm:$0xf] %vm7595_vm0, %v8121_v18  ;;  %v7041_v62 = vrot.slane %v8083_v41, %v8968_v29  ;;  %v1108_v1 = vpack.i.b16 %v1049_v0, %v9450_v4  ;;  %v1111_v49 = vshrl.u32 %v1049_v0, 16  ;;  %v1104_v9 = vpack.i.b16 %v1103_v16, %v1102_v54 }
 0x368   : > { %v7008_v40 = vrot.slane %v7001_v22, %v8970_v24  ;;  %v7049_v43 = vrot.slane %v7042_v23, %v8970_v24  ;;  %v1458_v38 = vcombine.high %v1100_v51, %v8966_v28  ;;  %v1465_v19 = vrot.slane %v1100_v51, %v8968_v29 }
 0x369   : > { %v7050_v52 = vcombine.low %v7033_v56, %v7041_v62  ;;  %v1112_v26 = vpack.i.b16 %v1111_v49, %v1110_v20  ;;  %v1473_v2 = vcombine.high %v1108_v1, %v8966_v28  ;;  %v1480_v27 = vrot.slane %v1108_v1, %v8968_v29 }
 0x36a   : > { %v7009_v37 = vcombine.low %v7000_v7, %v7008_v40  ;;  %v1472_v4 = vrot.slane %v1458_v38, %v8968_v29  ;;  %v9500_v57 = vpack.i.b16 %v9487_v3, %v8844_v14  ;;  %v1524_v35 = vcombine.high %v1104_v9, %v8966_v28 }
 0x36b   : > { %v7057_v55 = vrot.slane %v7050_v52, %v8970_v24  ;;  %v1531_v32 = vrot.slane %v1104_v9, %v8968_v29  ;;  %v1487_v30 = vrot.slane %v1473_v2, %v8968_v29  ;;  %v1488_v20 = vcombine.low %v1465_v19, %v1480_v27 }
 0x36c   : > { %v7472_v54 = vshrl.u32 %v7009_v37, 16  ;;  %v1489_v12 = vcombine.high %v1465_v19, %v1480_v27  ;;  %v1539_v39 = vcombine.high %v1112_v26, %v8966_v28  ;;  %v1538_v58 = vrot.slane %v1524_v35, %v8968_v29 }
 0x36d   : > { %v7058_v48 = vcombine.low %v7049_v43, %v7057_v55  ;;  %v1504_v6 = vcombine.low %v1472_v4, %v1487_v30  ;;  %v1505_v15 = vcombine.high %v1472_v4, %v1487_v30  ;;  %v1496_v17 = vrot.slane %v1488_v20, %v8970_v24 }
 0x36e   : > { %v1503_v61 = vrot.slane %v1489_v12, %v8970_v24  ;;  %v1546_v25 = vrot.slane %v1112_v26, %v8968_v29  ;;  %v1553_v47 = vrot.slane %v1539_v39, %v8968_v29  ;;  %v5864_v55 = vshrl.u32 %v9487_v3, 16 }
 0x36f   : > { %v7471_v44 = vpack.i.b16 %v7058_v48, %v7009_v37  ;;  %v7473_v21 = vshrl.u32 %v7058_v48, 16  ;;  %v1512_v11 = vrot.slane %v1504_v6, %v8970_v24  ;;  %v1519_v0 = vrot.slane %v1505_v15, %v8970_v24 }
 0x370   : > { %v1554_v33 = vcombine.low %v1531_v32, %v1546_v25  ;;  %v1555_v18 = vcombine.high %v1531_v32, %v1546_v25  ;;  %v1570_v7 = vcombine.low %v1538_v58, %v1553_v47  ;;  %v1571_v41 = vcombine.high %v1538_v58, %v1553_v47 }
 0x371   : > { %v7474_v22 = vpack.i.b16 %v7473_v21, %v7472_v54  ;;  %v8106_v56 = vcombine.low %v7471_v44, %v7471_v44  ;;  %v8107_v23 = vcombine.high %v7471_v44, %v7471_v44  ;;  %v2450_v51 = vcombine.low %v1496_v17, %v1503_v61 }
 0x372   : > { %v1562_v62 = vrot.slane %v1554_v33, %v8970_v24  ;;  %v1569_v16 = vrot.slane %v1555_v18, %v8970_v24  ;;  %v1578_v1 = vrot.slane %v1570_v7, %v8970_v24  ;;  %v1585_v49 = vrot.slane %v1571_v41, %v8970_v24 }
 0x373   : > { %v8122_v40 = vcombine.low %v7474_v22, %v7474_v22  ;;  %v8123_v43 = vcombine.high %v7474_v22, %v7474_v22  ;;  %7602 = vst.msk [vmem:[%s9094_s17 + $0x18] sm:$0xf] %vm7595_vm0, %v8106_v56  ;;  %7603 = vst.msk [vmem:[%s9094_s17 + $0x1c] sm:$0xf] %vm7595_vm0, %v8107_v23  ;;  %v2457_v38 = vrot.slane %v2450_v51, %v8968_v29  ;;  %v10499_v48 = vshrl.u32 %v8844_v14, 16 }
 0x374   : > { %v7884_v19 = vcombine.high %v1496_v17, %v1503_v61  ;;  %v2466_v52 = vcombine.low %v1512_v11, %v1519_v0  ;;  %v7885_v9 = vcombine.high %v1512_v11, %v1519_v0  ;;  %v2500_v26 = vcombine.low %v1562_v62, %v1569_v16 }
 0x375   : > { %v7886_v2 = vcombine.high %v1562_v62, %v1569_v16  ;;  %7618 = vst.msk [vmem:[%s9094_s17 + $0x58] sm:$0xf] %vm7595_vm0, %v8122_v40  ;;  %7619 = vst.msk [vmem:[%s9094_s17 + $0x5c] sm:$0xf] %vm7595_vm0, %v8123_v43  ;;  %v2516_v4 = vcombine.low %v1578_v1, %v1585_v49  ;;  %v7887_v27 = vcombine.high %v1578_v1, %v1585_v49 }
 0x376   : > { %v2465_v37 = vrot.slane %v7884_v19, %v8968_v29  ;;  %v2473_v35 = vrot.slane %v2466_v52, %v8968_v29  ;;  %v2481_v32 = vrot.slane %v7885_v9, %v8968_v29  ;;  %v2507_v30 = vrot.slane %v2500_v26, %v8968_v29  ;;  %v3416_v19 = vpop.permute.xlu0 %3415 }
 0x377   : > { %v2515_v54 = vrot.slane %v7886_v2, %v8968_v29  ;;  %v2523_v12 = vrot.slane %v2516_v4, %v8968_v29  ;;  %v2531_v39 = vrot.slane %v7887_v27, %v8968_v29  ;;  %v5865_v58 = vpack.i.b16 %v5864_v55, %v10499_v48 }
 0x378   : > { %v2482_v20 = vcombine.low %v2457_v38, %v2465_v37  ;;  %v2490_v6 = vcombine.low %v2473_v35, %v2481_v32  ;;  %v6373_v3 = vcombine.high %v9500_v57, %v8966_v28  ;;  %v6380_v17 = vrot.slane %v9500_v57, %v8968_v29 }
 0x379   : > { %v2532_v15 = vcombine.low %v2507_v30, %v2515_v54  ;;  %v2540_v25 = vcombine.low %v2523_v12, %v2531_v39  ;;  %v6422_v47 = vcombine.high %v5865_v58, %v8966_v28  ;;  %v6429_v44 = vrot.slane %v5865_v58, %v8968_v29 }
 0x37a   : > { %v2489_v61 = vrot.slane %v2482_v20, %v8970_v24  ;;  %v2497_v21 = vrot.slane %v2490_v6, %v8970_v24  ;;  %v6387_v11 = vrot.slane %v6373_v3, %v8968_v29  ;;  %v6388_v0 = vcombine.high %v6380_v17, %v8446_v46  ;;  %v1019_v20 = vpop.permute.xlu1 %1018 }
 0x37b   : > { %v2539_v14 = vrot.slane %v2532_v15, %v8970_v24  ;;  %v2547_v33 = vrot.slane %v2540_v25, %v8970_v24  ;;  %v6395_v18 = vrot.slane %v6380_v17, %v8970_v24  ;;  %v6436_v57 = vrot.slane %v6422_v47, %v8968_v29 }
 0x37c   : > { %v6437_v7 = vcombine.high %v6429_v44, %v8446_v46  ;;  %v2498_v41 = vcombine.low %v2489_v61, %v2497_v21  ;;  %v2499_v22 = vcombine.high %v2489_v61, %v2497_v21  ;;  %v6402_v56 = vrot.slane %v6388_v0, %v8970_v24  ;;  %v3432_v21 = vpop.permute.xlu0 %3431 }
 0x37d   : > { %v6403_v23 = vcombine.high %v6387_v11, %v8446_v46  ;;  %v2548_v51 = vcombine.low %v2539_v14, %v2547_v33  ;;  %v2549_v62 = vcombine.high %v2539_v14, %v2547_v33  ;;  %v6410_v16 = vrot.slane %v6387_v11, %v8970_v24 }
 0x37e   : > { %v6444_v1 = vrot.slane %v6429_v44, %v8970_v24  ;;  %v3077_v49 = vshrl.u32 %v2498_v41, 16  ;;  %v3083_v40 = vshrl.u32 %v2499_v22, 16  ;;  %v6451_v38 = vrot.slane %v6437_v7, %v8970_v24 }
 0x37f   : > { %v6417_v43 = vrot.slane %v6403_v23, %v8970_v24  ;;  %v3076_v52 = vpack.i.b16 %v2548_v51, %v2498_v41  ;;  %v3078_v9 = vshrl.u32 %v2548_v51, 16  ;;  %v3082_v26 = vpack.i.b16 %v2549_v62, %v2499_v22 }
 0x380   : > { %v3084_v2 = vshrl.u32 %v2549_v62, 16  ;;  %v6452_v37 = vcombine.high %v6436_v57, %v8446_v46  ;;  %v6459_v4 = vrot.slane %v6436_v57, %v8970_v24  ;;  %v7157_v27 = vcombine.low %v6395_v18, %v6402_v56  ;;  %v1035_v62 = vpop.permute.xlu1 %1034 }
 0x381   : > { %v8088_v55 = vcombine.high %v6395_v18, %v6402_v56  ;;  %v3079_v35 = vpack.i.b16 %v3078_v9, %v3077_v49  ;;  %v7912_v30 = vcombine.low %v3076_v52, %v3076_v52  ;;  %v7913_v54 = vcombine.high %v3076_v52, %v3076_v52 }
 0x382   : > { %v3085_v32 = vpack.i.b16 %v3084_v2, %v3083_v40  ;;  %v7944_v12 = vcombine.low %v3082_v26, %v3082_v26  ;;  %v7945_v39 = vcombine.high %v3082_v26, %v3082_v26  ;;  %v6466_v48 = vrot.slane %v6452_v37, %v8970_v24 }
 0x383   : > { %v7164_v58 = vrot.slane %v7157_v27, %v8968_v29  ;;  %v7928_v6 = vcombine.low %v3079_v35, %v3079_v35  ;;  %v7929_v15 = vcombine.high %v3079_v35, %v3079_v35  ;;  %3343 = vst.msk [vmem:[%s9162_s11 + $0x10] sm:$0xf] %vm3338_vm1, %v7912_v30  ;;  %3344 = vst.msk [vmem:[%s9162_s11 + $0x14] sm:$0xf] %vm3338_vm1, %v7913_v54  ;;  %v3496_v51 = vshrl.u32 %v3416_v19, 16  ;;  %v3448_v27 = vpop.permute.xlu0 %3447 }
 0x384   : > { %v7960_v3 = vcombine.low %v3085_v32, %v3085_v32  ;;  %v7961_v17 = vcombine.high %v3085_v32, %v3085_v32  ;;  %3375 = vst.msk [vmem:[%s9162_s11 + $0x90] sm:$0xf] %vm3338_vm1, %v7944_v12  ;;  %3376 = vst.msk [vmem:[%s9162_s11 + $0x94] sm:$0xf] %vm3338_vm1, %v7945_v39  ;;  %v7172_v61 = vrot.slane %v8088_v55, %v8968_v29  ;;  %v10500_v52 = vshrl.u32 %v8838_v34, 16 }
 0x385   : > { %v7173_v25 = vcombine.low %v6410_v16, %v6417_v43  ;;  %v8089_v47 = vcombine.high %v6410_v16, %v6417_v43  ;;  %v7206_v44 = vcombine.low %v6444_v1, %v6451_v38  ;;  %3359 = vst.msk [vmem:[%s9162_s11 + $0x50] sm:$0xf] %vm3338_vm1, %v7928_v6  ;;  %3360 = vst.msk [vmem:[%s9162_s11 + $0x54] sm:$0xf] %vm3338_vm1, %v7929_v15  ;;  %v1126_v6 = vshrl.u32 %v1035_v62, 16 }
 0x386   : > { %3391 = vst.msk [vmem:[%s9162_s11 + $0xd0] sm:$0xf] %vm3338_vm1, %v7960_v3  ;;  %3392 = vst.msk [vmem:[%s9162_s11 + $0xd4] sm:$0xf] %vm3338_vm1, %v7961_v17  ;;  %v8090_v14 = vcombine.high %v6444_v1, %v6451_v38  ;;  %v7222_v11 = vcombine.low %v6459_v4, %v6466_v48  ;;  %v8091_v0 = vcombine.high %v6459_v4, %v6466_v48  ;;  %v3503_v4 = vshrl.u32 %v3432_v21, 16  ;;  %v1051_v3 = vpop.permute.xlu1 %1050 }
 0x387   : > { %v3493_v33 = vpack.i.b16 %v3416_v19, %v8838_v34  ;;  %v7180_v18 = vrot.slane %v7173_v25, %v8968_v29  ;;  %v7188_v57 = vrot.slane %v8089_v47, %v8968_v29  ;;  %v7189_v7 = vcombine.low %v7164_v58, %v7172_v61 }
 0x388   : > { %v7213_v41 = vrot.slane %v7206_v44, %v8968_v29  ;;  %v7221_v22 = vrot.slane %v8090_v14, %v8968_v29  ;;  %v7229_v56 = vrot.slane %v7222_v11, %v8968_v29  ;;  %v7237_v23 = vrot.slane %v8091_v0, %v8968_v29 }
 0x389   : > { %v7196_v16 = vrot.slane %v7189_v7, %v8970_v24  ;;  %v7197_v1 = vcombine.low %v7180_v18, %v7188_v57  ;;  %v3851_v49 = vcombine.high %v3493_v33, %v8966_v28  ;;  %v3858_v40 = vrot.slane %v3493_v33, %v8968_v29 }
 0x38a   : > { %v7238_v43 = vcombine.low %v7213_v41, %v7221_v22  ;;  %v7246_v38 = vcombine.low %v7229_v56, %v7237_v23  ;;  %v3497_v9 = vpack.i.b16 %v3496_v51, %v10500_v52  ;;  %v1116_v26 = vpack.i.b16 %v1019_v20, %v8852_v31 }
 0x38b   : > { %v7204_v2 = vrot.slane %v7197_v1, %v8970_v24  ;;  %v3865_v37 = vrot.slane %v3851_v49, %v8968_v29  ;;  %v1119_v19 = vshrl.u32 %v1019_v20, 16  ;;  %v10501_v34 = vshrl.u32 %v8852_v31, 16 }
 0x38c   : > { %v7245_v55 = vrot.slane %v7238_v43, %v8970_v24  ;;  %v7253_v35 = vrot.slane %v7246_v38, %v8970_v24  ;;  %v3917_v32 = vcombine.high %v3497_v9, %v8966_v28  ;;  %v3924_v30 = vrot.slane %v3497_v9, %v8968_v29 }
 0x38d   : > { %v7205_v54 = vcombine.low %v7196_v16, %v7204_v2  ;;  %v1120_v12 = vpack.i.b16 %v1119_v19, %v10501_v34  ;;  %v1590_v39 = vcombine.high %v1116_v26, %v8966_v28  ;;  %v9602_v48 = vrot.slane %v1116_v26, %v8968_v29 }
 0x38e   : > { %v7254_v20 = vcombine.low %v7245_v55, %v7253_v35  ;;  %v3931_v58 = vrot.slane %v3917_v32, %v8968_v29  ;;  %v3501_v15 = vpack.i.b16 %v3448_v27, %v3432_v21  ;;  %v3504_v14 = vshrl.u32 %v3448_v27, 16 }
 0x38f   : > { %v7484_v17 = vshrl.u32 %v7205_v54, 16  ;;  %v9606_v61 = vrot.slane %v1590_v39, %v8968_v29  ;;  %v1656_v25 = vcombine.high %v1120_v12, %v8966_v28  ;;  %v9610_v31 = vrot.slane %v1120_v12, %v8968_v29 }
 0x390   : > { %v7483_v47 = vpack.i.b16 %v7254_v20, %v7205_v54  ;;  %v7485_v44 = vshrl.u32 %v7254_v20, 16  ;;  %v3866_v11 = vcombine.high %v3501_v15, %v8966_v28  ;;  %v3873_v21 = vrot.slane %v3501_v15, %v8968_v29 }
 0x391   : > { %v9614_v0 = vrot.slane %v1656_v25, %v8968_v29  ;;  %v1124_v33 = vpack.i.b16 %v1051_v3, %v1035_v62  ;;  %v1127_v18 = vshrl.u32 %v1051_v3, 16  ;;  %v3505_v22 = vpack.i.b16 %v3504_v14, %v3503_v4 }
 0x392   : > { %v7486_v57 = vpack.i.b16 %v7485_v44, %v7484_v17  ;;  %v8110_v7 = vcombine.low %v7483_v47, %v7483_v47  ;;  %v8111_v41 = vcombine.high %v7483_v47, %v7483_v47  ;;  %v3880_v56 = vrot.slane %v3866_v11, %v8968_v29 }
 0x393   : > { %v3881_v23 = vcombine.low %v3858_v40, %v3873_v21  ;;  %v3882_v51 = vcombine.high %v3858_v40, %v3873_v21  ;;  %v9618_v16 = vpack.i.b16 %v1127_v18, %v1126_v6  ;;  %v3932_v62 = vcombine.high %v3505_v22, %v8966_v28 }
 0x394   : > { %v8126_v1 = vcombine.low %v7486_v57, %v7486_v57  ;;  %v8127_v49 = vcombine.high %v7486_v57, %v7486_v57  ;;  %7606 = vst.msk [vmem:[%s9094_s17 + $0x28] sm:$0xf] %vm7595_vm0, %v8110_v7  ;;  %7607 = vst.msk [vmem:[%s9094_s17 + $0x2c] sm:$0xf] %vm7595_vm0, %v8111_v41  ;;  %v3939_v43 = vrot.slane %v3505_v22, %v8968_v29 }
 0x395   : > { %v3889_v38 = vrot.slane %v3881_v23, %v8970_v24  ;;  %v3896_v52 = vrot.slane %v3882_v51, %v8970_v24  ;;  %v3897_v9 = vcombine.low %v3865_v37, %v3880_v56  ;;  %v3898_v26 = vcombine.high %v3865_v37, %v3880_v56 }
 0x396   : > { %7622 = vst.msk [vmem:[%s9094_s17 + $0x68] sm:$0xf] %vm7595_vm0, %v8126_v1  ;;  %7623 = vst.msk [vmem:[%s9094_s17 + $0x6c] sm:$0xf] %vm7595_vm0, %v8127_v49  ;;  %v3946_v40 = vrot.slane %v3932_v62, %v8968_v29  ;;  %v3947_v2 = vcombine.low %v3924_v30, %v3939_v43  ;;  %v3948_v19 = vcombine.high %v3924_v30, %v3939_v43 }
 0x397   : > { %v1605_v4 = vcombine.high %v1124_v33, %v8966_v28  ;;  %v3905_v27 = vrot.slane %v3897_v9, %v8970_v24  ;;  %v3912_v55 = vrot.slane %v3898_v26, %v8970_v24  ;;  %v4843_v35 = vcombine.low %v3889_v38, %v3896_v52 }
 0x398   : > { %v7980_v32 = vcombine.high %v3889_v38, %v3896_v52  ;;  %v3955_v54 = vrot.slane %v3947_v2, %v8970_v24  ;;  %v3962_v37 = vrot.slane %v3948_v19, %v8970_v24  ;;  %v3963_v34 = vcombine.low %v3931_v58, %v3946_v40 }
 0x399   : > { %v3964_v12 = vcombine.high %v3931_v58, %v3946_v40  ;;  %v4850_v39 = vrot.slane %v4843_v35, %v8968_v29  ;;  %v4859_v6 = vcombine.low %v3905_v27, %v3912_v55  ;;  %v7981_v30 = vcombine.high %v3905_v27, %v3912_v55 }
 0x39a   : > { %v4858_v20 = vrot.slane %v7980_v32, %v8968_v29  ;;  %v3971_v15 = vrot.slane %v3963_v34, %v8970_v24  ;;  %v4893_v17 = vcombine.low %v3955_v54, %v3962_v37  ;;  %v7982_v25 = vcombine.high %v3955_v54, %v3962_v37 }
 0x39b   : > { %v3978_v3 = vrot.slane %v3964_v12, %v8970_v24  ;;  %v4866_v47 = vrot.slane %v4859_v6, %v8968_v29  ;;  %v4874_v44 = vrot.slane %v7981_v30, %v8968_v29  ;;  %v1612_v11 = vrot.slane %v1124_v33, %v8968_v29 }
 0x39c   : > { %v4875_v14 = vcombine.low %v4850_v39, %v4858_v20  ;;  %v4900_v58 = vrot.slane %v4893_v17, %v8968_v29  ;;  %v4908_v21 = vrot.slane %v7982_v25, %v8968_v29  ;;  %v1619_v22 = vrot.slane %v1605_v4, %v8968_v29 }
 0x39d   : > { %v4909_v18 = vcombine.low %v3971_v15, %v3978_v3  ;;  %v7983_v57 = vcombine.high %v3971_v15, %v3978_v3  ;;  %v4883_v41 = vcombine.low %v4866_v47, %v4874_v44  ;;  %v1620_v56 = vcombine.low %v9602_v48, %v1612_v11 }
 0x39e   : > { %v4882_v7 = vrot.slane %v4875_v14, %v8970_v24  ;;  %v4925_v1 = vcombine.low %v4900_v58, %v4908_v21  ;;  %v1621_v33 = vcombine.high %v9602_v48, %v1612_v11  ;;  %v1636_v43 = vcombine.low %v9606_v61, %v1619_v22 }
 0x39f   : > { %v4916_v23 = vrot.slane %v4909_v18, %v8968_v29  ;;  %v4924_v51 = vrot.slane %v7983_v57, %v8968_v29  ;;  %v4890_v49 = vrot.slane %v4883_v41, %v8970_v24  ;;  %v1628_v62 = vrot.slane %v1620_v56, %v8970_v24 }
 0x3a0   : > { %v1637_v38 = vcombine.high %v9606_v61, %v1619_v22  ;;  %v4932_v52 = vrot.slane %v4925_v1, %v8970_v24  ;;  %v1635_v26 = vrot.slane %v1621_v33, %v8970_v24  ;;  %v1671_v40 = vcombine.high %v9618_v16, %v8966_v28 }
 0x3a1   : > { %v4933_v9 = vcombine.low %v4916_v23, %v4924_v51  ;;  %v4891_v2 = vcombine.low %v4882_v7, %v4890_v49  ;;  %v4892_v19 = vcombine.high %v4882_v7, %v4890_v49  ;;  %v1644_v48 = vrot.slane %v1636_v43, %v8970_v24  ;;  %v5812_v23 = vpop.permute.xlu0 %5811 }
 0x3a2   : > { %v1651_v4 = vrot.slane %v1637_v38, %v8970_v24  ;;  %v1678_v55 = vrot.slane %v9618_v16, %v8968_v29  ;;  %v1685_v61 = vrot.slane %v1671_v40, %v8968_v29  ;;  %v2550_v35 = vcombine.low %v1628_v62, %v1635_v26 }
 0x3a3   : > { %v4940_v27 = vrot.slane %v4933_v9, %v8970_v24  ;;  %v5470_v32 = vshrl.u32 %v4891_v2, 16  ;;  %v5476_v54 = vshrl.u32 %v4892_v19, 16  ;;  %v7888_v37 = vcombine.high %v1628_v62, %v1635_v26 }
 0x3a4   : > { %v2566_v34 = vcombine.low %v1644_v48, %v1651_v4  ;;  %v1686_v20 = vcombine.low %v9610_v31, %v1678_v55  ;;  %v1687_v6 = vcombine.high %v9610_v31, %v1678_v55  ;;  %v1702_v30 = vcombine.low %v9614_v0, %v1685_v61 }
 0x3a5   : > { %v4941_v12 = vcombine.low %v4932_v52, %v4940_v27  ;;  %v4942_v39 = vcombine.high %v4932_v52, %v4940_v27  ;;  %v1703_v15 = vcombine.high %v9614_v0, %v1685_v61  ;;  %v2557_v3 = vrot.slane %v2550_v35, %v8968_v29 }
 0x3a6   : > { %v2565_v16 = vrot.slane %v7888_v37, %v8968_v29  ;;  %v1694_v14 = vrot.slane %v1686_v20, %v8970_v24  ;;  %v1701_v11 = vrot.slane %v1687_v6, %v8970_v24  ;;  %v1710_v58 = vrot.slane %v1702_v30, %v8970_v24 }
 0x3a7   : > { %v5469_v17 = vpack.i.b16 %v4941_v12, %v4891_v2  ;;  %v5471_v25 = vshrl.u32 %v4941_v12, 16  ;;  %v5475_v47 = vpack.i.b16 %v4942_v39, %v4892_v19  ;;  %v5477_v44 = vshrl.u32 %v4942_v39, 16  ;;  %v9696_v19 = vpop.permute.xlu1 %3417 }
 0x3a8   : > { %v1717_v31 = vrot.slane %v1703_v15, %v8970_v24  ;;  %v2573_v22 = vrot.slane %v2566_v34, %v8968_v29  ;;  %v7889_v56 = vcombine.high %v1644_v48, %v1651_v4  ;;  %v2582_v43 = vcombine.low %v2557_v3, %v2565_v16 }
 0x3a9   : > { %v5472_v0 = vpack.i.b16 %v5471_v25, %v5470_v32  ;;  %v5478_v21 = vpack.i.b16 %v5477_v44, %v5476_v54  ;;  %v8008_v18 = vcombine.low %v5469_v17, %v5469_v17  ;;  %v8009_v57 = vcombine.high %v5469_v17, %v5469_v17 }
 0x3aa   : > { %v8040_v7 = vcombine.low %v5475_v47, %v5475_v47  ;;  %v8041_v41 = vcombine.high %v5475_v47, %v5475_v47  ;;  %v2581_v62 = vrot.slane %v7889_v56, %v8968_v29  ;;  %v2600_v38 = vcombine.low %v1694_v14, %v1701_v11 }
 0x3ab   : > { %v8024_v51 = vcombine.low %v5472_v0, %v5472_v0  ;;  %v8025_v1 = vcombine.high %v5472_v0, %v5472_v0  ;;  %v8056_v33 = vcombine.low %v5478_v21, %v5478_v21  ;;  %v8057_v49 = vcombine.high %v5478_v21, %v5478_v21  ;;  %5735 = vst.msk [vmem:[%s9302_s28 + $0x10] sm:$0xf] %vm3338_vm1, %v8008_v18 }
 0x3ac   : > { %5736 = vst.msk [vmem:[%s9302_s28 + $0x14] sm:$0xf] %vm3338_vm1, %v8009_v57  ;;  %5767 = vst.msk [vmem:[%s9302_s28 + $0x90] sm:$0xf] %vm3338_vm1, %v8040_v7  ;;  %v7890_v52 = vcombine.high %v1694_v14, %v1701_v11  ;;  %v2616_v9 = vcombine.low %v1710_v58, %v1717_v31  ;;  %v7891_v26 = vcombine.high %v1710_v58, %v1717_v31  ;;  %v5856_v2 = vshrl.u32 %v5812_v23, 16 }
 0x3ad   : > { %5768 = vst.msk [vmem:[%s9302_s28 + $0x94] sm:$0xf] %vm3338_vm1, %v8041_v41  ;;  %5751 = vst.msk [vmem:[%s9302_s28 + $0x50] sm:$0xf] %vm3338_vm1, %v8024_v51  ;;  %v5853_v40 = vpack.i.b16 %v5812_v23, %v8846_v36  ;;  %v2589_v48 = vrot.slane %v2582_v43, %v8970_v24  ;;  %v2590_v4 = vcombine.low %v2573_v22, %v2581_v62  ;;  %v10502_v32 = vshrl.u32 %v8846_v36, 16 }
 0x3ae   : > { %5752 = vst.msk [vmem:[%s9302_s28 + $0x54] sm:$0xf] %vm3338_vm1, %v8025_v1  ;;  %5783 = vst.msk [vmem:[%s9302_s28 + $0xd0] sm:$0xf] %vm3338_vm1, %v8056_v33  ;;  %v2607_v27 = vrot.slane %v2600_v38, %v8968_v29  ;;  %v2615_v55 = vrot.slane %v7890_v52, %v8968_v29  ;;  %v2623_v61 = vrot.slane %v2616_v9, %v8968_v29  ;;  %v9728_v1 = vpop.permute.xlu0 %1020 }
 0x3af   : > { %5784 = vst.msk [vmem:[%s9302_s28 + $0xd4] sm:$0xf] %vm3338_vm1, %v8057_v49  ;;  %v2631_v35 = vrot.slane %v7891_v26, %v8968_v29  ;;  %v5857_v54 = vpack.i.b16 %v5856_v2, %v10502_v32  ;;  %v6275_v37 = vcombine.high %v5853_v40, %v8966_v28  ;;  %v2597_v34 = vrot.slane %v2590_v4, %v8970_v24 }
 0x3b0   : > { %v2632_v12 = vcombine.low %v2607_v27, %v2615_v55  ;;  %v6282_v39 = vrot.slane %v5853_v40, %v8968_v29  ;;  %v9710_v20 = vpack.i.b16 %v9696_v19, %v8854_v42 }
 0x3b1   : > { %v2640_v6 = vcombine.low %v2623_v61, %v2631_v35  ;;  %v6289_v30 = vrot.slane %v6275_v37, %v8968_v29  ;;  %v6324_v15 = vcombine.high %v5857_v54, %v8966_v28  ;;  %v6331_v3 = vrot.slane %v5857_v54, %v8968_v29 }
 0x3b2   : > { %v2598_v36 = vcombine.low %v2589_v48, %v2597_v34  ;;  %v2599_v16 = vcombine.high %v2589_v48, %v2597_v34  ;;  %v2639_v17 = vrot.slane %v2632_v12, %v8970_v24  ;;  %v6290_v25 = vcombine.high %v6282_v39, %v8446_v46 }
 0x3b3   : > { %v2647_v47 = vrot.slane %v2640_v6, %v8970_v24  ;;  %v6297_v44 = vrot.slane %v6282_v39, %v8970_v24  ;;  %v6305_v14 = vcombine.high %v6289_v30, %v8446_v46  ;;  %v6312_v11 = vrot.slane %v6289_v30, %v8970_v24 }
 0x3b4   : > { %v3089_v58 = vshrl.u32 %v2598_v36, 16  ;;  %v3095_v31 = vshrl.u32 %v2599_v16, 16  ;;  %v6304_v0 = vrot.slane %v6290_v25, %v8970_v24  ;;  %v6338_v21 = vrot.slane %v6324_v15, %v8968_v29  ;;  %v3434_v15 = vpop.permute.xlu1 %3433 }
 0x3b5   : > { %v2648_v18 = vcombine.low %v2639_v17, %v2647_v47  ;;  %v2649_v57 = vcombine.high %v2639_v17, %v2647_v47  ;;  %v6319_v7 = vrot.slane %v6305_v14, %v8970_v24  ;;  %v6339_v41 = vcombine.high %v6331_v3, %v8446_v46 }
 0x3b6   : > { %v6346_v22 = vrot.slane %v6331_v3, %v8970_v24  ;;  %v6354_v56 = vcombine.high %v6338_v21, %v8446_v46  ;;  %v6361_v23 = vrot.slane %v6338_v21, %v8970_v24  ;;  %v7059_v51 = vcombine.low %v6297_v44, %v6304_v0  ;;  %v1037_v3 = vpop.permute.xlu0 %1036 }
 0x3b7   : > { %v3088_v33 = vpack.i.b16 %v2648_v18, %v2598_v36  ;;  %v3090_v49 = vshrl.u32 %v2648_v18, 16  ;;  %v3094_v62 = vpack.i.b16 %v2649_v57, %v2599_v16  ;;  %v3096_v43 = vshrl.u32 %v2649_v57, 16 }
 0x3b8   : > { %v6353_v38 = vrot.slane %v6339_v41, %v8970_v24  ;;  %v6368_v52 = vrot.slane %v6354_v56, %v8970_v24  ;;  %v7066_v9 = vrot.slane %v7059_v51, %v8968_v29  ;;  %v8084_v26 = vcombine.high %v6297_v44, %v6304_v0 }
 0x3b9   : > { %v3091_v40 = vpack.i.b16 %v3090_v49, %v3089_v58  ;;  %v3097_v2 = vpack.i.b16 %v3096_v43, %v3095_v31  ;;  %v7914_v48 = vcombine.low %v3088_v33, %v3088_v33  ;;  %v7915_v4 = vcombine.high %v3088_v33, %v3088_v33 }
 0x3ba   : > { %v7946_v27 = vcombine.low %v3094_v62, %v3094_v62  ;;  %v7947_v55 = vcombine.high %v3094_v62, %v3094_v62  ;;  %v7074_v61 = vrot.slane %v8084_v26, %v8968_v29  ;;  %v7075_v35 = vcombine.low %v6312_v11, %v6319_v7  ;;  %v1053_v43 = vpop.permute.xlu0 %1052 }
 0x3bb   : > { %v7930_v32 = vcombine.low %v3091_v40, %v3091_v40  ;;  %v7931_v54 = vcombine.high %v3091_v40, %v3091_v40  ;;  %v7962_v37 = vcombine.low %v3097_v2, %v3097_v2  ;;  %v7963_v34 = vcombine.high %v3097_v2, %v3097_v2  ;;  %3345 = vst.msk [vmem:[%s9162_s11 + $0x18] sm:$0xf] %vm3338_vm1, %v7914_v48 }
 0x3bc   : > { %3346 = vst.msk [vmem:[%s9162_s11 + $0x1c] sm:$0xf] %vm3338_vm1, %v7915_v4  ;;  %3377 = vst.msk [vmem:[%s9162_s11 + $0x98] sm:$0xf] %vm3338_vm1, %v7946_v27  ;;  %v7082_v12 = vrot.slane %v7075_v35, %v8968_v29  ;;  %v8085_v39 = vcombine.high %v6312_v11, %v6319_v7  ;;  %v7091_v6 = vcombine.low %v7066_v9, %v7074_v61  ;;  %v3512_v25 = vshrl.u32 %v9696_v19, 16 }
 0x3bd   : > { %3378 = vst.msk [vmem:[%s9162_s11 + $0x9c] sm:$0xf] %vm3338_vm1, %v7947_v55  ;;  %v7108_v30 = vcombine.low %v6346_v22, %v6353_v38  ;;  %3361 = vst.msk [vmem:[%s9162_s11 + $0x58] sm:$0xf] %vm3338_vm1, %v7930_v32  ;;  %v8086_v36 = vcombine.high %v6346_v22, %v6353_v38  ;;  %v7124_v16 = vcombine.low %v6361_v23, %v6368_v52  ;;  %v10503_v21 = vshrl.u32 %v8854_v42, 16 }
 0x3be   : > { %3362 = vst.msk [vmem:[%s9162_s11 + $0x5c] sm:$0xf] %vm3338_vm1, %v7931_v54  ;;  %3393 = vst.msk [vmem:[%s9162_s11 + $0xd8] sm:$0xf] %vm3338_vm1, %v7962_v37  ;;  %v8087_v17 = vcombine.high %v6361_v23, %v6368_v52  ;;  %v7090_v47 = vrot.slane %v8085_v39, %v8968_v29  ;;  %v7098_v44 = vrot.slane %v7091_v6, %v8970_v24  ;;  %v1135_v42 = vshrl.u32 %v9728_v1, 16 }
 0x3bf   : > { %3394 = vst.msk [vmem:[%s9162_s11 + $0xdc] sm:$0xf] %vm3338_vm1, %v7963_v34  ;;  %v7115_v14 = vrot.slane %v7108_v30, %v8968_v29  ;;  %v3983_v11 = vcombine.high %v9710_v20, %v8966_v28  ;;  %v7123_v58 = vrot.slane %v8086_v36, %v8968_v29  ;;  %v7131_v31 = vrot.slane %v7124_v16, %v8968_v29 }
 0x3c0   : > { %v7139_v0 = vrot.slane %v8087_v17, %v8968_v29  ;;  %v3513_v18 = vpack.i.b16 %v3512_v25, %v10503_v21  ;;  %v7099_v57 = vcombine.low %v7082_v12, %v7090_v47  ;;  %v3990_v19 = vrot.slane %v9710_v20, %v8968_v29  ;;  %v3450_v20 = vpop.permute.xlu1 %3449 }
 0x3c1   : > { %v3997_v7 = vrot.slane %v3983_v11, %v8968_v29  ;;  %v1132_v41 = vpack.i.b16 %v9728_v1, %v8868_v10  ;;  %v7140_v22 = vcombine.low %v7115_v14, %v7123_v58  ;;  %v3519_v26 = vshrl.u32 %v3434_v15, 16 }
 0x3c2   : > { %v7148_v56 = vcombine.low %v7131_v31, %v7139_v0  ;;  %v4049_v23 = vcombine.high %v3513_v18, %v8966_v28  ;;  %v4056_v51 = vrot.slane %v3513_v18, %v8968_v29  ;;  %v7106_v33 = vrot.slane %v7099_v57, %v8970_v24 }
 0x3c3   : > { %v1722_v49 = vcombine.high %v1132_v41, %v8966_v28  ;;  %v9773_v62 = vrot.slane %v1132_v41, %v8968_v29  ;;  %v7147_v38 = vrot.slane %v7140_v22, %v8970_v24  ;;  %v10504_v2 = vshrl.u32 %v8868_v10, 16 }
 0x3c4   : > { %v7155_v52 = vrot.slane %v7148_v56, %v8970_v24  ;;  %v4063_v9 = vrot.slane %v4049_v23, %v8968_v29  ;;  %v7107_v40 = vcombine.low %v7098_v44, %v7106_v33  ;;  %v1142_v4 = vshrl.u32 %v1037_v3, 16 }
 0x3c5   : > { %v1136_v48 = vpack.i.b16 %v1135_v42, %v10504_v2  ;;  %v9781_v1 = vrot.slane %v1722_v49, %v8968_v29  ;;  %v3517_v55 = vpack.i.b16 %v3450_v20, %v3434_v15  ;;  %v3520_v61 = vshrl.u32 %v3450_v20, 16 }
 0x3c6   : > { %v7156_v27 = vcombine.low %v7147_v38, %v7155_v52  ;;  %v1140_v35 = vpack.i.b16 %v1053_v43, %v1037_v3  ;;  %v7478_v32 = vshrl.u32 %v7107_v40, 16  ;;  %v1143_v34 = vshrl.u32 %v1053_v43, 16 }
 0x3c7   : > { %v1788_v54 = vcombine.high %v1136_v48, %v8966_v28  ;;  %v9785_v37 = vrot.slane %v1136_v48, %v8968_v29  ;;  %v3521_v6 = vpack.i.b16 %v3520_v61, %v3519_v26  ;;  %v3998_v10 = vcombine.high %v3517_v55, %v8966_v28 }
 0x3c8   : > { %v7477_v12 = vpack.i.b16 %v7156_v27, %v7107_v40  ;;  %v7479_v39 = vshrl.u32 %v7156_v27, 16  ;;  %v4005_v15 = vrot.slane %v3517_v55, %v8968_v29  ;;  %v9792_v3 = vpack.i.b16 %v1143_v34, %v1142_v4 }
 0x3c9   : > { %v9789_v30 = vrot.slane %v1788_v54, %v8968_v29  ;;  %v1737_v36 = vcombine.high %v1140_v35, %v8966_v28  ;;  %v4012_v47 = vrot.slane %v3998_v10, %v8968_v29  ;;  %v4064_v11 = vcombine.high %v3521_v6, %v8966_v28 }
 0x3ca   : > { %v7480_v16 = vpack.i.b16 %v7479_v39, %v7478_v32  ;;  %v8108_v17 = vcombine.low %v7477_v12, %v7477_v12  ;;  %v8109_v25 = vcombine.high %v7477_v12, %v7477_v12  ;;  %v4013_v44 = vcombine.low %v3990_v19, %v4005_v15 }
 0x3cb   : > { %v4014_v14 = vcombine.high %v3990_v19, %v4005_v15  ;;  %v4071_v58 = vrot.slane %v3521_v6, %v8968_v29  ;;  %v4029_v21 = vcombine.low %v3997_v7, %v4012_v47  ;;  %v4030_v18 = vcombine.high %v3997_v7, %v4012_v47 }
 0x3cc   : > { %v8124_v31 = vcombine.low %v7480_v16, %v7480_v16  ;;  %v8125_v0 = vcombine.high %v7480_v16, %v7480_v16  ;;  %7604 = vst.msk [vmem:[%s9094_s17 + $0x20] sm:$0xf] %vm7595_vm0, %v8108_v17  ;;  %7605 = vst.msk [vmem:[%s9094_s17 + $0x24] sm:$0xf] %vm7595_vm0, %v8109_v25  ;;  %v4021_v57 = vrot.slane %v4013_v44, %v8970_v24 }
 0x3cd   : > { %v4028_v41 = vrot.slane %v4014_v14, %v8970_v24  ;;  %v4078_v22 = vrot.slane %v4064_v11, %v8968_v29  ;;  %v4079_v56 = vcombine.low %v4056_v51, %v4071_v58  ;;  %v4037_v19 = vrot.slane %v4029_v21, %v8970_v24 }
 0x3ce   : > { %7620 = vst.msk [vmem:[%s9094_s17 + $0x60] sm:$0xf] %vm7595_vm0, %v8124_v31  ;;  %7621 = vst.msk [vmem:[%s9094_s17 + $0x64] sm:$0xf] %vm7595_vm0, %v8125_v0  ;;  %v4044_v23 = vrot.slane %v4030_v18, %v8970_v24  ;;  %v4080_v33 = vcombine.high %v4056_v51, %v4071_v58  ;;  %v1744_v42 = vrot.slane %v1140_v35, %v8968_v29 }
 0x3cf   : > { %v4087_v7 = vrot.slane %v4079_v56, %v8970_v24  ;;  %v4095_v49 = vcombine.low %v4063_v9, %v4078_v22  ;;  %v4096_v20 = vcombine.high %v4063_v9, %v4078_v22  ;;  %v4943_v43 = vcombine.low %v4021_v57, %v4028_v41 }
 0x3d0   : > { %v4094_v38 = vrot.slane %v4080_v33, %v8970_v24  ;;  %v7984_v52 = vcombine.high %v4021_v57, %v4028_v41  ;;  %v4959_v26 = vcombine.low %v4037_v19, %v4044_v23  ;;  %v7985_v40 = vcombine.high %v4037_v19, %v4044_v23 }
 0x3d1   : > { %v4103_v2 = vrot.slane %v4095_v49, %v8970_v24  ;;  %v4110_v48 = vrot.slane %v4096_v20, %v8970_v24  ;;  %v4950_v4 = vrot.slane %v4943_v43, %v8968_v29  ;;  %v1751_v51 = vrot.slane %v1737_v36, %v8968_v29 }
 0x3d2   : > { %v4958_v27 = vrot.slane %v7984_v52, %v8968_v29  ;;  %v4966_v55 = vrot.slane %v4959_v26, %v8968_v29  ;;  %v4974_v9 = vrot.slane %v7985_v40, %v8968_v29  ;;  %v4993_v61 = vcombine.low %v4087_v7, %v4094_v38 }
 0x3d3   : > { %v7986_v35 = vcombine.high %v4087_v7, %v4094_v38  ;;  %v5009_v32 = vcombine.low %v4103_v2, %v4110_v48  ;;  %v7987_v54 = vcombine.high %v4103_v2, %v4110_v48  ;;  %v1752_v34 = vcombine.low %v9773_v62, %v1744_v42 }
 0x3d4   : > { %v4975_v12 = vcombine.low %v4950_v4, %v4958_v27  ;;  %v4983_v39 = vcombine.low %v4966_v55, %v4974_v9  ;;  %v5000_v6 = vrot.slane %v4993_v61, %v8968_v29  ;;  %v1753_v10 = vcombine.high %v9773_v62, %v1744_v42 }
 0x3d5   : > { %v5008_v15 = vrot.slane %v7986_v35, %v8968_v29  ;;  %v5016_v36 = vrot.slane %v5009_v32, %v8968_v29  ;;  %v5024_v16 = vrot.slane %v7987_v54, %v8968_v29  ;;  %v1760_v17 = vrot.slane %v1752_v34, %v8970_v24 }
 0x3d6   : > { %v4982_v25 = vrot.slane %v4975_v12, %v8970_v24  ;;  %v4990_v47 = vrot.slane %v4983_v39, %v8970_v24  ;;  %v1767_v44 = vrot.slane %v1753_v10, %v8970_v24  ;;  %v1768_v14 = vcombine.low %v9781_v1, %v1751_v51 }
 0x3d7   : > { %v5025_v11 = vcombine.low %v5000_v6, %v5008_v15  ;;  %v5033_v58 = vcombine.low %v5016_v36, %v5024_v16  ;;  %v1769_v62 = vcombine.high %v9781_v1, %v1751_v51  ;;  %v1803_v31 = vcombine.high %v9792_v3, %v8966_v28  ;;  %v1023_v51 = vpop.permute.xlu1 %1022 }
 0x3d8   : > { %v4991_v0 = vcombine.low %v4982_v25, %v4990_v47  ;;  %v4992_v21 = vcombine.high %v4982_v25, %v4990_v47  ;;  %v1776_v18 = vrot.slane %v1768_v14, %v8970_v24  ;;  %v1810_v57 = vrot.slane %v9792_v3, %v8968_v29 }
 0x3d9   : > { %v5032_v41 = vrot.slane %v5025_v11, %v8970_v24  ;;  %v5040_v22 = vrot.slane %v5033_v58, %v8970_v24  ;;  %v1783_v56 = vrot.slane %v1769_v62, %v8970_v24  ;;  %v1817_v19 = vrot.slane %v1803_v31, %v8968_v29  ;;  %v3420_v62 = vpop.permute.xlu0 %3419 }
 0x3da   : > { %v5482_v23 = vshrl.u32 %v4991_v0, 16  ;;  %v5488_v1 = vshrl.u32 %v4992_v21, 16  ;;  %v1818_v33 = vcombine.low %v9785_v37, %v1810_v57  ;;  %v1819_v42 = vcombine.high %v9785_v37, %v1810_v57 }
 0x3db   : > { %v5041_v7 = vcombine.low %v5032_v41, %v5040_v22  ;;  %v5042_v49 = vcombine.high %v5032_v41, %v5040_v22  ;;  %v1834_v20 = vcombine.low %v9789_v30, %v1817_v19  ;;  %v1835_v3 = vcombine.high %v9789_v30, %v1817_v19  ;;  %v1039_v31 = vpop.permute.xlu1 %1038 }
 0x3dc   : > { %v1826_v43 = vrot.slane %v1818_v33, %v8970_v24  ;;  %v1833_v38 = vrot.slane %v1819_v42, %v8970_v24  ;;  %v2650_v52 = vcombine.low %v1760_v17, %v1767_v44  ;;  %v7892_v26 = vcombine.high %v1760_v17, %v1767_v44 }
 0x3dd   : > { %v5481_v40 = vpack.i.b16 %v5041_v7, %v4991_v0  ;;  %v5483_v2 = vshrl.u32 %v5041_v7, 16  ;;  %v5487_v48 = vpack.i.b16 %v5042_v49, %v4992_v21  ;;  %v5489_v4 = vshrl.u32 %v5042_v49, 16 }
 0x3de   : > { %v1842_v27 = vrot.slane %v1834_v20, %v8970_v24  ;;  %v1849_v37 = vrot.slane %v1835_v3, %v8970_v24  ;;  %v2657_v55 = vrot.slane %v2650_v52, %v8968_v29  ;;  %v2665_v30 = vrot.slane %v7892_v26, %v8968_v29 }
 0x3df   : > { %v5484_v9 = vpack.i.b16 %v5483_v2, %v5482_v23  ;;  %v5490_v61 = vpack.i.b16 %v5489_v4, %v5488_v1  ;;  %v8010_v35 = vcombine.low %v5481_v40, %v5481_v40  ;;  %v8011_v32 = vcombine.high %v5481_v40, %v5481_v40 }
 0x3e0   : > { %v8042_v54 = vcombine.low %v5487_v48, %v5487_v48  ;;  %v8043_v34 = vcombine.high %v5487_v48, %v5487_v48  ;;  %v2666_v12 = vcombine.low %v1776_v18, %v1783_v56  ;;  %v7893_v39 = vcombine.high %v1776_v18, %v1783_v56 }
 0x3e1   : > { %v8026_v6 = vcombine.low %v5484_v9, %v5484_v9  ;;  %v8027_v10 = vcombine.high %v5484_v9, %v5484_v9  ;;  %v8058_v15 = vcombine.low %v5490_v61, %v5490_v61  ;;  %v8059_v36 = vcombine.high %v5490_v61, %v5490_v61  ;;  %5737 = vst.msk [vmem:[%s9302_s28 + $0x18] sm:$0xf] %vm3338_vm1, %v8010_v35 }
 0x3e2   : > { %5738 = vst.msk [vmem:[%s9302_s28 + $0x1c] sm:$0xf] %vm3338_vm1, %v8011_v32  ;;  %5769 = vst.msk [vmem:[%s9302_s28 + $0x98] sm:$0xf] %vm3338_vm1, %v8042_v54  ;;  %v2673_v16 = vrot.slane %v2666_v12, %v8968_v29  ;;  %v2681_v17 = vrot.slane %v7893_v39, %v8968_v29  ;;  %v2682_v25 = vcombine.low %v2657_v55, %v2665_v30  ;;  %v1151_v57 = vshrl.u32 %v1023_v51, 16 }
 0x3e3   : > { %5770 = vst.msk [vmem:[%s9302_s28 + $0x9c] sm:$0xf] %vm3338_vm1, %v8043_v34  ;;  %v2700_v47 = vcombine.low %v1826_v43, %v1833_v38  ;;  %5753 = vst.msk [vmem:[%s9302_s28 + $0x58] sm:$0xf] %vm3338_vm1, %v8026_v6  ;;  %v7894_v44 = vcombine.high %v1826_v43, %v1833_v38  ;;  %v2716_v14 = vcombine.low %v1842_v27, %v1849_v37  ;;  %v10505_v1 = vshrl.u32 %v8880_v59, 16 }
 0x3e4   : > { %5754 = vst.msk [vmem:[%s9302_s28 + $0x5c] sm:$0xf] %vm3338_vm1, %v8027_v10  ;;  %5785 = vst.msk [vmem:[%s9302_s28 + $0xd8] sm:$0xf] %vm3338_vm1, %v8058_v15  ;;  %v7895_v11 = vcombine.high %v1842_v27, %v1849_v37  ;;  %v1148_v58 = vpack.i.b16 %v1023_v51, %v8880_v59  ;;  %v2689_v0 = vrot.slane %v2682_v25, %v8970_v24  ;;  %v3528_v43 = vshrl.u32 %v3420_v62, 16  ;;  %v3436_v27 = vpop.permute.xlu0 %3435  ;;  %v1055_v37 = vpop.permute.xlu1 %1054 }
 0x3e5   : > { %5786 = vst.msk [vmem:[%s9302_s28 + $0xdc] sm:$0xf] %vm3338_vm1, %v8059_v36  ;;  %v2690_v21 = vcombine.low %v2673_v16, %v2681_v17  ;;  %v2707_v18 = vrot.slane %v2700_v47, %v8968_v29  ;;  %v2715_v41 = vrot.slane %v7894_v44, %v8968_v29  ;;  %v2723_v22 = vrot.slane %v2716_v14, %v8968_v29 }
 0x3e6   : > { %v2731_v56 = vrot.slane %v7895_v11, %v8968_v29  ;;  %v1854_v19 = vcombine.high %v1148_v58, %v8966_v28  ;;  %v1152_v33 = vpack.i.b16 %v1151_v57, %v10505_v1  ;;  %v9881_v42 = vrot.slane %v1148_v58, %v8968_v29 }
 0x3e7   : > { %v2697_v23 = vrot.slane %v2690_v21, %v8970_v24  ;;  %v3525_v7 = vpack.i.b16 %v3420_v62, %v8870_v53  ;;  %v2732_v49 = vcombine.low %v2707_v18, %v2715_v41  ;;  %v10506_v48 = vshrl.u32 %v8870_v53, 16 }
 0x3e8   : > { %v2740_v20 = vcombine.low %v2723_v22, %v2731_v56  ;;  %v9885_v3 = vrot.slane %v1854_v19, %v8968_v29  ;;  %v1920_v26 = vcombine.high %v1152_v33, %v8966_v28  ;;  %v9889_v40 = vrot.slane %v1152_v33, %v8968_v29  ;;  %v3452_v57 = vpop.permute.xlu0 %3451 }
 0x3e9   : > { %v2698_v38 = vcombine.low %v2689_v0, %v2697_v23  ;;  %v2699_v52 = vcombine.high %v2689_v0, %v2697_v23  ;;  %v2739_v59 = vrot.slane %v2732_v49, %v8970_v24  ;;  %v3529_v4 = vpack.i.b16 %v3528_v43, %v10506_v48 }
 0x3ea   : > { %v2747_v2 = vrot.slane %v2740_v20, %v8970_v24  ;;  %v4115_v51 = vcombine.high %v3525_v7, %v8966_v28  ;;  %v9897_v9 = vrot.slane %v1920_v26, %v8968_v29  ;;  %v9900_v61 = vrot.slane %v3525_v7, %v8968_v29 }
 0x3eb   : > { %v3101_v55 = vshrl.u32 %v2698_v38, 16  ;;  %v3107_v30 = vshrl.u32 %v2699_v52, 16  ;;  %v4181_v53 = vcombine.high %v3529_v4, %v8966_v28  ;;  %v9907_v34 = vrot.slane %v3529_v4, %v8968_v29 }
 0x3ec   : > { %v2748_v35 = vcombine.low %v2739_v59, %v2747_v2  ;;  %v2749_v32 = vcombine.high %v2739_v59, %v2747_v2  ;;  %v9903_v54 = vrot.slane %v4115_v51, %v8968_v29  ;;  %v1158_v12 = vshrl.u32 %v1039_v31, 16 }
 0x3ed   : > { %v3535_v39 = vshrl.u32 %v3436_v27, 16  ;;  %v1156_v6 = vpack.i.b16 %v1055_v37, %v1039_v31  ;;  %v9910_v17 = vrot.slane %v4181_v53, %v8968_v29  ;;  %v1159_v25 = vshrl.u32 %v1055_v37, 16 }
 0x3ee   : > { %v3100_v10 = vpack.i.b16 %v2748_v35, %v2698_v38  ;;  %v3102_v15 = vshrl.u32 %v2748_v35, 16  ;;  %v3106_v36 = vpack.i.b16 %v2749_v32, %v2699_v52  ;;  %v3108_v16 = vshrl.u32 %v2749_v32, 16 }
 0x3ef   : > { %v1869_v47 = vcombine.high %v1156_v6, %v8966_v28  ;;  %v1876_v44 = vrot.slane %v1156_v6, %v8968_v29  ;;  %v1160_v21 = vpack.i.b16 %v1159_v25, %v1158_v12  ;;  %v3533_v43 = vpack.i.b16 %v3452_v57, %v3436_v27 }
 0x3f0   : > { %v3103_v14 = vpack.i.b16 %v3102_v15, %v3101_v55  ;;  %v3109_v11 = vpack.i.b16 %v3108_v16, %v3107_v30  ;;  %v7916_v58 = vcombine.low %v3100_v10, %v3100_v10  ;;  %v7917_v62 = vcombine.high %v3100_v10, %v3100_v10 }
 0x3f1   : > { %v7948_v31 = vcombine.low %v3106_v36, %v3106_v36  ;;  %v7949_v0 = vcombine.high %v3106_v36, %v3106_v36  ;;  %v1883_v18 = vrot.slane %v1869_v47, %v8968_v29  ;;  %v1884_v23 = vcombine.low %v9881_v42, %v1876_v44 }
 0x3f2   : > { %v7932_v41 = vcombine.low %v3103_v14, %v3103_v14  ;;  %v7933_v22 = vcombine.high %v3103_v14, %v3103_v14  ;;  %v7964_v56 = vcombine.low %v3109_v11, %v3109_v11  ;;  %v7965_v19 = vcombine.high %v3109_v11, %v3109_v11  ;;  %3347 = vst.msk [vmem:[%s9162_s11 + $0x20] sm:$0xf] %vm3338_vm1, %v7916_v58 }
 0x3f3   : > { %3348 = vst.msk [vmem:[%s9162_s11 + $0x24] sm:$0xf] %vm3338_vm1, %v7917_v62  ;;  %3379 = vst.msk [vmem:[%s9162_s11 + $0xa0] sm:$0xf] %vm3338_vm1, %v7948_v31  ;;  %v1885_v1 = vcombine.high %v9881_v42, %v1876_v44  ;;  %v1900_v33 = vcombine.low %v9885_v3, %v1883_v18  ;;  %v1901_v7 = vcombine.high %v9885_v3, %v1883_v18  ;;  %v3536_v38 = vshrl.u32 %v3452_v57, 16 }
 0x3f4   : > { %3380 = vst.msk [vmem:[%s9162_s11 + $0xa4] sm:$0xf] %vm3338_vm1, %v7949_v0  ;;  %3363 = vst.msk [vmem:[%s9162_s11 + $0x60] sm:$0xf] %vm3338_vm1, %v7932_v41  ;;  %v1935_v49 = vcombine.high %v1160_v21, %v8966_v28  ;;  %v1942_v20 = vrot.slane %v1160_v21, %v8968_v29  ;;  %v1892_v42 = vrot.slane %v1884_v23, %v8970_v24 }
 0x3f5   : > { %3364 = vst.msk [vmem:[%s9162_s11 + $0x64] sm:$0xf] %vm3338_vm1, %v7933_v22  ;;  %3395 = vst.msk [vmem:[%s9162_s11 + $0xe0] sm:$0xf] %vm3338_vm1, %v7964_v56  ;;  %v1899_v52 = vrot.slane %v1885_v1, %v8970_v24  ;;  %v1908_v3 = vrot.slane %v1900_v33, %v8970_v24  ;;  %v1915_v26 = vrot.slane %v1901_v7, %v8970_v24 }
 0x3f6   : > { %3396 = vst.msk [vmem:[%s9162_s11 + $0xe4] sm:$0xf] %vm3338_vm1, %v7965_v19  ;;  %v1949_v59 = vrot.slane %v1935_v49, %v8968_v29  ;;  %v1950_v2 = vcombine.low %v9889_v40, %v1942_v20  ;;  %v1951_v48 = vcombine.high %v9889_v40, %v1942_v20  ;;  %v3537_v4 = vpack.i.b16 %v3536_v38, %v3535_v39  ;;  %v9970_v38 = vpop.permute.xlu1 %3421 }
 0x3f7   : > { %v2750_v51 = vcombine.low %v1892_v42, %v1899_v52  ;;  %v7896_v37 = vcombine.high %v1892_v42, %v1899_v52  ;;  %v2766_v55 = vcombine.low %v1908_v3, %v1915_v26  ;;  %v7897_v27 = vcombine.high %v1908_v3, %v1915_v26 }
 0x3f8   : > { %v1958_v30 = vrot.slane %v1950_v2, %v8970_v24  ;;  %v1965_v35 = vrot.slane %v1951_v48, %v8970_v24  ;;  %v1966_v32 = vcombine.low %v9897_v9, %v1949_v59  ;;  %v1967_v53 = vcombine.high %v9897_v9, %v1949_v59 }
 0x3f9   : > { %v2757_v12 = vrot.slane %v2750_v51, %v8968_v29  ;;  %v2765_v6 = vrot.slane %v7896_v37, %v8968_v29  ;;  %v2773_v10 = vrot.slane %v2766_v55, %v8968_v29  ;;  %v2781_v40 = vrot.slane %v7897_v27, %v8968_v29 }
 0x3fa   : > { %v1974_v39 = vrot.slane %v1966_v32, %v8970_v24  ;;  %v1981_v15 = vrot.slane %v1967_v53, %v8970_v24  ;;  %v2800_v36 = vcombine.low %v1958_v30, %v1965_v35  ;;  %v7898_v16 = vcombine.high %v1958_v30, %v1965_v35 }
 0x3fb   : > { %v2782_v25 = vcombine.low %v2757_v12, %v2765_v6  ;;  %v2790_v47 = vcombine.low %v2773_v10, %v2781_v40  ;;  %v4130_v44 = vcombine.high %v3533_v43, %v8966_v28  ;;  %v4137_v9 = vrot.slane %v3533_v43, %v8968_v29 }
 0x3fc   : > { %v2807_v14 = vrot.slane %v2800_v36, %v8968_v29  ;;  %v2815_v11 = vrot.slane %v7898_v16, %v8968_v29  ;;  %v2816_v58 = vcombine.low %v1974_v39, %v1981_v15  ;;  %v7899_v62 = vcombine.high %v1974_v39, %v1981_v15 }
 0x3fd   : > { %v2789_v31 = vrot.slane %v2782_v25, %v8970_v24  ;;  %v2797_v0 = vrot.slane %v2790_v47, %v8970_v24  ;;  %v4144_v21 = vrot.slane %v4130_v44, %v8968_v29  ;;  %v4145_v18 = vcombine.low %v9900_v61, %v4137_v9 }
 0x3fe   : > { %v2823_v57 = vrot.slane %v2816_v58, %v8968_v29  ;;  %v2831_v41 = vrot.slane %v7899_v62, %v8968_v29  ;;  %v2832_v22 = vcombine.low %v2807_v14, %v2815_v11  ;;  %v4146_v56 = vcombine.high %v9900_v61, %v4137_v9 }
 0x3ff   : > { %v2798_v19 = vcombine.low %v2789_v31, %v2797_v0  ;;  %v2799_v23 = vcombine.high %v2789_v31, %v2797_v0  ;;  %v4153_v1 = vrot.slane %v4145_v18, %v8970_v24  ;;  %v4161_v33 = vcombine.low %v9903_v54, %v4144_v21 }
 0x400   : > { %v2839_v7 = vrot.slane %v2832_v22, %v8970_v24  ;;  %v2840_v49 = vcombine.low %v2823_v57, %v2831_v41  ;;  %v4160_v20 = vrot.slane %v4146_v56, %v8970_v24  ;;  %v4162_v43 = vcombine.high %v9903_v54, %v4144_v21  ;;  %v1025_v56 = vpop.permute.xlu0 %1024 }
 0x401   : > { %v3113_v42 = vshrl.u32 %v2798_v19, 16  ;;  %v3119_v52 = vshrl.u32 %v2799_v23, 16  ;;  %v4169_v3 = vrot.slane %v4161_v33, %v8970_v24  ;;  %v4196_v61 = vcombine.high %v3537_v4, %v8966_v28 }
 0x402   : > { %v2847_v26 = vrot.slane %v2840_v49, %v8970_v24  ;;  %v4176_v59 = vrot.slane %v4162_v43, %v8970_v24  ;;  %v4203_v2 = vrot.slane %v3537_v4, %v8968_v29  ;;  %v5043_v48 = vcombine.low %v4153_v1, %v4160_v20 }
 0x403   : > { %v4210_v51 = vrot.slane %v4196_v61, %v8968_v29  ;;  %v7988_v37 = vcombine.high %v4153_v1, %v4160_v20  ;;  %v3541_v54 = vpack.i.b16 %v9970_v38, %v8882_v60  ;;  %v3543_v55 = vshrl.u32 %v8882_v60, 16 }
 0x404   : > { %v2848_v27 = vcombine.low %v2839_v7, %v2847_v26  ;;  %v2849_v30 = vcombine.high %v2839_v7, %v2847_v26  ;;  %v4211_v35 = vcombine.low %v9907_v34, %v4203_v2  ;;  %v4212_v32 = vcombine.high %v9907_v34, %v4203_v2  ;;  %v3438_v7 = vpop.permute.xlu1 %3437 }
 0x405   : > { %v4227_v53 = vcombine.low %v9910_v17, %v4210_v51  ;;  %v4228_v12 = vcombine.high %v9910_v17, %v4210_v51  ;;  %v5050_v4 = vrot.slane %v5043_v48, %v8968_v29  ;;  %v5058_v6 = vrot.slane %v7988_v37, %v8968_v29 }
 0x406   : > { %v3112_v10 = vpack.i.b16 %v2848_v27, %v2798_v19  ;;  %v3114_v40 = vshrl.u32 %v2848_v27, 16  ;;  %v3118_v39 = vpack.i.b16 %v2849_v30, %v2799_v23  ;;  %v3120_v15 = vshrl.u32 %v2849_v30, 16 }
 0x407   : > { %v4219_v60 = vrot.slane %v4211_v35, %v8970_v24  ;;  %v4226_v36 = vrot.slane %v4212_v32, %v8970_v24  ;;  %v4235_v34 = vrot.slane %v4227_v53, %v8970_v24  ;;  %v4242_v16 = vrot.slane %v4228_v12, %v8970_v24  ;;  %v10029_v12 = vpop.permute.xlu0 %1040 }
 0x408   : > { %v3115_v17 = vpack.i.b16 %v3114_v40, %v3113_v42  ;;  %v3121_v25 = vpack.i.b16 %v3120_v15, %v3119_v52  ;;  %v7918_v47 = vcombine.low %v3112_v10, %v3112_v10  ;;  %v7919_v44 = vcombine.high %v3112_v10, %v3112_v10  ;;  %v3454_v40 = vpop.permute.xlu1 %3453 }
 0x409   : > { %v7950_v9 = vcombine.low %v3118_v39, %v3118_v39  ;;  %v7951_v14 = vcombine.high %v3118_v39, %v3118_v39  ;;  %v5059_v11 = vcombine.low %v4169_v3, %v4176_v59  ;;  %v7989_v58 = vcombine.high %v4169_v3, %v4176_v59 }
 0x40a   : > { %v7934_v62 = vcombine.low %v3115_v17, %v3115_v17  ;;  %v7935_v31 = vcombine.high %v3115_v17, %v3115_v17  ;;  %v7966_v0 = vcombine.low %v3121_v25, %v3121_v25  ;;  %v7967_v21 = vcombine.high %v3121_v25, %v3121_v25  ;;  %3349 = vst.msk [vmem:[%s9162_s11 + $0x28] sm:$0xf] %vm3338_vm1, %v7918_v47 }
 0x40b   : > { %3350 = vst.msk [vmem:[%s9162_s11 + $0x2c] sm:$0xf] %vm3338_vm1, %v7919_v44  ;;  %3381 = vst.msk [vmem:[%s9162_s11 + $0xa8] sm:$0xf] %vm3338_vm1, %v7950_v9  ;;  %v5066_v18 = vrot.slane %v5059_v11, %v8968_v29  ;;  %v5074_v57 = vrot.slane %v7989_v58, %v8968_v29  ;;  %v5075_v41 = vcombine.low %v5050_v4, %v5058_v6  ;;  %v3544_v33 = vshrl.u32 %v9970_v38, 16 }
 0x40c   : > { %3382 = vst.msk [vmem:[%s9162_s11 + $0xac] sm:$0xf] %vm3338_vm1, %v7951_v14  ;;  %v5093_v22 = vcombine.low %v4219_v60, %v4226_v36  ;;  %3365 = vst.msk [vmem:[%s9162_s11 + $0x68] sm:$0xf] %vm3338_vm1, %v7934_v62  ;;  %v7990_v19 = vcombine.high %v4219_v60, %v4226_v36  ;;  %v5109_v23 = vcombine.low %v4235_v34, %v4242_v16  ;;  %v1166_v48 = vshrl.u32 %v8892_v13, 16 }
 0x40d   : > { %3366 = vst.msk [vmem:[%s9162_s11 + $0x6c] sm:$0xf] %vm3338_vm1, %v7935_v31  ;;  %3397 = vst.msk [vmem:[%s9162_s11 + $0xe8] sm:$0xf] %vm3338_vm1, %v7966_v0  ;;  %v7991_v1 = vcombine.high %v4235_v34, %v4242_v16  ;;  %v5082_v49 = vrot.slane %v5075_v41, %v8970_v24  ;;  %v5083_v20 = vcombine.low %v5066_v18, %v5074_v57  ;;  %v1167_v53 = vshrl.u32 %v1025_v56, 16 }
 0x40e   : > { %3398 = vst.msk [vmem:[%s9162_s11 + $0xec] sm:$0xf] %vm3338_vm1, %v7967_v21  ;;  %v5100_v43 = vrot.slane %v5093_v22, %v8968_v29  ;;  %v4247_v42 = vcombine.high %v3541_v54, %v8966_v28  ;;  %v5108_v52 = vrot.slane %v7990_v19, %v8968_v29  ;;  %v5116_v3 = vrot.slane %v5109_v23, %v8968_v29 }
 0x40f   : > { %v5124_v61 = vrot.slane %v7991_v1, %v8968_v29  ;;  %v3545_v26 = vpack.i.b16 %v3544_v33, %v3543_v55  ;;  %v5090_v59 = vrot.slane %v5083_v20, %v8970_v24  ;;  %v10018_v2 = vrot.slane %v3541_v54, %v8968_v29 }
 0x410   : > { %v10021_v38 = vrot.slane %v4247_v42, %v8968_v29  ;;  %v5125_v51 = vcombine.low %v5100_v43, %v5108_v52  ;;  %v1164_v55 = vpack.i.b16 %v1025_v56, %v8892_v13  ;;  %v3551_v10 = vshrl.u32 %v3438_v7, 16 }
 0x411   : > { %v5133_v37 = vcombine.low %v5116_v3, %v5124_v61  ;;  %v4313_v27 = vcombine.high %v3545_v26, %v8966_v28  ;;  %v10026_v30 = vrot.slane %v3545_v26, %v8968_v29  ;;  %v5091_v35 = vcombine.low %v5082_v49, %v5090_v59 }
 0x412   : > { %v5092_v32 = vcombine.high %v5082_v49, %v5090_v59  ;;  %v5132_v54 = vrot.slane %v5125_v51, %v8970_v24  ;;  %v1168_v60 = vpack.i.b16 %v1167_v53, %v1166_v48  ;;  %v1986_v36 = vcombine.high %v1164_v55, %v8966_v28 }
 0x413   : > { %v5140_v4 = vrot.slane %v5133_v37, %v8970_v24  ;;  %v10034_v6 = vrot.slane %v4313_v27, %v8968_v29  ;;  %v5494_v39 = vshrl.u32 %v5091_v35, 16  ;;  %v10038_v13 = vrot.slane %v1164_v55, %v8968_v29 }
 0x414   : > { %v5500_v15 = vshrl.u32 %v5092_v32, 16  ;;  %v1174_v17 = vshrl.u32 %v10029_v12, 16  ;;  %v10042_v25 = vrot.slane %v1986_v36, %v8968_v29  ;;  %v2052_v47 = vcombine.high %v1168_v60, %v8966_v28 }
 0x415   : > { %v5141_v34 = vcombine.low %v5132_v54, %v5140_v4  ;;  %v5142_v16 = vcombine.high %v5132_v54, %v5140_v4  ;;  %v10046_v44 = vrot.slane %v1168_v60, %v8968_v29  ;;  %v3549_v9 = vpack.i.b16 %v3454_v40, %v3438_v7  ;;  %v1057_v7 = vpop.permute.xlu0 %1056 }
 0x416   : > { %v10049_v31 = vrot.slane %v2052_v47, %v8968_v29  ;;  %v3552_v0 = vshrl.u32 %v3454_v40, 16  ;;  %v1172_v51 = vpack.i.b16 %v1057_v7, %v10029_v12  ;;  %v1175_v37 = vshrl.u32 %v1057_v7, 16 }
 0x417   : > { %v5493_v14 = vpack.i.b16 %v5141_v34, %v5091_v35  ;;  %v5495_v11 = vshrl.u32 %v5141_v34, 16  ;;  %v5499_v58 = vpack.i.b16 %v5142_v16, %v5092_v32  ;;  %v5501_v62 = vshrl.u32 %v5142_v16, 16 }
 0x418   : > { %v4262_v21 = vcombine.high %v3549_v9, %v8966_v28  ;;  %v4269_v18 = vrot.slane %v3549_v9, %v8968_v29  ;;  %v3553_v1 = vpack.i.b16 %v3552_v0, %v3551_v10  ;;  %v1176_v54 = vpack.i.b16 %v1175_v37, %v1174_v17 }
 0x419   : > { %v5496_v57 = vpack.i.b16 %v5495_v11, %v5494_v39  ;;  %v5502_v41 = vpack.i.b16 %v5501_v62, %v5500_v15  ;;  %v8012_v22 = vcombine.low %v5493_v14, %v5493_v14  ;;  %v8013_v56 = vcombine.high %v5493_v14, %v5493_v14 }
 0x41a   : > { %v8044_v19 = vcombine.low %v5499_v58, %v5499_v58  ;;  %v8045_v23 = vcombine.high %v5499_v58, %v5499_v58  ;;  %v4276_v33 = vrot.slane %v4262_v21, %v8968_v29  ;;  %v4277_v52 = vcombine.low %v10018_v2, %v4269_v18 }
 0x41b   : > { %v8028_v49 = vcombine.low %v5496_v57, %v5496_v57  ;;  %v8029_v20 = vcombine.high %v5496_v57, %v5496_v57  ;;  %v8060_v43 = vcombine.low %v5502_v41, %v5502_v41  ;;  %v8061_v42 = vcombine.high %v5502_v41, %v5502_v41  ;;  %5739 = vst.msk [vmem:[%s9302_s28 + $0x20] sm:$0xf] %vm3338_vm1, %v8012_v22 }
 0x41c   : > { %5740 = vst.msk [vmem:[%s9302_s28 + $0x24] sm:$0xf] %vm3338_vm1, %v8013_v56  ;;  %5771 = vst.msk [vmem:[%s9302_s28 + $0xa0] sm:$0xf] %vm3338_vm1, %v8044_v19  ;;  %v4278_v3 = vcombine.high %v10018_v2, %v4269_v18  ;;  %v4293_v61 = vcombine.low %v10021_v38, %v4276_v33  ;;  %v4294_v26 = vcombine.high %v10021_v38, %v4276_v33 }
 0x41d   : > { %5772 = vst.msk [vmem:[%s9302_s28 + $0xa4] sm:$0xf] %vm3338_vm1, %v8045_v23  ;;  %5755 = vst.msk [vmem:[%s9302_s28 + $0x60] sm:$0xf] %vm3338_vm1, %v8028_v49  ;;  %v4328_v59 = vcombine.high %v3553_v1, %v8966_v28  ;;  %v4335_v48 = vrot.slane %v3553_v1, %v8968_v29  ;;  %v4285_v2 = vrot.slane %v4277_v52, %v8970_v24 }
 0x41e   : > { %5756 = vst.msk [vmem:[%s9302_s28 + $0x64] sm:$0xf] %vm3338_vm1, %v8029_v20  ;;  %5787 = vst.msk [vmem:[%s9302_s28 + $0xe0] sm:$0xf] %vm3338_vm1, %v8060_v43  ;;  %v4292_v27 = vrot.slane %v4278_v3, %v8970_v24  ;;  %v4301_v38 = vrot.slane %v4293_v61, %v8970_v24  ;;  %v4308_v35 = vrot.slane %v4294_v26, %v8970_v24 }
 0x41f   : > { %5788 = vst.msk [vmem:[%s9302_s28 + $0xe4] sm:$0xf] %vm3338_vm1, %v8061_v42  ;;  %v4342_v32 = vrot.slane %v4328_v59, %v8968_v29  ;;  %v4343_v55 = vcombine.low %v10026_v30, %v4335_v48  ;;  %v4344_v53 = vcombine.high %v10026_v30, %v4335_v48  ;;  %v2001_v0 = vcombine.high %v1172_v51, %v8966_v28  ;;  %v10110_v48 = vpop.permute.xlu1 %1026 }
 0x420   : > { %v5143_v4 = vcombine.low %v4285_v2, %v4292_v27  ;;  %v7992_v10 = vcombine.high %v4285_v2, %v4292_v27  ;;  %v5159_v40 = vcombine.low %v4301_v38, %v4308_v35  ;;  %v7993_v12 = vcombine.high %v4301_v38, %v4308_v35 }
 0x421   : > { %v4351_v39 = vrot.slane %v4343_v55, %v8970_v24  ;;  %v4358_v15 = vrot.slane %v4344_v53, %v8970_v24  ;;  %v4359_v60 = vcombine.low %v10034_v6, %v4342_v32  ;;  %v4360_v36 = vcombine.high %v10034_v6, %v4342_v32 }
 0x422   : > { %v5150_v34 = vrot.slane %v5143_v4, %v8968_v29  ;;  %v5158_v16 = vrot.slane %v7992_v10, %v8968_v29  ;;  %v5166_v47 = vrot.slane %v5159_v40, %v8968_v29  ;;  %v5174_v30 = vrot.slane %v7993_v12, %v8968_v29 }
 0x423   : > { %v4367_v17 = vrot.slane %v4359_v60, %v8970_v24  ;;  %v4374_v9 = vrot.slane %v4360_v36, %v8970_v24  ;;  %v5193_v14 = vcombine.low %v4351_v39, %v4358_v15  ;;  %v7994_v11 = vcombine.high %v4351_v39, %v4358_v15 }
 0x424   : > { %v5175_v58 = vcombine.low %v5150_v34, %v5158_v16  ;;  %v5183_v62 = vcombine.low %v5166_v47, %v5174_v30  ;;  %v2008_v6 = vrot.slane %v1172_v51, %v8968_v29  ;;  %v2015_v19 = vrot.slane %v2001_v0, %v8968_v29 }
 0x425   : > { %v5200_v21 = vrot.slane %v5193_v14, %v8968_v29  ;;  %v5208_v18 = vrot.slane %v7994_v11, %v8968_v29  ;;  %v5209_v57 = vcombine.low %v4367_v17, %v4374_v9  ;;  %v7995_v41 = vcombine.high %v4367_v17, %v4374_v9 }
 0x426   : > { %v5182_v22 = vrot.slane %v5175_v58, %v8970_v24  ;;  %v5190_v56 = vrot.slane %v5183_v62, %v8970_v24  ;;  %v2016_v23 = vcombine.low %v10038_v13, %v2008_v6  ;;  %v2017_v49 = vcombine.high %v10038_v13, %v2008_v6 }
 0x427   : > { %v5216_v1 = vrot.slane %v5209_v57, %v8968_v29  ;;  %v5224_v33 = vrot.slane %v7995_v41, %v8968_v29  ;;  %v5225_v7 = vcombine.low %v5200_v21, %v5208_v18  ;;  %v2032_v52 = vcombine.low %v10042_v25, %v2015_v19 }
 0x428   : > { %v5191_v20 = vcombine.low %v5182_v22, %v5190_v56  ;;  %v5192_v43 = vcombine.high %v5182_v22, %v5190_v56  ;;  %v2024_v42 = vrot.slane %v2016_v23, %v8970_v24  ;;  %v2031_v26 = vrot.slane %v2017_v49, %v8970_v24 }
 0x429   : > { %v5232_v3 = vrot.slane %v5225_v7, %v8970_v24  ;;  %v5233_v61 = vcombine.low %v5216_v1, %v5224_v33  ;;  %v2033_v59 = vcombine.high %v10042_v25, %v2015_v19  ;;  %v2040_v2 = vrot.slane %v2032_v52, %v8970_v24  ;;  %v3424_v33 = vpop.permute.xlu0 %3423 }
 0x42a   : > { %v5506_v51 = vshrl.u32 %v5191_v20, 16  ;;  %v5512_v37 = vshrl.u32 %v5192_v43, 16  ;;  %v2067_v13 = vcombine.high %v1176_v54, %v8966_v28  ;;  %v2074_v35 = vrot.slane %v1176_v54, %v8968_v29 }
 0x42b   : > { %v5240_v27 = vrot.slane %v5233_v61, %v8970_v24  ;;  %v2047_v38 = vrot.slane %v2033_v59, %v8970_v24  ;;  %v2850_v32 = vcombine.low %v2024_v42, %v2031_v26  ;;  %v7900_v53 = vcombine.high %v2024_v42, %v2031_v26  ;;  %v1043_v42 = vpop.permute.xlu1 %1042 }
 0x42c   : > { %v2081_v55 = vrot.slane %v2067_v13, %v8968_v29  ;;  %v1180_v25 = vpack.i.b16 %v10110_v48, %v8904_v5  ;;  %v1182_v4 = vshrl.u32 %v8904_v5, 16  ;;  %v2082_v12 = vcombine.low %v10046_v44, %v2074_v35 }
 0x42d   : > { %v5241_v10 = vcombine.low %v5232_v3, %v5240_v27  ;;  %v5242_v40 = vcombine.high %v5232_v3, %v5240_v27  ;;  %v2083_v39 = vcombine.high %v10046_v44, %v2074_v35  ;;  %v2857_v54 = vrot.slane %v2850_v32, %v8968_v29 }
 0x42e   : > { %v2098_v15 = vcombine.low %v10049_v31, %v2081_v55  ;;  %v2099_v60 = vcombine.high %v10049_v31, %v2081_v55  ;;  %v2865_v36 = vrot.slane %v7900_v53, %v8968_v29  ;;  %v2090_v5 = vrot.slane %v2082_v12, %v8970_v24 }
 0x42f   : > { %v5505_v34 = vpack.i.b16 %v5241_v10, %v5191_v20  ;;  %v5507_v16 = vshrl.u32 %v5241_v10, 16  ;;  %v5511_v47 = vpack.i.b16 %v5242_v40, %v5192_v43  ;;  %v5513_v30 = vshrl.u32 %v5242_v40, 16 }
 0x430   : > { %v2097_v17 = vrot.slane %v2083_v39, %v8970_v24  ;;  %v2106_v44 = vrot.slane %v2098_v15, %v8970_v24  ;;  %v2113_v9 = vrot.slane %v2099_v60, %v8970_v24  ;;  %v2866_v6 = vcombine.low %v2040_v2, %v2047_v38  ;;  %v10169_v39 = vpop.permute.xlu0 %3439 }
 0x431   : > { %v5508_v31 = vpack.i.b16 %v5507_v16, %v5506_v51  ;;  %v5514_v14 = vpack.i.b16 %v5513_v30, %v5512_v37  ;;  %v8014_v11 = vcombine.low %v5505_v34, %v5505_v34  ;;  %v8015_v58 = vcombine.high %v5505_v34, %v5505_v34 }
 0x432   : > { %v8046_v62 = vcombine.low %v5511_v47, %v5511_v47  ;;  %v8047_v0 = vcombine.high %v5511_v47, %v5511_v47  ;;  %v7901_v21 = vcombine.high %v2040_v2, %v2047_v38  ;;  %v2873_v56 = vrot.slane %v2866_v6, %v8968_v29 }
 0x433   : > { %v8030_v18 = vcombine.low %v5508_v31, %v5508_v31  ;;  %v8031_v57 = vcombine.high %v5508_v31, %v5508_v31  ;;  %v8062_v41 = vcombine.low %v5514_v14, %v5514_v14  ;;  %v8063_v22 = vcombine.high %v5514_v14, %v5514_v14  ;;  %5741 = vst.msk [vmem:[%s9302_s28 + $0x28] sm:$0xf] %vm3338_vm1, %v8014_v11 }
 0x434   : > { %5742 = vst.msk [vmem:[%s9302_s28 + $0x2c] sm:$0xf] %vm3338_vm1, %v8015_v58  ;;  %5773 = vst.msk [vmem:[%s9302_s28 + $0xa8] sm:$0xf] %vm3338_vm1, %v8046_v62  ;;  %v2881_v19 = vrot.slane %v7901_v21, %v8968_v29  ;;  %v2882_v23 = vcombine.low %v2857_v54, %v2865_v36  ;;  %v2900_v1 = vcombine.low %v2090_v5, %v2097_v17  ;;  %v1183_v43 = vshrl.u32 %v10110_v48, 16  ;;  %v1059_v36 = vpop.permute.xlu1 %1058 }
 0x435   : > { %5774 = vst.msk [vmem:[%s9302_s28 + $0xac] sm:$0xf] %vm3338_vm1, %v8047_v0  ;;  %5757 = vst.msk [vmem:[%s9302_s28 + $0x68] sm:$0xf] %vm3338_vm1, %v8030_v18  ;;  %v7902_v7 = vcombine.high %v2090_v5, %v2097_v17  ;;  %v2916_v49 = vcombine.low %v2106_v44, %v2113_v9  ;;  %v7903_v20 = vcombine.high %v2106_v44, %v2113_v9  ;;  %v3559_v38 = vshrl.u32 %v8894_v63, 16 }
 0x436   : > { %5758 = vst.msk [vmem:[%s9302_s28 + $0x6c] sm:$0xf] %vm3338_vm1, %v8031_v57  ;;  %5789 = vst.msk [vmem:[%s9302_s28 + $0xe8] sm:$0xf] %vm3338_vm1, %v8062_v41  ;;  %v2889_v52 = vrot.slane %v2882_v23, %v8970_v24  ;;  %v2890_v3 = vcombine.low %v2873_v56, %v2881_v19  ;;  %v2907_v61 = vrot.slane %v2900_v1, %v8968_v29  ;;  %v3560_v12 = vshrl.u32 %v3424_v33, 16 }
 0x437   : > { %5790 = vst.msk [vmem:[%s9302_s28 + $0xec] sm:$0xf] %vm3338_vm1, %v8063_v22  ;;  %v2118_v26 = vcombine.high %v1180_v25, %v8966_v28  ;;  %v2915_v59 = vrot.slane %v7902_v7, %v8968_v29  ;;  %v2923_v51 = vrot.slane %v2916_v49, %v8968_v29  ;;  %v2931_v37 = vrot.slane %v7903_v20, %v8968_v29  ;;  %v3456_v20 = vpop.permute.xlu0 %3455 }
 0x438   : > { %v1184_v2 = vpack.i.b16 %v1183_v43, %v1182_v4  ;;  %v2897_v13 = vrot.slane %v2890_v3, %v8970_v24  ;;  %v10158_v27 = vrot.slane %v1180_v25, %v8968_v29  ;;  %v3557_v4 = vpack.i.b16 %v3424_v33, %v8894_v63 }
 0x439   : > { %v10161_v48 = vrot.slane %v2118_v26, %v8968_v29  ;;  %v2932_v35 = vcombine.low %v2907_v61, %v2915_v59  ;;  %v2940_v32 = vcombine.low %v2923_v51, %v2931_v37  ;;  %v1190_v54 = vshrl.u32 %v1043_v42, 16 }
 0x43a   : > { %v2184_v55 = vcombine.high %v1184_v2, %v8966_v28  ;;  %v10166_v53 = vrot.slane %v1184_v2, %v8968_v29  ;;  %v2898_v10 = vcombine.low %v2889_v52, %v2897_v13  ;;  %v2899_v40 = vcombine.high %v2889_v52, %v2897_v13 }
 0x43b   : > { %v2939_v25 = vrot.slane %v2932_v35, %v8970_v24  ;;  %v2947_v15 = vrot.slane %v2940_v32, %v8970_v24  ;;  %v3561_v47 = vpack.i.b16 %v3560_v12, %v3559_v38  ;;  %v4379_v30 = vcombine.high %v3557_v4, %v8966_v28 }
 0x43c   : > { %v10174_v60 = vrot.slane %v2184_v55, %v8968_v29  ;;  %v3125_v34 = vshrl.u32 %v2898_v10, 16  ;;  %v3131_v16 = vshrl.u32 %v2899_v40, 16  ;;  %v10178_v63 = vrot.slane %v3557_v4, %v8968_v29 }
 0x43d   : > { %v2948_v5 = vcombine.low %v2939_v25, %v2947_v15  ;;  %v2949_v17 = vcombine.high %v2939_v25, %v2947_v15  ;;  %v3567_v44 = vshrl.u32 %v10169_v39, 16  ;;  %v10182_v9 = vrot.slane %v4379_v30, %v8968_v29 }
 0x43e   : > { %v4445_v31 = vcombine.high %v3561_v47, %v8966_v28  ;;  %v10186_v14 = vrot.slane %v3561_v47, %v8968_v29  ;;  %v1188_v11 = vpack.i.b16 %v1059_v36, %v1043_v42  ;;  %v1191_v18 = vshrl.u32 %v1059_v36, 16 }
 0x43f   : > { %v3124_v58 = vpack.i.b16 %v2948_v5, %v2898_v10  ;;  %v3126_v62 = vshrl.u32 %v2948_v5, 16  ;;  %v3130_v0 = vpack.i.b16 %v2949_v17, %v2899_v40  ;;  %v3132_v6 = vshrl.u32 %v2949_v17, 16 }
 0x440   : > { %v10189_v21 = vrot.slane %v4445_v31, %v8968_v29  ;;  %v2133_v57 = vcombine.high %v1188_v11, %v8966_v28  ;;  %v2140_v41 = vrot.slane %v1188_v11, %v8968_v29  ;;  %v1192_v7 = vpack.i.b16 %v1191_v18, %v1190_v54 }
 0x441   : > { %v3127_v22 = vpack.i.b16 %v3126_v62, %v3125_v34  ;;  %v3133_v56 = vpack.i.b16 %v3132_v6, %v3131_v16  ;;  %v7920_v19 = vcombine.low %v3124_v58, %v3124_v58  ;;  %v7921_v23 = vcombine.high %v3124_v58, %v3124_v58 }
 0x442   : > { %v7952_v1 = vcombine.low %v3130_v0, %v3130_v0  ;;  %v7953_v33 = vcombine.high %v3130_v0, %v3130_v0  ;;  %v2147_v49 = vrot.slane %v2133_v57, %v8968_v29  ;;  %v2148_v61 = vcombine.low %v10158_v27, %v2140_v41 }
 0x443   : > { %v7936_v43 = vcombine.low %v3127_v22, %v3127_v22  ;;  %v7937_v42 = vcombine.high %v3127_v22, %v3127_v22  ;;  %v7968_v52 = vcombine.low %v3133_v56, %v3133_v56  ;;  %v7969_v3 = vcombine.high %v3133_v56, %v3133_v56  ;;  %3351 = vst.msk [vmem:[%s9162_s11 + $0x30] sm:$0xf] %vm3338_vm1, %v7920_v19 }
 0x444   : > { %3352 = vst.msk [vmem:[%s9162_s11 + $0x34] sm:$0xf] %vm3338_vm1, %v7921_v23  ;;  %3383 = vst.msk [vmem:[%s9162_s11 + $0xb0] sm:$0xf] %vm3338_vm1, %v7952_v1  ;;  %v2149_v26 = vcombine.high %v10158_v27, %v2140_v41  ;;  %v2164_v59 = vcombine.low %v10161_v48, %v2147_v49  ;;  %v2165_v51 = vcombine.high %v10161_v48, %v2147_v49  ;;  %v3568_v38 = vshrl.u32 %v3456_v20, 16 }
 0x445   : > { %3384 = vst.msk [vmem:[%s9162_s11 + $0xb4] sm:$0xf] %vm3338_vm1, %v7953_v33  ;;  %3367 = vst.msk [vmem:[%s9162_s11 + $0x70] sm:$0xf] %vm3338_vm1, %v7936_v43  ;;  %v2199_v37 = vcombine.high %v1192_v7, %v8966_v28  ;;  %v2206_v2 = vrot.slane %v1192_v7, %v8968_v29  ;;  %v3565_v13 = vpack.i.b16 %v3456_v20, %v10169_v39 }
 0x446   : > { %3368 = vst.msk [vmem:[%s9162_s11 + $0x74] sm:$0xf] %vm3338_vm1, %v7937_v42  ;;  %3399 = vst.msk [vmem:[%s9162_s11 + $0xf0] sm:$0xf] %vm3338_vm1, %v7968_v52  ;;  %v2156_v27 = vrot.slane %v2148_v61, %v8970_v24  ;;  %v2163_v35 = vrot.slane %v2149_v26, %v8970_v24  ;;  %v2172_v48 = vrot.slane %v2164_v59, %v8970_v24 }
 0x447   : > { %3400 = vst.msk [vmem:[%s9162_s11 + $0xf4] sm:$0xf] %vm3338_vm1, %v7969_v3  ;;  %v2179_v32 = vrot.slane %v2165_v51, %v8970_v24  ;;  %v2213_v55 = vrot.slane %v2199_v37, %v8968_v29  ;;  %v2214_v10 = vcombine.low %v10166_v53, %v2206_v2  ;;  %v2215_v40 = vcombine.high %v10166_v53, %v2206_v2  ;;  %v10250_v51 = vpop.permute.xlu1 %3425 }
 0x448   : > { %v3569_v4 = vpack.i.b16 %v3568_v38, %v3567_v44  ;;  %v2950_v12 = vcombine.low %v2156_v27, %v2163_v35  ;;  %v7904_v25 = vcombine.high %v2156_v27, %v2163_v35  ;;  %v4394_v0 = vcombine.high %v3565_v13, %v8966_v28 }
 0x449   : > { %v2966_v15 = vcombine.low %v2172_v48, %v2179_v32  ;;  %v7905_v39 = vcombine.high %v2172_v48, %v2179_v32  ;;  %v2222_v54 = vrot.slane %v2214_v10, %v8970_v24  ;;  %v2229_v36 = vrot.slane %v2215_v40, %v8970_v24 }
 0x44a   : > { %v2230_v34 = vcombine.low %v10174_v60, %v2213_v55  ;;  %v2231_v16 = vcombine.high %v10174_v60, %v2213_v55  ;;  %v2957_v47 = vrot.slane %v2950_v12, %v8968_v29  ;;  %v2965_v30 = vrot.slane %v7904_v25, %v8968_v29 }
 0x44b   : > { %v2973_v5 = vrot.slane %v2966_v15, %v8968_v29  ;;  %v2981_v53 = vrot.slane %v7905_v39, %v8968_v29  ;;  %v3000_v31 = vcombine.low %v2222_v54, %v2229_v36  ;;  %v7906_v11 = vcombine.high %v2222_v54, %v2229_v36 }
 0x44c   : > { %v2238_v17 = vrot.slane %v2230_v34, %v8970_v24  ;;  %v2245_v44 = vrot.slane %v2231_v16, %v8970_v24  ;;  %v2982_v58 = vcombine.low %v2957_v47, %v2965_v30  ;;  %v4401_v60 = vrot.slane %v3565_v13, %v8968_v29 }
 0x44d   : > { %v2990_v62 = vcombine.low %v2973_v5, %v2981_v53  ;;  %v3007_v6 = vrot.slane %v3000_v31, %v8968_v29  ;;  %v3015_v18 = vrot.slane %v7906_v11, %v8968_v29  ;;  %v4408_v19 = vrot.slane %v4394_v0, %v8968_v29 }
 0x44e   : > { %v3016_v57 = vcombine.low %v2238_v17, %v2245_v44  ;;  %v7907_v41 = vcombine.high %v2238_v17, %v2245_v44  ;;  %v2989_v22 = vrot.slane %v2982_v58, %v8970_v24  ;;  %v4409_v23 = vcombine.low %v10178_v63, %v4401_v60 }
 0x44f   : > { %v2997_v56 = vrot.slane %v2990_v62, %v8970_v24  ;;  %v3032_v7 = vcombine.low %v3007_v6, %v3015_v18  ;;  %v4410_v49 = vcombine.high %v10178_v63, %v4401_v60  ;;  %v4425_v52 = vcombine.low %v10182_v9, %v4408_v19 }
 0x450   : > { %v3023_v1 = vrot.slane %v3016_v57, %v8968_v29  ;;  %v3031_v33 = vrot.slane %v7907_v41, %v8968_v29  ;;  %v4417_v42 = vrot.slane %v4409_v23, %v8970_v24  ;;  %v4426_v59 = vcombine.high %v10182_v9, %v4408_v19  ;;  %v10281_v23 = vpop.permute.xlu1 %3441 }
 0x451   : > { %v2998_v20 = vcombine.low %v2989_v22, %v2997_v56  ;;  %v2999_v43 = vcombine.high %v2989_v22, %v2997_v56  ;;  %v3039_v3 = vrot.slane %v3032_v7, %v8970_v24  ;;  %v4424_v26 = vrot.slane %v4410_v49, %v8970_v24 }
 0x452   : > { %v3040_v61 = vcombine.low %v3023_v1, %v3031_v33  ;;  %v4433_v13 = vrot.slane %v4425_v52, %v8970_v24  ;;  %v4460_v63 = vcombine.high %v3569_v4, %v8966_v28  ;;  %v4440_v27 = vrot.slane %v4426_v59, %v8970_v24 }
 0x453   : > { %v3137_v37 = vshrl.u32 %v2998_v20, 16  ;;  %v3143_v2 = vshrl.u32 %v2999_v43, 16  ;;  %v4467_v35 = vrot.slane %v3569_v4, %v8968_v29  ;;  %v5243_v48 = vcombine.low %v4417_v42, %v4424_v26 }
 0x454   : > { %v3047_v38 = vrot.slane %v3040_v61, %v8970_v24  ;;  %v4474_v32 = vrot.slane %v4460_v63, %v8968_v29  ;;  %v7996_v55 = vcombine.high %v4417_v42, %v4424_v26  ;;  %v3573_v9 = vpack.i.b16 %v10250_v51, %v8906_v8 }
 0x455   : > { %v3575_v10 = vshrl.u32 %v8906_v8, 16  ;;  %v4475_v25 = vcombine.low %v10186_v14, %v4467_v35  ;;  %v4476_v15 = vcombine.high %v10186_v14, %v4467_v35  ;;  %v5250_v4 = vrot.slane %v5243_v48, %v8968_v29 }
 0x456   : > { %v3048_v40 = vcombine.low %v3039_v3, %v3047_v38  ;;  %v3049_v12 = vcombine.high %v3039_v3, %v3047_v38  ;;  %v4491_v39 = vcombine.low %v10189_v21, %v4474_v32  ;;  %v4492_v54 = vcombine.high %v10189_v21, %v4474_v32 }
 0x457   : > { %v5258_v36 = vrot.slane %v7996_v55, %v8968_v29  ;;  %v4483_v8 = vrot.slane %v4475_v25, %v8970_v24  ;;  %v4490_v5 = vrot.slane %v4476_v15, %v8970_v24  ;;  %v5259_v62 = vcombine.low %v4433_v13, %v4440_v27 }
 0x458   : > { %v3136_v34 = vpack.i.b16 %v3048_v40, %v2998_v20  ;;  %v3138_v16 = vshrl.u32 %v3048_v40, 16  ;;  %v3142_v47 = vpack.i.b16 %v3049_v12, %v2999_v43  ;;  %v3144_v30 = vshrl.u32 %v3049_v12, 16  ;;  %v3458_v12 = vpop.permute.xlu1 %3457 }
 0x459   : > { %v4499_v14 = vrot.slane %v4491_v39, %v8970_v24  ;;  %v4506_v53 = vrot.slane %v4492_v54, %v8970_v24  ;;  %v7997_v0 = vcombine.high %v4433_v13, %v4440_v27  ;;  %v5266_v41 = vrot.slane %v5259_v62, %v8968_v29 }
 0x45a   : > { %v3139_v21 = vpack.i.b16 %v3138_v16, %v3137_v37  ;;  %v3145_v17 = vpack.i.b16 %v3144_v30, %v3143_v2  ;;  %v7922_v44 = vcombine.low %v3136_v34, %v3136_v34  ;;  %v7923_v31 = vcombine.high %v3136_v34, %v3136_v34  ;;  %v5816_v37 = vpop.permute.xlu0 %5815 }
 0x45b   : > { %v7954_v11 = vcombine.low %v3142_v47, %v3142_v47  ;;  %v7955_v58 = vcombine.high %v3142_v47, %v3142_v47  ;;  %v5274_v22 = vrot.slane %v7997_v0, %v8968_v29  ;;  %v5275_v56 = vcombine.low %v5250_v4, %v5258_v36 }
 0x45c   : > { %v7938_v60 = vcombine.low %v3139_v21, %v3139_v21  ;;  %v7939_v6 = vcombine.high %v3139_v21, %v3139_v21  ;;  %v7970_v18 = vcombine.low %v3145_v17, %v3145_v17  ;;  %v7971_v57 = vcombine.high %v3145_v17, %v3145_v17  ;;  %3353 = vst.msk [vmem:[%s9162_s11 + $0x38] sm:$0xf] %vm3338_vm1, %v7922_v44 }
 0x45d   : > { %3354 = vst.msk [vmem:[%s9162_s11 + $0x3c] sm:$0xf] %vm3338_vm1, %v7923_v31  ;;  %3385 = vst.msk [vmem:[%s9162_s11 + $0xb8] sm:$0xf] %vm3338_vm1, %v7954_v11  ;;  %v5293_v19 = vcombine.low %v4483_v8, %v4490_v5  ;;  %v7998_v1 = vcombine.high %v4483_v8, %v4490_v5  ;;  %v5309_v33 = vcombine.low %v4499_v14, %v4506_v53  ;;  %v3576_v49 = vshrl.u32 %v10250_v51, 16 }
 0x45e   : > { %3386 = vst.msk [vmem:[%s9162_s11 + $0xbc] sm:$0xf] %vm3338_vm1, %v7955_v58  ;;  %3369 = vst.msk [vmem:[%s9162_s11 + $0x78] sm:$0xf] %vm3338_vm1, %v7938_v60  ;;  %v7999_v7 = vcombine.high %v4499_v14, %v4506_v53  ;;  %v5282_v20 = vrot.slane %v5275_v56, %v8970_v24  ;;  %v5283_v43 = vcombine.low %v5266_v41, %v5274_v22  ;;  %v5871_v63 = vshrl.u32 %v8862_v50, 16 }
 0x45f   : > { %3370 = vst.msk [vmem:[%s9162_s11 + $0x7c] sm:$0xf] %vm3338_vm1, %v7939_v6  ;;  %3401 = vst.msk [vmem:[%s9162_s11 + $0xf8] sm:$0xf] %vm3338_vm1, %v7970_v18  ;;  %v5300_v42 = vrot.slane %v5293_v19, %v8968_v29  ;;  %v4511_v52 = vcombine.high %v3573_v9, %v8966_v28  ;;  %v5308_v3 = vrot.slane %v7998_v1, %v8968_v29  ;;  %v5872_v40 = vshrl.u32 %v5816_v37, 16 }
 0x460   : > { %3402 = vst.msk [vmem:[%s9162_s11 + $0xfc] sm:$0xf] %vm3338_vm1, %v7971_v57  ;;  %v5316_v61 = vrot.slane %v5309_v33, %v8968_v29  ;;  %v5324_v26 = vrot.slane %v7999_v7, %v8968_v29  ;;  %v3577_v59 = vpack.i.b16 %v3576_v49, %v3575_v10  ;;  %v5290_v2 = vrot.slane %v5283_v43, %v8970_v24 }
 0x461   : > { %v10300_v13 = vrot.slane %v3573_v9, %v8968_v29  ;;  %v10303_v51 = vrot.slane %v4511_v52, %v8968_v29  ;;  %v5325_v38 = vcombine.low %v5300_v42, %v5308_v3  ;;  %v5869_v10 = vpack.i.b16 %v5816_v37, %v8862_v50 }
 0x462   : > { %v5333_v27 = vcombine.low %v5316_v61, %v5324_v26  ;;  %v4577_v35 = vcombine.high %v3577_v59, %v8966_v28  ;;  %v10308_v48 = vrot.slane %v3577_v59, %v8968_v29  ;;  %v5291_v32 = vcombine.low %v5282_v20, %v5290_v2 }
 0x463   : > { %v5292_v55 = vcombine.high %v5282_v20, %v5290_v2  ;;  %v5332_v9 = vrot.slane %v5325_v38, %v8970_v24  ;;  %v3583_v39 = vshrl.u32 %v10281_v23, 16  ;;  %v5873_v36 = vpack.i.b16 %v5872_v40, %v5871_v63 }
 0x464   : > { %v5340_v25 = vrot.slane %v5333_v27, %v8970_v24  ;;  %v10314_v15 = vrot.slane %v4577_v35, %v8968_v29  ;;  %v5518_v54 = vshrl.u32 %v5291_v32, 16  ;;  %v6471_v34 = vcombine.high %v5869_v10, %v8966_v28 }
 0x465   : > { %v5524_v4 = vshrl.u32 %v5292_v55, 16  ;;  %v6478_v50 = vrot.slane %v5869_v10, %v8968_v29  ;;  %v3581_v30 = vpack.i.b16 %v3458_v12, %v10281_v23  ;;  %v6520_v5 = vcombine.high %v5873_v36, %v8966_v28 }
 0x466   : > { %v5341_v16 = vcombine.low %v5332_v9, %v5340_v25  ;;  %v5342_v47 = vcombine.high %v5332_v9, %v5340_v25  ;;  %v6485_v8 = vrot.slane %v6471_v34, %v8968_v29  ;;  %v6527_v14 = vrot.slane %v5873_v36, %v8968_v29 }
 0x467   : > { %v3584_v53 = vshrl.u32 %v3458_v12, 16  ;;  %v6486_v11 = vcombine.high %v6478_v50, %v8446_v46  ;;  %v6493_v58 = vrot.slane %v6478_v50, %v8970_v24  ;;  %v6534_v49 = vrot.slane %v6520_v5, %v8968_v29 }
 0x468   : > { %v5517_v21 = vpack.i.b16 %v5341_v16, %v5291_v32  ;;  %v5519_v17 = vshrl.u32 %v5341_v16, 16  ;;  %v5523_v44 = vpack.i.b16 %v5342_v47, %v5292_v55  ;;  %v5525_v31 = vshrl.u32 %v5342_v47, 16 }
 0x469   : > { %v6501_v62 = vcombine.high %v6485_v8, %v8446_v46  ;;  %v6508_v0 = vrot.slane %v6485_v8, %v8970_v24  ;;  %v6500_v56 = vrot.slane %v6486_v11, %v8970_v24  ;;  %v6535_v20 = vcombine.high %v6527_v14, %v8446_v46 }
 0x46a   : > { %v5520_v60 = vpack.i.b16 %v5519_v17, %v5518_v54  ;;  %v5526_v6 = vpack.i.b16 %v5525_v31, %v5524_v4  ;;  %v8016_v18 = vcombine.low %v5517_v21, %v5517_v21  ;;  %v8017_v57 = vcombine.high %v5517_v21, %v5517_v21 }
 0x46b   : > { %v8048_v41 = vcombine.low %v5523_v44, %v5523_v44  ;;  %v8049_v22 = vcombine.high %v5523_v44, %v5523_v44  ;;  %v6515_v19 = vrot.slane %v6501_v62, %v8970_v24  ;;  %v6542_v43 = vrot.slane %v6527_v14, %v8970_v24 }
 0x46c   : > { %v8032_v23 = vcombine.low %v5520_v60, %v5520_v60  ;;  %v8033_v1 = vcombine.high %v5520_v60, %v5520_v60  ;;  %v8064_v33 = vcombine.low %v5526_v6, %v5526_v6  ;;  %v8065_v7 = vcombine.high %v5526_v6, %v5526_v6  ;;  %5743 = vst.msk [vmem:[%s9302_s28 + $0x30] sm:$0xf] %vm3338_vm1, %v8016_v18 }
 0x46d   : > { %5744 = vst.msk [vmem:[%s9302_s28 + $0x34] sm:$0xf] %vm3338_vm1, %v8017_v57  ;;  %5775 = vst.msk [vmem:[%s9302_s28 + $0xb0] sm:$0xf] %vm3338_vm1, %v8048_v41  ;;  %v7255_v42 = vcombine.low %v6493_v58, %v6500_v56  ;;  %v8092_v52 = vcombine.high %v6493_v58, %v6500_v56  ;;  %v7271_v3 = vcombine.low %v6508_v0, %v6515_v19 }
 0x46e   : > { %5776 = vst.msk [vmem:[%s9302_s28 + $0xb4] sm:$0xf] %vm3338_vm1, %v8049_v22  ;;  %5759 = vst.msk [vmem:[%s9302_s28 + $0x70] sm:$0xf] %vm3338_vm1, %v8032_v23  ;;  %v8093_v61 = vcombine.high %v6508_v0, %v6515_v19  ;;  %v3585_v26 = vpack.i.b16 %v3584_v53, %v3583_v39  ;;  %v6549_v59 = vrot.slane %v6535_v20, %v8970_v24 }
 0x46f   : > { %5760 = vst.msk [vmem:[%s9302_s28 + $0x74] sm:$0xf] %vm3338_vm1, %v8033_v1  ;;  %5791 = vst.msk [vmem:[%s9302_s28 + $0xf0] sm:$0xf] %vm3338_vm1, %v8064_v33  ;;  %v6550_v37 = vcombine.high %v6534_v49, %v8446_v46  ;;  %v6557_v2 = vrot.slane %v6534_v49, %v8970_v24  ;;  %v7262_v63 = vrot.slane %v7255_v42, %v8968_v29 }
 0x470   : > { %5792 = vst.msk [vmem:[%s9302_s28 + $0xf4] sm:$0xf] %vm3338_vm1, %v8065_v7  ;;  %v7270_v38 = vrot.slane %v8092_v52, %v8968_v29  ;;  %v7278_v27 = vrot.slane %v7271_v3, %v8968_v29  ;;  %v7286_v35 = vrot.slane %v8093_v61, %v8968_v29  ;;  %v4526_v32 = vcombine.high %v3581_v30, %v8966_v28 }
 0x471   : > { %v6564_v55 = vrot.slane %v6550_v37, %v8970_v24  ;;  %v7304_v10 = vcombine.low %v6542_v43, %v6549_v59  ;;  %v8094_v40 = vcombine.high %v6542_v43, %v6549_v59  ;;  %v4533_v12 = vrot.slane %v3581_v30, %v8968_v29 }
 0x472   : > { %v7287_v9 = vcombine.low %v7262_v63, %v7270_v38  ;;  %v7295_v25 = vcombine.low %v7278_v27, %v7286_v35  ;;  %v4540_v39 = vrot.slane %v4526_v32, %v8968_v29  ;;  %v4592_v54 = vcombine.high %v3585_v26, %v8966_v28 }
 0x473   : > { %v7311_v4 = vrot.slane %v7304_v10, %v8968_v29  ;;  %v7319_v36 = vrot.slane %v8094_v40, %v8968_v29  ;;  %v7320_v34 = vcombine.low %v6557_v2, %v6564_v55  ;;  %v8095_v16 = vcombine.high %v6557_v2, %v6564_v55  ;;  %v5818_v10 = vpop.permute.xlu1 %5817 }
 0x474   : > { %v7294_v47 = vrot.slane %v7287_v9, %v8970_v24  ;;  %v7302_v50 = vrot.slane %v7295_v25, %v8970_v24  ;;  %v4541_v8 = vcombine.low %v10300_v13, %v4533_v12  ;;  %v4542_v30 = vcombine.high %v10300_v13, %v4533_v12 }
 0x475   : > { %v7327_v5 = vrot.slane %v7320_v34, %v8968_v29  ;;  %v7335_v14 = vrot.slane %v8095_v16, %v8968_v29  ;;  %v7336_v53 = vcombine.low %v7311_v4, %v7319_v36  ;;  %v4557_v21 = vcombine.low %v10303_v51, %v4540_v39 }
 0x476   : > { %v7303_v17 = vcombine.low %v7294_v47, %v7302_v50  ;;  %v4549_v44 = vrot.slane %v4541_v8, %v8970_v24  ;;  %v4556_v31 = vrot.slane %v4542_v30, %v8970_v24  ;;  %v4558_v11 = vcombine.high %v10303_v51, %v4540_v39 }
 0x477   : > { %v7343_v58 = vrot.slane %v7336_v53, %v8970_v24  ;;  %v7344_v62 = vcombine.low %v7327_v5, %v7335_v14  ;;  %v4565_v0 = vrot.slane %v4557_v21, %v8970_v24  ;;  %v4599_v13 = vrot.slane %v3585_v26, %v8968_v29 }
 0x478   : > { %v7490_v60 = vshrl.u32 %v7303_v17, 16  ;;  %v4572_v6 = vrot.slane %v4558_v11, %v8970_v24  ;;  %v4606_v18 = vrot.slane %v4592_v54, %v8968_v29  ;;  %v5343_v57 = vcombine.low %v4549_v44, %v4556_v31 }
 0x479   : > { %v7351_v41 = vrot.slane %v7344_v62, %v8970_v24  ;;  %v4607_v22 = vcombine.low %v10308_v48, %v4599_v13  ;;  %v4608_v56 = vcombine.high %v10308_v48, %v4599_v13  ;;  %v8000_v51 = vcombine.high %v4549_v44, %v4556_v31 }
 0x47a   : > { %v4623_v19 = vcombine.low %v10314_v15, %v4606_v18  ;;  %v4624_v23 = vcombine.high %v10314_v15, %v4606_v18  ;;  %v5350_v1 = vrot.slane %v5343_v57, %v8968_v29  ;;  %v5359_v33 = vcombine.low %v4565_v0, %v4572_v6 }
 0x47b   : > { %v7352_v7 = vcombine.low %v7343_v58, %v7351_v41  ;;  %v4615_v49 = vrot.slane %v4607_v22, %v8970_v24  ;;  %v4622_v20 = vrot.slane %v4608_v56, %v8970_v24  ;;  %v5358_v43 = vrot.slane %v8000_v51, %v8968_v29 }
 0x47c   : > { %v4631_v42 = vrot.slane %v4623_v19, %v8970_v24  ;;  %v4638_v52 = vrot.slane %v4624_v23, %v8970_v24  ;;  %v5366_v48 = vrot.slane %v5359_v33, %v8968_v29  ;;  %v8001_v3 = vcombine.high %v4565_v0, %v4572_v6 }
 0x47d   : > { %v7489_v61 = vpack.i.b16 %v7352_v7, %v7303_v17  ;;  %v7491_v26 = vshrl.u32 %v7352_v7, 16  ;;  %v5375_v15 = vcombine.low %v5350_v1, %v5358_v43  ;;  %v5393_v59 = vcombine.low %v4615_v49, %v4622_v20 }
 0x47e   : > { %v5374_v37 = vrot.slane %v8001_v3, %v8968_v29  ;;  %v8002_v2 = vcombine.high %v4615_v49, %v4622_v20  ;;  %v5409_v63 = vcombine.low %v4631_v42, %v4638_v52  ;;  %v8003_v38 = vcombine.high %v4631_v42, %v4638_v52 }
 0x47f   : > { %v7492_v27 = vpack.i.b16 %v7491_v26, %v7490_v60  ;;  %v8112_v35 = vcombine.low %v7489_v61, %v7489_v61  ;;  %v8113_v32 = vcombine.high %v7489_v61, %v7489_v61  ;;  %v5382_v55 = vrot.slane %v5375_v15, %v8970_v24 }
 0x480   : > { %v5383_v40 = vcombine.low %v5366_v48, %v5374_v37  ;;  %v5400_v12 = vrot.slane %v5393_v59, %v8968_v29  ;;  %v5408_v9 = vrot.slane %v8002_v2, %v8968_v29  ;;  %v5416_v25 = vrot.slane %v5409_v63, %v8968_v29 }
 0x481   : > { %v8128_v39 = vcombine.low %v7492_v27, %v7492_v27  ;;  %v8129_v54 = vcombine.high %v7492_v27, %v7492_v27  ;;  %7608 = vst.msk [vmem:[%s9094_s17 + $0x30] sm:$0xf] %vm7595_vm0, %v8112_v35  ;;  %7609 = vst.msk [vmem:[%s9094_s17 + $0x34] sm:$0xf] %vm7595_vm0, %v8113_v32  ;;  %v5424_v4 = vrot.slane %v8003_v38, %v8968_v29  ;;  %v5879_v36 = vshrl.u32 %v8860_v45, 16 }
 0x482   : > { %v5390_v34 = vrot.slane %v5383_v40, %v8970_v24  ;;  %v5425_v16 = vcombine.low %v5400_v12, %v5408_v9  ;;  %v5877_v47 = vpack.i.b16 %v5818_v10, %v8860_v45  ;;  %v5880_v50 = vshrl.u32 %v5818_v10, 16 }
 0x483   : > { %7624 = vst.msk [vmem:[%s9094_s17 + $0x70] sm:$0xf] %vm7595_vm0, %v8128_v39  ;;  %7625 = vst.msk [vmem:[%s9094_s17 + $0x74] sm:$0xf] %vm7595_vm0, %v8129_v54  ;;  %v5433_v8 = vcombine.low %v5416_v25, %v5424_v4 }
 0x484   : > { %v5391_v30 = vcombine.low %v5382_v55, %v5390_v34  ;;  %v5392_v5 = vcombine.high %v5382_v55, %v5390_v34  ;;  %v5881_v14 = vpack.i.b16 %v5880_v50, %v5879_v36  ;;  %v5432_v53 = vrot.slane %v5425_v16, %v8970_v24 }
 0x485   : > { %v5440_v21 = vrot.slane %v5433_v8, %v8970_v24  ;;  %v6569_v17 = vcombine.high %v5877_v47, %v8966_v28  ;;  %v6576_v44 = vrot.slane %v5877_v47, %v8968_v29 }
 0x486   : > { %v5530_v31 = vshrl.u32 %v5391_v30, 16  ;;  %v5536_v11 = vshrl.u32 %v5392_v5, 16  ;;  %v6618_v45 = vcombine.high %v5881_v14, %v8966_v28  ;;  %v6625_v58 = vrot.slane %v5881_v14, %v8968_v29 }
 0x487   : > { %v5441_v62 = vcombine.low %v5432_v53, %v5440_v21  ;;  %v5442_v0 = vcombine.high %v5432_v53, %v5440_v21  ;;  %v6583_v13 = vrot.slane %v6569_v17, %v8968_v29  ;;  %v6584_v60 = vcombine.high %v6576_v44, %v8446_v46 }
 0x488   : > { %v6591_v6 = vrot.slane %v6576_v44, %v8970_v24  ;;  %v6632_v18 = vrot.slane %v6618_v45, %v8968_v29  ;;  %v6633_v57 = vcombine.high %v6625_v58, %v8446_v46  ;;  %v6640_v41 = vrot.slane %v6625_v58, %v8970_v24 }
 0x489   : > { %v5529_v22 = vpack.i.b16 %v5441_v62, %v5391_v30  ;;  %v5531_v56 = vshrl.u32 %v5441_v62, 16  ;;  %v5535_v51 = vpack.i.b16 %v5442_v0, %v5392_v5  ;;  %v5537_v28 = vshrl.u32 %v5442_v0, 16 }
 0x48a   : > { %v6598_v19 = vrot.slane %v6584_v60, %v8970_v24  ;;  %v6599_v23 = vcombine.high %v6583_v13, %v8446_v46  ;;  %v6606_v1 = vrot.slane %v6583_v13, %v8970_v24  ;;  %v6647_v33 = vrot.slane %v6633_v57, %v8970_v24 }
 0x48b   : > { %v5532_v7 = vpack.i.b16 %v5531_v56, %v5530_v31  ;;  %v5538_v49 = vpack.i.b16 %v5537_v28, %v5536_v11  ;;  %v8018_v20 = vcombine.low %v5529_v22, %v5529_v22  ;;  %v8019_v43 = vcombine.high %v5529_v22, %v5529_v22 }
 0x48c   : > { %v8050_v42 = vcombine.low %v5535_v51, %v5535_v51  ;;  %v8051_v52 = vcombine.high %v5535_v51, %v5535_v51  ;;  %v6613_v48 = vrot.slane %v6599_v23, %v8970_v24  ;;  %v6648_v3 = vcombine.high %v6632_v18, %v8446_v46 }
 0x48d   : > { %v8034_v61 = vcombine.low %v5532_v7, %v5532_v7  ;;  %v8035_v26 = vcombine.high %v5532_v7, %v5532_v7  ;;  %v8066_v15 = vcombine.low %v5538_v49, %v5538_v49  ;;  %v8067_v59 = vcombine.high %v5538_v49, %v5538_v49  ;;  %5745 = vst.msk [vmem:[%s9302_s28 + $0x38] sm:$0xf] %vm3338_vm1, %v8018_v20 }
 0x48e   : > { %5746 = vst.msk [vmem:[%s9302_s28 + $0x3c] sm:$0xf] %vm3338_vm1, %v8019_v43  ;;  %5777 = vst.msk [vmem:[%s9302_s28 + $0xb8] sm:$0xf] %vm3338_vm1, %v8050_v42  ;;  %v6655_v37 = vrot.slane %v6632_v18, %v8970_v24  ;;  %v6662_v2 = vrot.slane %v6648_v3, %v8970_v24  ;;  %v7353_v63 = vcombine.low %v6591_v6, %v6598_v19 }
 0x48f   : > { %5778 = vst.msk [vmem:[%s9302_s28 + $0xbc] sm:$0xf] %vm3338_vm1, %v8051_v52  ;;  %v8096_v38 = vcombine.high %v6591_v6, %v6598_v19  ;;  %5761 = vst.msk [vmem:[%s9302_s28 + $0x78] sm:$0xf] %vm3338_vm1, %v8034_v61  ;;  %v7369_v46 = vcombine.low %v6606_v1, %v6613_v48  ;;  %v8097_v27 = vcombine.high %v6606_v1, %v6613_v48 }
 0x490   : > { %5762 = vst.msk [vmem:[%s9302_s28 + $0x7c] sm:$0xf] %vm3338_vm1, %v8035_v26  ;;  %5793 = vst.msk [vmem:[%s9302_s28 + $0xf8] sm:$0xf] %vm3338_vm1, %v8066_v15  ;;  %v7402_v35 = vcombine.low %v6640_v41, %v6647_v33  ;;  %v8098_v32 = vcombine.high %v6640_v41, %v6647_v33  ;;  %v7360_v55 = vrot.slane %v7353_v63, %v8968_v29 }
 0x491   : > { %5794 = vst.msk [vmem:[%s9302_s28 + $0xfc] sm:$0xf] %vm3338_vm1, %v8067_v59  ;;  %v7368_v10 = vrot.slane %v8096_v38, %v8968_v29  ;;  %v7418_v40 = vcombine.low %v6655_v37, %v6662_v2  ;;  %v8099_v12 = vcombine.high %v6655_v37, %v6662_v2  ;;  %v7376_v9 = vrot.slane %v7369_v46, %v8968_v29 }
 0x492   : > { %v7384_v25 = vrot.slane %v8097_v27, %v8968_v29  ;;  %v7409_v39 = vrot.slane %v7402_v35, %v8968_v29  ;;  %v7417_v54 = vrot.slane %v8098_v32, %v8968_v29 }
 0x493   : > { %v7385_v4 = vcombine.low %v7360_v55, %v7368_v10  ;;  %v7425_v36 = vrot.slane %v7418_v40, %v8968_v29  ;;  %v7433_v34 = vrot.slane %v8099_v12, %v8968_v29 }
 0x494   : > { %v7393_v16 = vcombine.low %v7376_v9, %v7384_v25  ;;  %v7434_v47 = vcombine.low %v7409_v39, %v7417_v54 }
 0x495   : > { %v7442_v50 = vcombine.low %v7425_v36, %v7433_v34  ;;  %v7392_v8 = vrot.slane %v7385_v4, %v8970_v24 }
 0x496   : > { %v7400_v30 = vrot.slane %v7393_v16, %v8970_v24  ;;  %v7441_v5 = vrot.slane %v7434_v47, %v8970_v24 }
 0x497   : > { %v7449_v14 = vrot.slane %v7442_v50, %v8970_v24 }
 0x498   : > { %v7401_v53 = vcombine.low %v7392_v8, %v7400_v30 }
 0x499   : > { %v7450_v21 = vcombine.low %v7441_v5, %v7449_v14 }
 0x49a   : > { %v7496_v44 = vshrl.u32 %v7401_v53, 16 }
 0x49b   : > { %v7495_v17 = vpack.i.b16 %v7450_v21, %v7401_v53  ;;  %v7497_v29 = vshrl.u32 %v7450_v21, 16 }
 0x49d   : > { %v7498_v31 = vpack.i.b16 %v7497_v29, %v7496_v44  ;;  %v8114_v11 = vcombine.low %v7495_v17, %v7495_v17  ;;  %v8115_v45 = vcombine.high %v7495_v17, %v7495_v17 }
 0x49f   : > { %v8130_v58 = vcombine.low %v7498_v31, %v7498_v31  ;;  %v8131_v62 = vcombine.high %v7498_v31, %v7498_v31  ;;  %7610 = vst.msk [vmem:[%s9094_s17 + $0x38] sm:$0xf] %vm7595_vm0, %v8114_v11  ;;  %7611 = vst.msk [vmem:[%s9094_s17 + $0x3c] sm:$0xf] %vm7595_vm0, %v8115_v45 }
 0x4a1   : > { %7626 = vst.msk [vmem:[%s9094_s17 + $0x78] sm:$0xf] %vm7595_vm0, %v8130_v58  ;;  %7627 = vst.msk [vmem:[%s9094_s17 + $0x7c] sm:$0xf] %vm7595_vm0, %v8131_v62 }
 0x4a2 PF: > { %s21_s26 = sadd.s32 1, %s8438_s26   ;;  %s10507_s21 = smov %s8422_s22 }
 0x4a3   : > { %p18_p1 = scmp.ge.s32.totalorder %s21_s26, 4   ;;  %s10508_s22 = smov %s8426_s23 }
 0x4a4   : > { %s10509_s23 = smov %s8570_s15  ;;  %s10510_s24 = smov %s8434_s25 }
 0x4a5   : > { %s10511_s25 = smov %s10513_s10  ;;  %20 = sbr.rel (!%p18_p1) target bundleno = 5 (0x5), region = 104 }
 0x4ac   :  { %7708 = vsyncpa [#allocation3], 1 }
 0x4ad   :  { %7710 = vsyncpa [#allocation3 + $0x1], 1 }
 0x4ae   :  { %7711 = vsyncpa [#allocation5], 1 }

</bundles_post_ra>
